<compile_context>
chip_gen: v6e
topology: v6e:2x2x1
jax: 0.10.0
libtpu: 0.0.40
codegen_flags: <defaults>
</compile_context>

<pallas_src>
import functools

import jax
import jax.numpy as jnp
from jax.experimental import pallas as pl
from jax.experimental.pallas import tpu as pltpu


FLAT_SIZE = 64 * 7 * 7          # requires 84x84 input, as in the PyTorch module
FC2_PAD = 128                   # fc2 outputs (num_actions / 1) padded to one lane tile
_TM_MAX = 512                   # max conv matmul M tile
_TB_MAX = 512                   # max MLP batch tile


def _cdiv(a, b):
    return -(-a // b)


def _round_up(x, m):
    return _cdiv(x, m) * m


@functools.lru_cache(maxsize=None)
def _vmem_limit():
    """Generation-dependent VMEM limit: ~3/4 of physical, clamped to [32, 96] MiB."""
    try:
        phys = getattr(pltpu.get_tpu_info(), "vmem_capacity_bytes", None)
        if phys is None:
            return 32 * 1024 * 1024
        return int(min(96 * 1024 * 1024, max(32 * 1024 * 1024, (phys * 3) // 4)))
    except Exception:
        return 32 * 1024 * 1024


def _choose_m_tiles(M, tm_max):
    """Minimize M padding subject to >=2 grid steps (v7x has 2 TensorCores)."""
    if M < 16:
        return M, M, 1                       # single full block (legal: equals full dim)
    nsteps = max(_cdiv(M, tm_max), 2)
    tm = _round_up(_cdiv(M, nsteps), 8)
    return tm, tm * nsteps, nsteps


# ----------------------------------------------------------------------------
# Pallas kernel 1: out = relu(A @ W + bias)   (conv layers as im2col GEMMs)
# ----------------------------------------------------------------------------
def _mm_bias_relu_kernel(a_ref, w_ref, b_ref, o_ref):
    acc = jnp.dot(a_ref[...], w_ref[...], preferred_element_type=jnp.float32)
    acc = jnp.maximum(acc + b_ref[...], 0.0)
    o_ref[...] = acc.astype(o_ref.dtype)


def matmul_bias_relu(a, w, bias, *, out_dtype=jnp.bfloat16, tm_max=_TM_MAX):
    """a: [M, K] bf16, w: [K, N] bf16 (no K padding), bias: [1, N] f32."""
    M, K = a.shape
    Kw, N = w.shape
    assert Kw == K, (Kw, K)

    tm, Mp, nsteps = _choose_m_tiles(M, tm_max)
    if Mp != M:
        a = jnp.pad(a, ((0, Mp - M), (0, 0)))

    flops = 2 * Mp * K * N
    bytes_accessed = (a.size * a.dtype.itemsize + w.size * w.dtype.itemsize
                      + bias.size * bias.dtype.itemsize
                      + Mp * N * jnp.dtype(out_dtype).itemsize)

    out = pl.pallas_call(
        _mm_bias_relu_kernel,
        out_shape=jax.ShapeDtypeStruct((Mp, N), out_dtype),
        grid=(nsteps,),
        in_specs=[
            pl.BlockSpec((tm, K), lambda i: (i, 0)),
            pl.BlockSpec((K, N), lambda i: (0, 0)),    # resident across M steps
            pl.BlockSpec((1, N), lambda i: (0, 0)),
        ],
        out_specs=pl.BlockSpec((tm, N), lambda i: (i, 0)),
        compiler_params=pltpu.CompilerParams(
            dimension_semantics=("parallel",),
            vmem_limit_bytes=_vmem_limit(),
        ),
        cost_estimate=pl.CostEstimate(
            flops=flops, transcendentals=0, bytes_accessed=bytes_accessed),
    )(a, w, bias)
    return out[:M] if Mp != M else out


# ----------------------------------------------------------------------------
# Pallas kernel 2: fused MLP head  out[g] = relu(A[g]@W1[g]+b1[g]) @ W2[g] + b2[g]
# ----------------------------------------------------------------------------
def _mlp_kernel(a_ref, w1_ref, b1_ref, w2_ref, b2_ref, o_ref):
    h = jnp.dot(a_ref[0], w1_ref[0], preferred_element_type=jnp.float32)
    h = jnp.maximum(h + b1_ref[0], 0.0)
    out = jnp.dot(h.astype(jnp.bfloat16), w2_ref[0],
                  preferred_element_type=jnp.float32)
    o_ref[0] = (out + b2_ref[0]).astype(o_ref.dtype)


def mlp_heads(a, w1, b1, w2, b2, *, tb_max=_TB_MAX):
    """a: [G,B,K] bf16; w1: [G,K,H] bf16; b1: [G,1,H] f32;
       w2: [G,H,N2] bf16; b2: [G,1,N2] f32  ->  [G, B, N2] f32."""
    G, B, K = a.shape
    _, Kw, H = w1.shape
    _, _, N2 = w2.shape
    assert Kw == K

    if B <= tb_max:                 # full-dim batch block: no padding needed
        tb, Bp, nbt = B, B, 1
    else:                           # batch-tiled: bounded VMEM, extra parallel steps
        nbt = _cdiv(B, tb_max)
        tb = _round_up(_cdiv(B, nbt), 8)
        Bp = tb * nbt
        if Bp != B:
            a = jnp.pad(a, ((0, 0), (0, Bp - B), (0, 0)))

    flops = 2 * G * Bp * (K * H + H * N2)
    bytes_accessed = (a.size * 2 + w1.size * 2 + w2.size * 2
                      + b1.size * 4 + b2.size * 4 + G * Bp * N2 * 4)

    out = pl.pallas_call(
        _mlp_kernel,
        out_shape=jax.ShapeDtypeStruct((G, Bp, N2), jnp.float32),
        grid=(G, nbt),
        in_specs=[
            pl.BlockSpec((1, tb, K), lambda g, i: (g, i, 0)),
            pl.BlockSpec((1, K, H), lambda g, i: (g, 0, 0)),   # resident across batch tiles
            pl.BlockSpec((1, 1, H), lambda g, i: (g, 0, 0)),
            pl.BlockSpec((1, H, N2), lambda g, i: (g, 0, 0)),
            pl.BlockSpec((1, 1, N2), lambda g, i: (g, 0, 0)),
        ],
        out_specs=pl.BlockSpec((1, tb, N2), lambda g, i: (g, i, 0)),
        compiler_params=pltpu.CompilerParams(
            dimension_semantics=("parallel", "parallel"),
            vmem_limit_bytes=_vmem_limit(),
        ),
        cost_estimate=pl.CostEstimate(
            flops=flops, transcendentals=0, bytes_accessed=bytes_accessed),
    )(a, w1, b1, w2, b2)
    return out[:, :B, :] if Bp != B else out


# ----------------------------------------------------------------------------
# im2col glue (done once per layer on the head-merged tensor, in bf16)
# ----------------------------------------------------------------------------
def _im2col(x, kh, kw, stride):
    """x: [B, H, W, C] -> patches [B, oh, ow, kh*kw, C] ((kh, kw) major, then C)."""
    B, H, W, C = x.shape
    oh = (H - kh) // stride + 1
    ow = (W - kw) // stride + 1
    cols = []
    for i in range(kh):
        for j in range(kw):
            cols.append(jax.lax.slice(
                x, (0, i, j, 0),
                (B, i + stride * (oh - 1) + 1, j + stride * (ow - 1) + 1, C),
                (1, stride, stride, 1)))
    return jnp.stack(cols, axis=3), oh, ow


# ----------------------------------------------------------------------------
# Fused actor+critic forward (semantics of ConvSeparate.forward)
# ----------------------------------------------------------------------------
def conv_separate_forward(x_nchw, prep, *, num_actions):
    B = x_nchw.shape[0]
    # NHWC once; transposing x (~28 KB/example) is cheaper than transposing the
    # 64x larger im2col patch stack, so this is the single input relayout.
    x = jnp.transpose(x_nchw, (0, 2, 3, 1)).astype(jnp.bfloat16)

    # conv1: both heads share the input -> one GEMM, N = 32+32 channels.
    p1, oh1, ow1 = _im2col(x, 8, 8, 4)                       # [B,20,20,64,4]
    a1 = p1.reshape(B * oh1 * ow1, 8 * 8 * 4)                # [B*400, 256]
    y1 = matmul_bias_relu(a1, prep["w1"], prep["b1"])        # [B*400, 64] bf16
    y1 = y1.reshape(B, oh1, ow1, 64)     # channels 0:32 actor, 32:64 critic

    # conv2: block-diagonal head-merged weights (K=1024, N=128, lane-dense).
    p2, oh2, ow2 = _im2col(y1, 4, 4, 2)                      # [B,9,9,16,64]
    a2 = p2.reshape(B * oh2 * ow2, 16 * 64)                  # [B*81, 1024]
    y2 = matmul_bias_relu(a2, prep["w2"], prep["b2"])        # [B*81, 128]
    y2 = y2.reshape(B, oh2, ow2, 128)    # channels 0:64 actor, 64:128 critic

    # conv3: block-diagonal head-merged weights (K=1152, N=128, lane-dense).
    p3, oh3, ow3 = _im2col(y2, 3, 3, 1)                      # [B,7,7,9,128]
    a3 = p3.reshape(B * oh3 * ow3, 9 * 128)                  # [B*49, 1152]
    y3 = matmul_bias_relu(a3, prep["w3"], prep["b3"])        # [B*49, 128]
    y3 = y3.reshape(B, oh3 * ow3, 128)

    # Head split = contiguous lane slices; the PyTorch NCHW-flatten permutation
    # is folded into fc1's weight rows (HWC order), so this is a plain reshape.
    feats = jnp.stack([y3[..., :64].reshape(B, FLAT_SIZE),
                       y3[..., 64:].reshape(B, FLAT_SIZE)])   # [2, B, 3136] bf16
    # TODO(synk): fuse conv3 + flatten + fc1 + fc2 into one per-head pallas_call
    # (needs an in-kernel [T,49,64]->[T,3136] relayout / implicit-GEMM conv3).

    out = mlp_heads(feats, prep["fc1_w"], prep["fc1_b"],
                    prep["fc2_w"], prep["fc2_b"])             # [2, B, 128] f32
    log_policy = out[0, :, :num_actions]    # raw fc2 output, matching the reference
    value = out[1, :, :1]
    return log_policy, value


# ----------------------------------------------------------------------------
# Parameters: PyTorch layouts at init, one-time prep into kernel-ready layouts
# ----------------------------------------------------------------------------
def init_head_params(key, out_dim):
    """PyTorch layouts: conv [Cout, Cin, KH, KW], linear [out, in]."""
    ks = jax.random.split(key, 10)

    def rnd(k, shape, fan_in):
        return jax.random.normal(k, shape, jnp.float32) * (1.0 / jnp.sqrt(fan_in))

    return {
        "w1": rnd(ks[0], (32, 4, 8, 8), 4 * 8 * 8),
        "b1": rnd(ks[1], (32,), 4 * 8 * 8),
        "w2": rnd(ks[2], (64, 32, 4, 4), 32 * 4 * 4),
        "b2": rnd(ks[3], (64,), 32 * 4 * 4),
        "w3": rnd(ks[4], (64, 64, 3, 3), 64 * 3 * 3),
        "b3": rnd(ks[5], (64,), 64 * 3 * 3),
        "fc1_w": rnd(ks[6], (512, FLAT_SIZE), FLAT_SIZE),
        "fc1_b": rnd(ks[7], (512,), FLAT_SIZE),
        "fc2_w": rnd(ks[8], (out_dim, 512), 512),
        "fc2_b": rnd(ks[9], (out_dim,), 512),
    }


def _conv_w(w):
    """[Cout, Cin, KH, KW] -> [KH*KW*Cin, Cout], K row order (kh, kw, ci)."""
    co, ci, kh, kw = w.shape
    return jnp.transpose(w, (2, 3, 1, 0)).reshape(kh * kw * ci, co)


def _block_diag_conv_w(wa, wc):
    """Head-merged block-diagonal conv weight: [KH*KW*2Cin, 2Cout].
    Input channels 0:Cin are the actor's, Cin:2Cin the critic's; output columns
    0:Cout actor, Cout:2Cout critic."""
    co, ci, kh, kw = wa.shape
    ka = _conv_w(wa).reshape(kh * kw, ci, co)
    kc = _conv_w(wc).reshape(kh * kw, ci, co)
    z = jnp.zeros_like(ka)
    top = jnp.concatenate([ka, z], axis=2)     # actor input channels
    bot = jnp.concatenate([z, kc], axis=2)     # critic input channels
    return jnp.concatenate([top, bot], axis=1).reshape(kh * kw * 2 * ci, 2 * co)


def prepare_params(actor, critic):
    """One-time prep into kernel-ready layouts (no per-forward weight work)."""
    bf16, f32 = jnp.bfloat16, jnp.float32

    def fc1_prep(w):
        # [512, 3136] (out, in) with in = c*49 + h*7 + w (NCHW flatten)
        # -> rows reordered to HWC flatten order h*448 + w*64 + c.
        wt = w.T.reshape(64, 7, 7, 512)                 # [c, h, w, out]
        return jnp.transpose(wt, (1, 2, 0, 3)).reshape(FLAT_SIZE, 512)

    def fc2_prep(w, b):                                 # [out, 512] -> [512, FC2_PAD]
        n = w.shape[0]
        wp = jnp.zeros((512, FC2_PAD), f32).at[:, :n].set(w.T)
        bp = jnp.zeros((1, FC2_PAD), f32).at[0, :n].set(b)
        return wp, bp

    w2a, b2a = fc2_prep(actor["fc2_w"], actor["fc2_b"])
    w2c, b2c = fc2_prep(critic["fc2_w"], critic["fc2_b"])

    return {
        # conv1: actor|critic concatenated along Cout -> one GEMM, N = 64.
        "w1": _conv_w(jnp.concatenate([actor["w1"], critic["w1"]], 0)).astype(bf16),
        "b1": jnp.concatenate([actor["b1"], critic["b1"]])[None].astype(f32),
        # conv2 / conv3: block-diagonal head merge -> N = 128 lane-dense GEMMs.
        "w2": _block_diag_conv_w(actor["w2"], critic["w2"]).astype(bf16),
        "b2": jnp.concatenate([actor["b2"], critic["b2"]])[None].astype(f32),
        "w3": _block_diag_conv_w(actor["w3"], critic["w3"]).astype(bf16),
        "b3": jnp.concatenate([actor["b3"], critic["b3"]])[None].astype(f32),
        # MLP: per-head (leading axis 2); fc1 rows permuted to HWC, no K pad.
        "fc1_w": jnp.stack([fc1_prep(actor["fc1_w"]),
                            fc1_prep(critic["fc1_w"])]).astype(bf16),
        "fc1_b": jnp.stack([actor["fc1_b"], critic["fc1_b"]])[:, None].astype(f32),
        "fc2_w": jnp.stack([w2a, w2c]).astype(bf16),
        "fc2_b": jnp.stack([b2a, b2c]),
    }


if __name__ == "__main__":
    num_actions = 6
    key = jax.random.PRNGKey(0)
    k_x, k_actor, k_critic = jax.random.split(key, 3)

    # Input must be 84x84 so the trunk produces 64*7*7 = flat_size features.
    x = jax.random.normal(k_x, (2, 4, 84, 84), jnp.float32)

    actor_params = init_head_params(k_actor, num_actions)
    critic_params = init_head_params(k_critic, 1)
    prep = prepare_params(actor_params, critic_params)        # one-time

    fwd = jax.jit(functools.partial(conv_separate_forward, num_actions=num_actions))
    log_policy, value = fwd(x, prep)
    jax.block_until_ready((log_policy, value))

    assert log_policy.shape == (2, num_actions)
    assert value.shape == (2, 1)
    print("KERNEL_OK")
</pallas_src>

<mosaic_0001>
module attributes {stable_mosaic.version = 11 : i64} {
  func.func @_mm_bias_relu_kernel(%arg0: i32, %arg1: memref<400x256xbf16, #tpu.memory_space<vmem>>, %arg2: memref<256x64xbf16, #tpu.memory_space<vmem>>, %arg3: memref<1x64xf32, #tpu.memory_space<vmem>>, %arg4: memref<400x64xbf16, #tpu.memory_space<vmem>>) attributes {dimension_semantics = [#tpu.dimension_semantics<parallel>], iteration_bounds = array<i64: 2>, scalar_prefetch = 0 : i64, scratch_operands = 0 : i64, tpu.core_type = #tpu.core_type<tc>, window_params = [{transform_indices = @transform_0, window_bounds = array<i64: 400, 256>}, {pipeline_mode = #tpu.pipeline_mode<synchronous>, transform_indices = @transform_1, window_bounds = array<i64: 256, 64>}, {pipeline_mode = #tpu.pipeline_mode<synchronous>, transform_indices = @transform_2, window_bounds = array<i64: 1, 64>}, {transform_indices = @transform_3, window_bounds = array<i64: 400, 64>}]} {
    %c0 = arith.constant 0 : index
    %c0_0 = arith.constant 0 : index
    %0 = vector.load %arg1[%c0, %c0_0] : memref<400x256xbf16, #tpu.memory_space<vmem>>, vector<400x256xbf16>
    %c0_1 = arith.constant 0 : index
    %c0_2 = arith.constant 0 : index
    %1 = vector.load %arg2[%c0_1, %c0_2] : memref<256x64xbf16, #tpu.memory_space<vmem>>, vector<256x64xbf16>
    %cst = arith.constant dense<0.000000e+00> : vector<400x64xf32>
    %2 = tpu.matmul %0, %1, %cst {dimension_numbers = #tpu.dot_dimension_numbers<[1], [0], [0], [1], [0, 0, 1, 1], [], []>} : vector<400x256xbf16>, vector<256x64xbf16>, vector<400x64xf32> -> vector<400x64xf32>
    %c0_3 = arith.constant 0 : index
    %c0_4 = arith.constant 0 : index
    %3 = vector.load %arg3[%c0_3, %c0_4] : memref<1x64xf32, #tpu.memory_space<vmem>>, vector<1x64xf32>
    %4 = vector.broadcast %3 : vector<1x64xf32> to vector<400x64xf32>
    %5 = arith.addf %2, %4 : vector<400x64xf32>
    %cst_5 = arith.constant 0.000000e+00 : f32
    %6 = vector.broadcast %cst_5 : f32 to vector<400x64xf32>
    %7 = arith.maximumf %5, %6 : vector<400x64xf32>
    %8 = arith.truncf %7 : vector<400x64xf32> to vector<400x64xbf16>
    %c0_6 = arith.constant 0 : index
    %c0_7 = arith.constant 0 : index
    %9 = vector.load %arg4[%c0_6, %c0_7] : memref<400x64xbf16, #tpu.memory_space<vmem>>, vector<400x64xbf16>
    tpu.vector_store %arg4[%c0_6, %c0_7], %8 {strides = array<i32>} : memref<400x64xbf16, #tpu.memory_space<vmem>>, vector<400x64xbf16>,
    return
  }
  func.func @transform_0(%arg0: i32) -> (i32, i32) {
    %c0_i32 = arith.constant 0 : i32
    %c0_i32_0 = arith.constant 0 : i32
    return %arg0, %c0_i32 : i32, i32
  }
  func.func @transform_1(%arg0: i32) -> (i32, i32) {
    %c0_i32 = arith.constant 0 : i32
    %c0_i32_0 = arith.constant 0 : i32
    %c0_i32_1 = arith.constant 0 : i32
    return %c0_i32, %c0_i32_0 : i32, i32
  }
  func.func @transform_2(%arg0: i32) -> (i32, i32) {
    %c0_i32 = arith.constant 0 : i32
    %c0_i32_0 = arith.constant 0 : i32
    %c0_i32_1 = arith.constant 0 : i32
    return %c0_i32, %c0_i32_0 : i32, i32
  }
  func.func @transform_3(%arg0: i32) -> (i32, i32) {
    %c0_i32 = arith.constant 0 : i32
    %c0_i32_0 = arith.constant 0 : i32
    return %arg0, %c0_i32 : i32, i32
  }
}

module attributes {stable_mosaic.version = 11 : i64} {
  func.func @_mm_bias_relu_kernel(%arg0: i32, %arg1: memref<88x1024xbf16, #tpu.memory_space<vmem>>, %arg2: memref<1024x128xbf16, #tpu.memory_space<vmem>>, %arg3: memref<1x128xf32, #tpu.memory_space<vmem>>, %arg4: memref<88x128xbf16, #tpu.memory_space<vmem>>) attributes {dimension_semantics = [#tpu.dimension_semantics<parallel>], iteration_bounds = array<i64: 2>, scalar_prefetch = 0 : i64, scratch_operands = 0 : i64, tpu.core_type = #tpu.core_type<tc>, window_params = [{transform_indices = @transform_0, window_bounds = array<i64: 88, 1024>}, {pipeline_mode = #tpu.pipeline_mode<synchronous>, transform_indices = @transform_1, window_bounds = array<i64: 1024, 128>}, {pipeline_mode = #tpu.pipeline_mode<synchronous>, transform_indices = @transform_2, window_bounds = array<i64: 1, 128>}, {transform_indices = @transform_3, window_bounds = array<i64: 88, 128>}]} {
    %c0 = arith.constant 0 : index
    %c0_0 = arith.constant 0 : index
    %0 = vector.load %arg1[%c0, %c0_0] : memref<88x1024xbf16, #tpu.memory_space<vmem>>, vector<88x1024xbf16>
    %c0_1 = arith.constant 0 : index
    %c0_2 = arith.constant 0 : index
    %1 = vector.load %arg2[%c0_1, %c0_2] : memref<1024x128xbf16, #tpu.memory_space<vmem>>, vector<1024x128xbf16>
    %cst = arith.constant dense<0.000000e+00> : vector<88x128xf32>
    %2 = tpu.matmul %0, %1, %cst {dimension_numbers = #tpu.dot_dimension_numbers<[1], [0], [0], [1], [0, 0, 1, 1], [], []>} : vector<88x1024xbf16>, vector<1024x128xbf16>, vector<88x128xf32> -> vector<88x128xf32>
    %c0_3 = arith.constant 0 : index
    %c0_4 = arith.constant 0 : index
    %3 = vector.load %arg3[%c0_3, %c0_4] : memref<1x128xf32, #tpu.memory_space<vmem>>, vector<1x128xf32>
    %4 = vector.broadcast %3 : vector<1x128xf32> to vector<88x128xf32>
    %5 = arith.addf %2, %4 : vector<88x128xf32>
    %cst_5 = arith.constant 0.000000e+00 : f32
    %6 = vector.broadcast %cst_5 : f32 to vector<88x128xf32>
    %7 = arith.maximumf %5, %6 : vector<88x128xf32>
    %8 = arith.truncf %7 : vector<88x128xf32> to vector<88x128xbf16>
    %c0_6 = arith.constant 0 : index
    %c0_7 = arith.constant 0 : index
    %9 = vector.load %arg4[%c0_6, %c0_7] : memref<88x128xbf16, #tpu.memory_space<vmem>>, vector<88x128xbf16>
    tpu.vector_store %arg4[%c0_6, %c0_7], %8 {strides = array<i32>} : memref<88x128xbf16, #tpu.memory_space<vmem>>, vector<88x128xbf16>,
    return
  }
  func.func @transform_0(%arg0: i32) -> (i32, i32) {
    %c0_i32 = arith.constant 0 : i32
    %c0_i32_0 = arith.constant 0 : i32
    return %arg0, %c0_i32 : i32, i32
  }
  func.func @transform_1(%arg0: i32) -> (i32, i32) {
    %c0_i32 = arith.constant 0 : i32
    %c0_i32_0 = arith.constant 0 : i32
    %c0_i32_1 = arith.constant 0 : i32
    return %c0_i32, %c0_i32_0 : i32, i32
  }
  func.func @transform_2(%arg0: i32) -> (i32, i32) {
    %c0_i32 = arith.constant 0 : i32
    %c0_i32_0 = arith.constant 0 : i32
    %c0_i32_1 = arith.constant 0 : i32
    return %c0_i32, %c0_i32_0 : i32, i32
  }
  func.func @transform_3(%arg0: i32) -> (i32, i32) {
    %c0_i32 = arith.constant 0 : i32
    %c0_i32_0 = arith.constant 0 : i32
    return %arg0, %c0_i32 : i32, i32
  }
}

module attributes {stable_mosaic.version = 11 : i64} {
  func.func @_mm_bias_relu_kernel(%arg0: i32, %arg1: memref<56x1152xbf16, #tpu.memory_space<vmem>>, %arg2: memref<1152x128xbf16, #tpu.memory_space<vmem>>, %arg3: memref<1x128xf32, #tpu.memory_space<vmem>>, %arg4: memref<56x128xbf16, #tpu.memory_space<vmem>>) attributes {dimension_semantics = [#tpu.dimension_semantics<parallel>], iteration_bounds = array<i64: 2>, scalar_prefetch = 0 : i64, scratch_operands = 0 : i64, tpu.core_type = #tpu.core_type<tc>, window_params = [{transform_indices = @transform_0, window_bounds = array<i64: 56, 1152>}, {pipeline_mode = #tpu.pipeline_mode<synchronous>, transform_indices = @transform_1, window_bounds = array<i64: 1152, 128>}, {pipeline_mode = #tpu.pipeline_mode<synchronous>, transform_indices = @transform_2, window_bounds = array<i64: 1, 128>}, {transform_indices = @transform_3, window_bounds = array<i64: 56, 128>}]} {
    %c0 = arith.constant 0 : index
    %c0_0 = arith.constant 0 : index
    %0 = vector.load %arg1[%c0, %c0_0] : memref<56x1152xbf16, #tpu.memory_space<vmem>>, vector<56x1152xbf16>
    %c0_1 = arith.constant 0 : index
    %c0_2 = arith.constant 0 : index
    %1 = vector.load %arg2[%c0_1, %c0_2] : memref<1152x128xbf16, #tpu.memory_space<vmem>>, vector<1152x128xbf16>
    %cst = arith.constant dense<0.000000e+00> : vector<56x128xf32>
    %2 = tpu.matmul %0, %1, %cst {dimension_numbers = #tpu.dot_dimension_numbers<[1], [0], [0], [1], [0, 0, 1, 1], [], []>} : vector<56x1152xbf16>, vector<1152x128xbf16>, vector<56x128xf32> -> vector<56x128xf32>
    %c0_3 = arith.constant 0 : index
    %c0_4 = arith.constant 0 : index
    %3 = vector.load %arg3[%c0_3, %c0_4] : memref<1x128xf32, #tpu.memory_space<vmem>>, vector<1x128xf32>
    %4 = vector.broadcast %3 : vector<1x128xf32> to vector<56x128xf32>
    %5 = arith.addf %2, %4 : vector<56x128xf32>
    %cst_5 = arith.constant 0.000000e+00 : f32
    %6 = vector.broadcast %cst_5 : f32 to vector<56x128xf32>
    %7 = arith.maximumf %5, %6 : vector<56x128xf32>
    %8 = arith.truncf %7 : vector<56x128xf32> to vector<56x128xbf16>
    %c0_6 = arith.constant 0 : index
    %c0_7 = arith.constant 0 : index
    %9 = vector.load %arg4[%c0_6, %c0_7] : memref<56x128xbf16, #tpu.memory_space<vmem>>, vector<56x128xbf16>
    tpu.vector_store %arg4[%c0_6, %c0_7], %8 {strides = array<i32>} : memref<56x128xbf16, #tpu.memory_space<vmem>>, vector<56x128xbf16>,
    return
  }
  func.func @transform_0(%arg0: i32) -> (i32, i32) {
    %c0_i32 = arith.constant 0 : i32
    %c0_i32_0 = arith.constant 0 : i32
    return %arg0, %c0_i32 : i32, i32
  }
  func.func @transform_1(%arg0: i32) -> (i32, i32) {
    %c0_i32 = arith.constant 0 : i32
    %c0_i32_0 = arith.constant 0 : i32
    %c0_i32_1 = arith.constant 0 : i32
    return %c0_i32, %c0_i32_0 : i32, i32
  }
  func.func @transform_2(%arg0: i32) -> (i32, i32) {
    %c0_i32 = arith.constant 0 : i32
    %c0_i32_0 = arith.constant 0 : i32
    %c0_i32_1 = arith.constant 0 : i32
    return %c0_i32, %c0_i32_0 : i32, i32
  }
  func.func @transform_3(%arg0: i32) -> (i32, i32) {
    %c0_i32 = arith.constant 0 : i32
    %c0_i32_0 = arith.constant 0 : i32
    return %arg0, %c0_i32 : i32, i32
  }
}

module attributes {stable_mosaic.version = 11 : i64} {
  func.func @_mlp_kernel(%arg0: i32, %arg1: i32, %arg2: memref<1x2x3136xbf16, #tpu.memory_space<vmem>>, %arg3: memref<1x3136x512xbf16, #tpu.memory_space<vmem>>, %arg4: memref<1x1x512xf32, #tpu.memory_space<vmem>>, %arg5: memref<1x512x128xbf16, #tpu.memory_space<vmem>>, %arg6: memref<1x1x128xf32, #tpu.memory_space<vmem>>, %arg7: memref<1x2x128xf32, #tpu.memory_space<vmem>>) attributes {dimension_semantics = [#tpu.dimension_semantics<parallel>, #tpu.dimension_semantics<parallel>], iteration_bounds = array<i64: 2, 1>, scalar_prefetch = 0 : i64, scratch_operands = 0 : i64, tpu.core_type = #tpu.core_type<tc>, window_params = [{transform_indices = @transform_0, window_bounds = array<i64: 1, 2, 3136>}, {transform_indices = @transform_1, window_bounds = array<i64: 1, 3136, 512>}, {transform_indices = @transform_2, window_bounds = array<i64: 1, 1, 512>}, {transform_indices = @transform_3, window_bounds = array<i64: 1, 512, 128>}, {transform_indices = @transform_4, window_bounds = array<i64: 1, 1, 128>}, {transform_indices = @transform_5, window_bounds = array<i64: 1, 2, 128>}]} {
    %c0 = arith.constant 0 : index
    %c0_0 = arith.constant 0 : index
    %c0_1 = arith.constant 0 : index
    %0 = vector.load %arg2[%c0, %c0_0, %c0_1] : memref<1x2x3136xbf16, #tpu.memory_space<vmem>>, vector<1x2x3136xbf16>
    %1 = vector.shape_cast %0 : vector<1x2x3136xbf16> to vector<2x3136xbf16>
    %c0_2 = arith.constant 0 : index
    %c0_3 = arith.constant 0 : index
    %c0_4 = arith.constant 0 : index
    %2 = vector.load %arg3[%c0_2, %c0_3, %c0_4] : memref<1x3136x512xbf16, #tpu.memory_space<vmem>>, vector<1x3136x512xbf16>
    %3 = vector.shape_cast %2 : vector<1x3136x512xbf16> to vector<3136x512xbf16>
    %cst = arith.constant dense<0.000000e+00> : vector<2x512xf32>
    %4 = tpu.matmul %1, %3, %cst {dimension_numbers = #tpu.dot_dimension_numbers<[1], [0], [0], [1], [0, 0, 1, 1], [], []>} : vector<2x3136xbf16>, vector<3136x512xbf16>, vector<2x512xf32> -> vector<2x512xf32>
    %c0_5 = arith.constant 0 : index
    %c0_6 = arith.constant 0 : index
    %c0_7 = arith.constant 0 : index
    %5 = vector.load %arg4[%c0_5, %c0_6, %c0_7] : memref<1x1x512xf32, #tpu.memory_space<vmem>>, vector<1x1x512xf32>
    %6 = vector.shape_cast %5 : vector<1x1x512xf32> to vector<1x512xf32>
    %7 = vector.broadcast %6 : vector<1x512xf32> to vector<2x512xf32>
    %8 = arith.addf %4, %7 : vector<2x512xf32>
    %cst_8 = arith.constant 0.000000e+00 : f32
    %9 = vector.broadcast %cst_8 : f32 to vector<2x512xf32>
    %10 = arith.maximumf %8, %9 : vector<2x512xf32>
    %11 = arith.truncf %10 : vector<2x512xf32> to vector<2x512xbf16>
    %c0_9 = arith.constant 0 : index
    %c0_10 = arith.constant 0 : index
    %c0_11 = arith.constant 0 : index
    %12 = vector.load %arg5[%c0_9, %c0_10, %c0_11] : memref<1x512x128xbf16, #tpu.memory_space<vmem>>, vector<1x512x128xbf16>
    %13 = vector.shape_cast %12 : vector<1x512x128xbf16> to vector<512x128xbf16>
    %cst_12 = arith.constant dense<0.000000e+00> : vector<2x128xf32>
    %14 = tpu.matmul %11, %13, %cst_12 {dimension_numbers = #tpu.dot_dimension_numbers<[1], [0], [0], [1], [0, 0, 1, 1], [], []>} : vector<2x512xbf16>, vector<512x128xbf16>, vector<2x128xf32> -> vector<2x128xf32>
    %c0_13 = arith.constant 0 : index
    %c0_14 = arith.constant 0 : index
    %c0_15 = arith.constant 0 : index
    %15 = vector.load %arg6[%c0_13, %c0_14, %c0_15] : memref<1x1x128xf32, #tpu.memory_space<vmem>>, vector<1x1x128xf32>
    %16 = vector.shape_cast %15 : vector<1x1x128xf32> to vector<1x128xf32>
    %17 = vector.broadcast %16 : vector<1x128xf32> to vector<2x128xf32>
    %18 = arith.addf %14, %17 : vector<2x128xf32>
    %c0_16 = arith.constant 0 : index
    %c0_17 = arith.constant 0 : index
    %c0_18 = arith.constant 0 : index
    %19 = vector.load %arg7[%c0_16, %c0_17, %c0_18] : memref<1x2x128xf32, #tpu.memory_space<vmem>>, vector<1x2x128xf32>
    %20 = vector.shape_cast %19 : vector<1x2x128xf32> to vector<2x128xf32>
    %21 = vector.shape_cast %18 : vector<2x128xf32> to vector<1x2x128xf32>
    tpu.vector_store %arg7[%c0_16, %c0_17, %c0_18], %21 {strides = array<i32>} : memref<1x2x128xf32, #tpu.memory_space<vmem>>, vector<1x2x128xf32>,
    return
  }
  func.func @transform_0(%arg0: i32, %arg1: i32) -> (i32, i32, i32) {
    %c0_i32 = arith.constant 0 : i32
    %c0_i32_0 = arith.constant 0 : i32
    return %arg0, %arg1, %c0_i32 : i32, i32, i32
  }
  func.func @transform_1(%arg0: i32, %arg1: i32) -> (i32, i32, i32) {
    %c0_i32 = arith.constant 0 : i32
    %c0_i32_0 = arith.constant 0 : i32
    %c0_i32_1 = arith.constant 0 : i32
    return %arg0, %c0_i32, %c0_i32_0 : i32, i32, i32
  }
  func.func @transform_2(%arg0: i32, %arg1: i32) -> (i32, i32, i32) {
    %c0_i32 = arith.constant 0 : i32
    %c0_i32_0 = arith.constant 0 : i32
    %c0_i32_1 = arith.constant 0 : i32
    return %arg0, %c0_i32, %c0_i32_0 : i32, i32, i32
  }
  func.func @transform_3(%arg0: i32, %arg1: i32) -> (i32, i32, i32) {
    %c0_i32 = arith.constant 0 : i32
    %c0_i32_0 = arith.constant 0 : i32
    %c0_i32_1 = arith.constant 0 : i32
    return %arg0, %c0_i32, %c0_i32_0 : i32, i32, i32
  }
  func.func @transform_4(%arg0: i32, %arg1: i32) -> (i32, i32, i32) {
    %c0_i32 = arith.constant 0 : i32
    %c0_i32_0 = arith.constant 0 : i32
    %c0_i32_1 = arith.constant 0 : i32
    return %arg0, %c0_i32, %c0_i32_0 : i32, i32, i32
  }
  func.func @transform_5(%arg0: i32, %arg1: i32) -> (i32, i32, i32) {
    %c0_i32 = arith.constant 0 : i32
    %c0_i32_0 = arith.constant 0 : i32
    return %arg0, %arg1, %c0_i32 : i32, i32, i32
  }
}

</mosaic_0001>

<bundles_post_ra>
// kernel: conv_separate_forward.4
= control target key start
LH: loop header
LB: loop body
LE: loop exit
PB: predicated region body
PF: predicated region fallthrough
CT: control target
= control target key end

     0   :  { %s1542_s12 = smov 0   ;;  %s1852_s0 = inlined_call_operand.vmem [shape: bf16[800,256], index: 0, kind: input, shape index: {}]   ;;  %s1853_s1 = inlined_call_operand.vmem [shape: bf16[256,64], index: 1, kind: input, shape index: {}]   ;;  %s1854_s2 = inlined_call_operand.vmem [shape: f32[1,64], index: 2, kind: input, shape index: {}]   ;;  %s1855_s3 = inlined_call_operand.vmem [shape: bf16[800,64], index: 3, kind: output, shape index: {}]  }
   0x1 LB: > { %s1203_s13 = sadd.s32 4294967295, %s1519_s12   ;;  %p1207_p0 = scmp.ge.s32.totalorder %s1519_s12, 1  ;;  %s1519_s12 = sphi %s1542_s12, %s13_s12  }
   0x2   : > { %p139_p1 = scmp.lt.s32.totalorder %s1519_s12, 3 }
   0x4   : > { %p140_p2 = pnand %p1207_p0, %p139_p1 }
   0x5   : > { %s164_s16 = smul.u32 (!%p140_p2), 50, %s1203_s13 }
   0x6   : > { %143 = sbr.rel (%p140_p2) target bundleno = 376 (0x178), region = 32 }
   0x7   : > { %p165_p3 = scmp.lt.s32.totalorder (!%p140_p2), %s164_s16, 99 }
   0xb   : > { %v1422_v0 = vld [vmem:[%s1853_s1 + $0x38] sm:$0xff]   ;;  %v1521_v1 = vmov 0   ;;  %v1423_v2 = vld [vmem:[%s1853_s1 + $0x30] sm:$0xff]   ;;  %v1424_v3 = vld [vmem:[%s1853_s1 + $0x28] sm:$0xff]   ;;  %s1857_s16 = smov (!%p165_p3, %s164_s16), 99  ;;  %vm1096_vm0 = vcmask 519168  }
   0xc   : > { %613 = vmatprep.subr.bf16.mxu0 %v1521_v1  ;;  %1381 = vmatprep.subr.bf16.mxu1 %v1521_v1  ;;  %v1425_v4 = vld [vmem:[%s1853_s1 + $0x20] sm:$0xff]   ;;  %s1330_s23 = sshll.u32 %s1857_s16, 3  ;;  %v1426_v5 = vld [vmem:[%s1853_s1 + $0x18] sm:$0xff]   ;;  %v1427_v7 = vld [vmem:[%s1853_s1 + $0x10] sm:$0xff]   ;;  %s1210_s29 = sshll.u32 %s1857_s16, 2 }
   0xd   : > { %614 = vmatpush1.bf16.msra.mxu0 %v1422_v0  ;;  %1397 = vmatpush1.bf16.msra.mxu1 %v1422_v0  ;;  %s1579_s28 = scalar_lea.vmem %s1852_s0, %s1330_s23  ;;  %v1428_v9 = vld [vmem:[%s1853_s1 + $0x8] sm:$0xff]   ;;  %v1429_v10 = vld [vmem:[%s1853_s1] sm:$0xff]   ;;  %v1430_v11 = vld [vmem:[%s1853_s1 + $0x78] sm:$0xff]  }
   0xe   : > { %615 = vmatprep.subr.bf16.mxu0 %v1521_v1  ;;  %1382 = vmatprep.subr.bf16.mxu1 %v1521_v1  ;;  %v1440_v6 = vld [vmem:[%s1579_s28 + $0x4] ss:$8 sps:$4 sm:$0xff]   ;;  %v1443_v8 = vld [vmem:[%s1579_s28 + $0xd4] ss:$8 sps:$4 sm:$0xff]   ;;  %v1438_v19 = vld [vmem:[%s1579_s28] ss:$8 sps:$4 sm:$0xff]  }
   0xf   : > { %645 = vmatprep.mubr.bf16.mxu0 %v1440_v6  ;;  %749 = vmatprep.mubr.bf16.mxu1 %v1443_v8  ;;  %v1431_v12 = vld [vmem:[%s1853_s1 + $0x70] sm:$0xff]   ;;  %v1432_v13 = vld [vmem:[%s1853_s1 + $0x68] sm:$0xff]   ;;  %v1433_v14 = vld [vmem:[%s1853_s1 + $0x60] sm:$0xff]  }
  0x10   : > { %v1434_v15 = vld [vmem:[%s1853_s1 + $0x58] sm:$0xff]   ;;  %v1435_v16 = vld [vmem:[%s1853_s1 + $0x50] sm:$0xff]   ;;  %v1436_v17 = vld [vmem:[%s1853_s1 + $0x48] sm:$0xff]  }
  0x11   : > { %616 = vmatpush1.bf16.msra.mxu0 %v1423_v2  ;;  %1398 = vmatpush1.bf16.msra.mxu1 %v1423_v2  ;;  %v1437_v18 = vld [vmem:[%s1853_s1 + $0x40] sm:$0xff]   ;;  %v1441_v20 = vld [vmem:[%s1579_s28 + $0xd0] ss:$8 sps:$4 sm:$0xff]   ;;  %v1444_v21 = vld [vmem:[%s1579_s28 + $0x14] ss:$8 sps:$4 sm:$0xff]  }
  0x12   : > { %617 = vmatprep.subr.bf16.mxu0 %v1521_v1  ;;  %1383 = vmatprep.subr.bf16.mxu1 %v1521_v1  ;;  %v1447_v22 = vld [vmem:[%s1579_s28 + $0xe4] ss:$8 sps:$4 sm:$0xff]   ;;  %v1446_v23 = vld [vmem:[%s1579_s28 + $0x10] ss:$8 sps:$4 sm:$0xff]   ;;  %v1449_v24 = vld [vmem:[%s1579_s28 + $0xe0] ss:$8 sps:$4 sm:$0xff]  }
  0x13   : > { %v1450_v25 = vld [vmem:[%s1579_s28 + $0x24] ss:$8 sps:$4 sm:$0xff]   ;;  %v1453_v26 = vld [vmem:[%s1579_s28 + $0xf4] ss:$8 sps:$4 sm:$0xff]   ;;  %v1452_v27 = vld [vmem:[%s1579_s28 + $0x20] ss:$8 sps:$4 sm:$0xff]  }
  0x14   : > { %v1455_v28 = vld [vmem:[%s1579_s28 + $0xf0] ss:$8 sps:$4 sm:$0xff]   ;;  %v1456_v29 = vld [vmem:[%s1579_s28 + $0x34] ss:$8 sps:$4 sm:$0xff]   ;;  %v1459_v30 = vld [vmem:[%s1579_s28 + $0x104] ss:$8 sps:$4 sm:$0xff]  }
  0x15   : > { %618 = vmatpush1.bf16.msra.mxu0 %v1424_v3  ;;  %1399 = vmatpush1.bf16.msra.mxu1 %v1424_v3  ;;  %v1458_v31 = vld [vmem:[%s1579_s28 + $0x30] ss:$8 sps:$4 sm:$0xff]   ;;  %v1461_v32 = vld [vmem:[%s1579_s28 + $0x100] ss:$8 sps:$4 sm:$0xff]   ;;  %v1462_v33 = vld [vmem:[%s1579_s28 + $0x44] ss:$8 sps:$4 sm:$0xff]  }
  0x16   : > { %619 = vmatprep.subr.bf16.mxu0 %v1521_v1  ;;  %1384 = vmatprep.subr.bf16.mxu1 %v1521_v1  ;;  %v1465_v34 = vld [vmem:[%s1579_s28 + $0x114] ss:$8 sps:$4 sm:$0xff]   ;;  %v1464_v35 = vld [vmem:[%s1579_s28 + $0x40] ss:$8 sps:$4 sm:$0xff]   ;;  %v1467_v36 = vld [vmem:[%s1579_s28 + $0x110] ss:$8 sps:$4 sm:$0xff]  }
  0x17   : > { %v1468_v37 = vld [vmem:[%s1579_s28 + $0x54] ss:$8 sps:$4 sm:$0xff]   ;;  %v1471_v38 = vld [vmem:[%s1579_s28 + $0x124] ss:$8 sps:$4 sm:$0xff]   ;;  %v1470_v39 = vld [vmem:[%s1579_s28 + $0x50] ss:$8 sps:$4 sm:$0xff]  }
  0x18   : > { %v1473_v40 = vld [vmem:[%s1579_s28 + $0x120] ss:$8 sps:$4 sm:$0xff]   ;;  %v1474_v41 = vld [vmem:[%s1579_s28 + $0x64] ss:$8 sps:$4 sm:$0xff]   ;;  %v1477_v42 = vld [vmem:[%s1579_s28 + $0x134] ss:$8 sps:$4 sm:$0xff]  }
  0x19   : > { %620 = vmatpush1.bf16.msra.mxu0 %v1425_v4  ;;  %1400 = vmatpush1.bf16.msra.mxu1 %v1425_v4  ;;  %v1476_v43 = vld [vmem:[%s1579_s28 + $0x60] ss:$8 sps:$4 sm:$0xff]   ;;  %v1479_v44 = vld [vmem:[%s1579_s28 + $0x130] ss:$8 sps:$4 sm:$0xff]   ;;  %v1480_v45 = vld [vmem:[%s1579_s28 + $0x74] ss:$8 sps:$4 sm:$0xff]  }
  0x1a   : > { %621 = vmatprep.subr.bf16.mxu0 %v1521_v1  ;;  %1385 = vmatprep.subr.bf16.mxu1 %v1521_v1  ;;  %v1483_v46 = vld [vmem:[%s1579_s28 + $0x144] ss:$8 sps:$4 sm:$0xff]   ;;  %v1482_v47 = vld [vmem:[%s1579_s28 + $0x70] ss:$8 sps:$4 sm:$0xff]   ;;  %v1485_v48 = vld [vmem:[%s1579_s28 + $0x140] ss:$8 sps:$4 sm:$0xff]  }
  0x1b   : > { %v1486_v49 = vld [vmem:[%s1579_s28 + $0x84] ss:$8 sps:$4 sm:$0xff]   ;;  %v1489_v50 = vld [vmem:[%s1579_s28 + $0x154] ss:$8 sps:$4 sm:$0xff]   ;;  %v1488_v51 = vld [vmem:[%s1579_s28 + $0x80] ss:$8 sps:$4 sm:$0xff]  }
  0x1c   : > { %v1491_v52 = vld [vmem:[%s1579_s28 + $0x150] ss:$8 sps:$4 sm:$0xff]   ;;  %v1492_v53 = vld [vmem:[%s1579_s28 + $0x94] ss:$8 sps:$4 sm:$0xff]   ;;  %v1495_v54 = vld [vmem:[%s1579_s28 + $0x164] ss:$8 sps:$4 sm:$0xff]  }
  0x1d   : > { %622 = vmatpush1.bf16.msra.mxu0 %v1426_v5  ;;  %1401 = vmatpush1.bf16.msra.mxu1 %v1426_v5  ;;  %v1494_v55 = vld [vmem:[%s1579_s28 + $0x90] ss:$8 sps:$4 sm:$0xff]   ;;  %v1497_v56 = vld [vmem:[%s1579_s28 + $0x160] ss:$8 sps:$4 sm:$0xff]   ;;  %v1498_v57 = vld [vmem:[%s1579_s28 + $0xa4] ss:$8 sps:$4 sm:$0xff]  }
  0x1e   : > { %623 = vmatprep.subr.bf16.mxu0 %v1521_v1  ;;  %1386 = vmatprep.subr.bf16.mxu1 %v1521_v1  ;;  %v1501_v58 = vld [vmem:[%s1579_s28 + $0x174] ss:$8 sps:$4 sm:$0xff]   ;;  %v1500_v59 = vld [vmem:[%s1579_s28 + $0xa0] ss:$8 sps:$4 sm:$0xff]   ;;  %v1503_v60 = vld [vmem:[%s1579_s28 + $0x170] ss:$8 sps:$4 sm:$0xff]  }
  0x1f   : > { %v1504_v61 = vld [vmem:[%s1579_s28 + $0xb4] ss:$8 sps:$4 sm:$0xff]   ;;  %v1507_v62 = vld [vmem:[%s1579_s28 + $0x184] ss:$8 sps:$4 sm:$0xff]   ;;  %v1506_v63 = vld [vmem:[%s1579_s28 + $0xb0] ss:$8 sps:$4 sm:$0xff]  }
  0x20   : > { %v1509_v0 = vld [vmem:[%s1579_s28 + $0x180] ss:$8 sps:$4 sm:$0xff]  }
  0x21   : > { %624 = vmatpush1.bf16.msra.mxu0 %v1427_v7  ;;  %1402 = vmatpush1.bf16.msra.mxu1 %v1427_v7  ;;  %v1512_v2 = vld [vmem:[%s1579_s28 + $0xc0] ss:$8 sps:$4 sm:$0xff]  }
  0x22   : > { %625 = vmatprep.subr.bf16.mxu0 %v1521_v1  ;;  %1387 = vmatprep.subr.bf16.mxu1 %v1521_v1  ;;  %v1691_v3 = vld [vmem:[%s1854_s2] ss:$0 sm:$0xff] }
  0x25   : > { %626 = vmatpush1.bf16.msra.mxu0 %v1428_v9  ;;  %1403 = vmatpush1.bf16.msra.mxu1 %v1428_v9 }
  0x26   : > { %627 = vmatprep.subr.bf16.mxu0 %v1521_v1  ;;  %1388 = vmatprep.subr.bf16.mxu1 %v1521_v1 }
  0x29   : > { %628 = vmatpush1.bf16.msra.mxu0 %v1429_v10  ;;  %1404 = vmatpush1.bf16.msra.mxu1 %v1429_v10 }
  0x2a   : > { %629 = vmatprep.subr.bf16.mxu0 %v1521_v1  ;;  %1389 = vmatprep.subr.bf16.mxu1 %v1521_v1 }
  0x2d   : > { %630 = vmatpush2.bf16.msra.mxu0 %v1430_v11  ;;  %1405 = vmatpush2.bf16.msra.mxu1 %v1430_v11 }
  0x2e   : > { %631 = vmatprep.subr.bf16.mxu0 %v1521_v1  ;;  %1390 = vmatprep.subr.bf16.mxu1 %v1521_v1 }
  0x31   : > { %632 = vmatpush2.bf16.msra.mxu0 %v1431_v12  ;;  %1406 = vmatpush2.bf16.msra.mxu1 %v1431_v12 }
  0x32   : > { %633 = vmatprep.subr.bf16.mxu0 %v1521_v1  ;;  %1391 = vmatprep.subr.bf16.mxu1 %v1521_v1 }
  0x35   : > { %634 = vmatpush2.bf16.msra.mxu0 %v1432_v13  ;;  %1407 = vmatpush2.bf16.msra.mxu1 %v1432_v13 }
  0x36   : > { %635 = vmatprep.subr.bf16.mxu0 %v1521_v1  ;;  %1392 = vmatprep.subr.bf16.mxu1 %v1521_v1 }
  0x39   : > { %636 = vmatpush2.bf16.msra.mxu0 %v1433_v14  ;;  %1408 = vmatpush2.bf16.msra.mxu1 %v1433_v14 }
  0x3a   : > { %637 = vmatprep.subr.bf16.mxu0 %v1521_v1  ;;  %1393 = vmatprep.subr.bf16.mxu1 %v1521_v1 }
  0x3d   : > { %638 = vmatpush2.bf16.msra.mxu0 %v1434_v15  ;;  %1409 = vmatpush2.bf16.msra.mxu1 %v1434_v15 }
  0x3e   : > { %639 = vmatprep.subr.bf16.mxu0 %v1521_v1  ;;  %1394 = vmatprep.subr.bf16.mxu1 %v1521_v1 }
  0x41   : > { %640 = vmatpush2.bf16.msra.mxu0 %v1435_v16  ;;  %1410 = vmatpush2.bf16.msra.mxu1 %v1435_v16 }
  0x42   : > { %641 = vmatprep.subr.bf16.mxu0 %v1521_v1  ;;  %1395 = vmatprep.subr.bf16.mxu1 %v1521_v1 }
  0x45   : > { %642 = vmatpush2.bf16.msra.mxu0 %v1436_v17  ;;  %1411 = vmatpush2.bf16.msra.mxu1 %v1436_v17 }
  0x46   : > { %643 = vmatprep.subr.bf16.mxu0 %v1521_v1  ;;  %1396 = vmatprep.subr.bf16.mxu1 %v1521_v1  ;;  %v1510_v1 = vld [vmem:[%s1579_s28 + $0xc4] ss:$8 sps:$4 sm:$0xff]   ;;  %s1699_s28 = scalar_lea.vmem %s1855_s3, %s1210_s29 }
  0x49   : > { %644 = vmatpush2.bf16.msra.mxu0 %v1437_v18  ;;  %1412 = vmatpush2.bf16.msra.mxu1 %v1437_v18 }
  0x4c   : > { %646 = vmatmul.mubr.bf16.vlgmr.msra.gmra.mxu0 %v1438_v19  ;;  %750 = vmatmul.mubr.bf16.vlgmr.msra.gmra.mxu1 %v1441_v20 }
  0x4d   : > { %653 = vmatprep.mubr.bf16.mxu0 %v1444_v21  ;;  %757 = vmatprep.mubr.bf16.mxu1 %v1447_v22 }
  0x54   : > { %654 = vmatmul.mubr.bf16.gmra.mxu0 %v1446_v23  ;;  %758 = vmatmul.mubr.bf16.gmra.mxu1 %v1449_v24 }
  0x55   : > { %661 = vmatprep.mubr.bf16.mxu0 %v1450_v25  ;;  %765 = vmatprep.mubr.bf16.mxu1 %v1453_v26 }
  0x5c   : > { %662 = vmatmul.mubr.bf16.gmra.mxu0 %v1452_v27  ;;  %766 = vmatmul.mubr.bf16.gmra.mxu1 %v1455_v28 }
  0x5d   : > { %669 = vmatprep.mubr.bf16.mxu0 %v1456_v29  ;;  %773 = vmatprep.mubr.bf16.mxu1 %v1459_v30 }
  0x64   : > { %670 = vmatmul.mubr.bf16.gmra.mxu0 %v1458_v31  ;;  %774 = vmatmul.mubr.bf16.gmra.mxu1 %v1461_v32 }
  0x65   : > { %677 = vmatprep.mubr.bf16.mxu0 %v1462_v33  ;;  %781 = vmatprep.mubr.bf16.mxu1 %v1465_v34 }
  0x6c   : > { %678 = vmatmul.mubr.bf16.gmra.mxu0 %v1464_v35  ;;  %782 = vmatmul.mubr.bf16.gmra.mxu1 %v1467_v36 }
  0x6d   : > { %685 = vmatprep.mubr.bf16.mxu0 %v1468_v37  ;;  %789 = vmatprep.mubr.bf16.mxu1 %v1471_v38 }
  0x74   : > { %686 = vmatmul.mubr.bf16.gmra.mxu0 %v1470_v39  ;;  %790 = vmatmul.mubr.bf16.gmra.mxu1 %v1473_v40 }
  0x75   : > { %693 = vmatprep.mubr.bf16.mxu0 %v1474_v41  ;;  %797 = vmatprep.mubr.bf16.mxu1 %v1477_v42 }
  0x7c   : > { %694 = vmatmul.mubr.bf16.gmra.mxu0 %v1476_v43  ;;  %798 = vmatmul.mubr.bf16.gmra.mxu1 %v1479_v44 }
  0x7d   : > { %701 = vmatprep.mubr.bf16.mxu0 %v1480_v45  ;;  %805 = vmatprep.mubr.bf16.mxu1 %v1483_v46 }
  0x84   : > { %702 = vmatmul.mubr.bf16.gmra.mxu0 %v1482_v47  ;;  %806 = vmatmul.mubr.bf16.gmra.mxu1 %v1485_v48 }
  0x85   : > { %709 = vmatprep.mubr.bf16.mxu0 %v1486_v49  ;;  %813 = vmatprep.mubr.bf16.mxu1 %v1489_v50 }
  0x8c   : > { %710 = vmatmul.mubr.bf16.gmra.mxu0 %v1488_v51  ;;  %814 = vmatmul.mubr.bf16.gmra.mxu1 %v1491_v52 }
  0x8d   : > { %717 = vmatprep.mubr.bf16.mxu0 %v1492_v53  ;;  %821 = vmatprep.mubr.bf16.mxu1 %v1495_v54 }
  0x94   : > { %718 = vmatmul.mubr.bf16.gmra.mxu0 %v1494_v55  ;;  %822 = vmatmul.mubr.bf16.gmra.mxu1 %v1497_v56 }
  0x95   : > { %725 = vmatprep.mubr.bf16.mxu0 %v1498_v57  ;;  %829 = vmatprep.mubr.bf16.mxu1 %v1501_v58 }
  0x9c   : > { %726 = vmatmul.mubr.bf16.gmra.mxu0 %v1500_v59  ;;  %830 = vmatmul.mubr.bf16.gmra.mxu1 %v1503_v60 }
  0x9d   : > { %733 = vmatprep.mubr.bf16.mxu0 %v1504_v61  ;;  %837 = vmatprep.mubr.bf16.mxu1 %v1507_v62 }
  0xa4   : > { %734 = vmatmul.mubr.bf16.gmra.mxu0 %v1506_v63  ;;  %838 = vmatmul.mubr.bf16.gmra.mxu1 %v1509_v0 }
  0xa5   : > { %741 = vmatprep.mubr.bf16.mxu0 %v1510_v1 }
  0xac   : > { %742 = vmatmul.mubr.bf16.gmra.mxu0 %v1512_v2 }
 0x10c   : > { %v647_v4 = vpop.f32.mrf.mxu0  ;;  %v751_v5 = vpop.f32.mrf.mxu1 }
 0x10d   : > { %v648_v6 = vadd.f32 %v1691_v3, %v647_v4  ;;  %v752_v7 = vadd.f32 %v1691_v3, %v751_v5 }
 0x10e   : > { %v649_v8 = vpop.f32.mrf.mxu0  ;;  %v753_v9 = vpop.f32.mrf.mxu1 }
 0x10f   : > { %v846_v10 = vmax.f32 %v648_v6, 0.0  ;;  %v872_v11 = vmax.f32 %v752_v7, 0.0 }
 0x110   : > { %v650_v12 = vpop.f32.mrf.mxu0  ;;  %v754_v13 = vpop.f32.mrf.mxu1 }
 0x111   : > { %v1331_v14 = vpack.c.bf16 %v846_v10, %v846_v10  ;;  %v1357_v15 = vpack.c.bf16 %v872_v11, %v872_v11  ;;  %v651_v16 = vadd.f32 %v1691_v3, %v650_v12  ;;  %v755_v17 = vadd.f32 %v1691_v3, %v754_v13 }
 0x112   : > { %v652_v18 = vpop.f32.mrf.mxu0  ;;  %v756_v19 = vpop.f32.mrf.mxu1 }
 0x113   : > { %1097 = vst.msk [vmem:[%s1699_s28] sm:$0xf] %vm1096_vm0, %v1331_v14  ;;  %1123 = vst.msk [vmem:[%s1699_s28 + $0x68] sm:$0xf] %vm1096_vm0, %v1357_v15  ;;  %v847_v20 = vmax.f32 %v651_v16, 0.0  ;;  %v873_v21 = vmax.f32 %v755_v17, 0.0 }
 0x114   : > { %v655_v22 = vpop.f32.mrf.mxu0  ;;  %v759_v23 = vpop.f32.mrf.mxu1 }
 0x115   : > { %v1332_v24 = vpack.c.bf16 %v847_v20, %v847_v20  ;;  %v1358_v25 = vpack.c.bf16 %v873_v21, %v873_v21  ;;  %v656_v26 = vadd.f32 %v1691_v3, %v655_v22  ;;  %v760_v27 = vadd.f32 %v1691_v3, %v759_v23 }
 0x116   : > { %v657_v28 = vpop.f32.mrf.mxu0  ;;  %v761_v29 = vpop.f32.mrf.mxu1 }
 0x117   : > { %1098 = vst.msk [vmem:[%s1699_s28 + $0x4] sm:$0xf] %vm1096_vm0, %v1332_v24  ;;  %1124 = vst.msk [vmem:[%s1699_s28 + $0x6c] sm:$0xf] %vm1096_vm0, %v1358_v25  ;;  %v848_v30 = vmax.f32 %v656_v26, 0.0  ;;  %v874_v31 = vmax.f32 %v760_v27, 0.0 }
 0x118   : > { %v658_v32 = vpop.f32.mrf.mxu0  ;;  %v762_v33 = vpop.f32.mrf.mxu1 }
 0x119   : > { %v1333_v34 = vpack.c.bf16 %v848_v30, %v848_v30  ;;  %v1359_v35 = vpack.c.bf16 %v874_v31, %v874_v31  ;;  %v659_v36 = vadd.f32 %v1691_v3, %v658_v32  ;;  %v763_v37 = vadd.f32 %v1691_v3, %v762_v33 }
 0x11a   : > { %v660_v38 = vpop.f32.mrf.mxu0  ;;  %v764_v39 = vpop.f32.mrf.mxu1 }
 0x11b   : > { %1099 = vst.msk [vmem:[%s1699_s28 + $0x8] sm:$0xf] %vm1096_vm0, %v1333_v34  ;;  %1125 = vst.msk [vmem:[%s1699_s28 + $0x70] sm:$0xf] %vm1096_vm0, %v1359_v35  ;;  %v849_v40 = vmax.f32 %v659_v36, 0.0  ;;  %v875_v41 = vmax.f32 %v763_v37, 0.0 }
 0x11c   : > { %v663_v42 = vpop.f32.mrf.mxu0  ;;  %v767_v43 = vpop.f32.mrf.mxu1 }
 0x11d   : > { %v1334_v44 = vpack.c.bf16 %v849_v40, %v849_v40  ;;  %v1360_v45 = vpack.c.bf16 %v875_v41, %v875_v41  ;;  %v664_v46 = vadd.f32 %v1691_v3, %v663_v42  ;;  %v768_v47 = vadd.f32 %v1691_v3, %v767_v43 }
 0x11e   : > { %v665_v48 = vpop.f32.mrf.mxu0  ;;  %v769_v49 = vpop.f32.mrf.mxu1 }
 0x11f   : > { %1100 = vst.msk [vmem:[%s1699_s28 + $0xc] sm:$0xf] %vm1096_vm0, %v1334_v44  ;;  %1126 = vst.msk [vmem:[%s1699_s28 + $0x74] sm:$0xf] %vm1096_vm0, %v1360_v45  ;;  %v850_v50 = vmax.f32 %v664_v46, 0.0  ;;  %v876_v51 = vmax.f32 %v768_v47, 0.0 }
 0x120   : > { %v666_v52 = vpop.f32.mrf.mxu0  ;;  %v770_v53 = vpop.f32.mrf.mxu1 }
 0x121   : > { %v1335_v54 = vpack.c.bf16 %v850_v50, %v850_v50  ;;  %v1361_v55 = vpack.c.bf16 %v876_v51, %v876_v51  ;;  %v667_v56 = vadd.f32 %v1691_v3, %v666_v52  ;;  %v771_v57 = vadd.f32 %v1691_v3, %v770_v53 }
 0x122   : > { %v668_v58 = vpop.f32.mrf.mxu0  ;;  %v772_v59 = vpop.f32.mrf.mxu1 }
 0x123   : > { %1101 = vst.msk [vmem:[%s1699_s28 + $0x10] sm:$0xf] %vm1096_vm0, %v1335_v54  ;;  %1127 = vst.msk [vmem:[%s1699_s28 + $0x78] sm:$0xf] %vm1096_vm0, %v1361_v55  ;;  %v851_v60 = vmax.f32 %v667_v56, 0.0  ;;  %v877_v61 = vmax.f32 %v771_v57, 0.0 }
 0x124   : > { %v671_v62 = vpop.f32.mrf.mxu0  ;;  %v775_v63 = vpop.f32.mrf.mxu1 }
 0x125   : > { %v1336_v0 = vpack.c.bf16 %v851_v60, %v851_v60  ;;  %v1362_v1 = vpack.c.bf16 %v877_v61, %v877_v61  ;;  %v672_v2 = vadd.f32 %v1691_v3, %v671_v62  ;;  %v776_v4 = vadd.f32 %v1691_v3, %v775_v63 }
 0x126   : > { %v673_v5 = vpop.f32.mrf.mxu0  ;;  %v777_v6 = vpop.f32.mrf.mxu1 }
 0x127   : > { %1102 = vst.msk [vmem:[%s1699_s28 + $0x14] sm:$0xf] %vm1096_vm0, %v1336_v0  ;;  %1128 = vst.msk [vmem:[%s1699_s28 + $0x7c] sm:$0xf] %vm1096_vm0, %v1362_v1  ;;  %v852_v7 = vmax.f32 %v672_v2, 0.0  ;;  %v878_v8 = vmax.f32 %v776_v4, 0.0 }
 0x128   : > { %v674_v9 = vpop.f32.mrf.mxu0  ;;  %v778_v10 = vpop.f32.mrf.mxu1 }
 0x129   : > { %v1337_v11 = vpack.c.bf16 %v852_v7, %v852_v7  ;;  %v1363_v12 = vpack.c.bf16 %v878_v8, %v878_v8  ;;  %v675_v13 = vadd.f32 %v1691_v3, %v674_v9  ;;  %v779_v14 = vadd.f32 %v1691_v3, %v778_v10 }
 0x12a   : > { %v676_v15 = vpop.f32.mrf.mxu0  ;;  %v780_v16 = vpop.f32.mrf.mxu1 }
 0x12b   : > { %1103 = vst.msk [vmem:[%s1699_s28 + $0x18] sm:$0xf] %vm1096_vm0, %v1337_v11  ;;  %1129 = vst.msk [vmem:[%s1699_s28 + $0x80] sm:$0xf] %vm1096_vm0, %v1363_v12  ;;  %v853_v17 = vmax.f32 %v675_v13, 0.0  ;;  %v879_v18 = vmax.f32 %v779_v14, 0.0 }
 0x12c   : > { %v679_v19 = vpop.f32.mrf.mxu0  ;;  %v783_v20 = vpop.f32.mrf.mxu1 }
 0x12d   : > { %v1338_v21 = vpack.c.bf16 %v853_v17, %v853_v17  ;;  %v1364_v22 = vpack.c.bf16 %v879_v18, %v879_v18  ;;  %v680_v23 = vadd.f32 %v1691_v3, %v679_v19  ;;  %v784_v24 = vadd.f32 %v1691_v3, %v783_v20 }
 0x12e   : > { %v681_v25 = vpop.f32.mrf.mxu0  ;;  %v785_v26 = vpop.f32.mrf.mxu1 }
 0x12f   : > { %1104 = vst.msk [vmem:[%s1699_s28 + $0x1c] sm:$0xf] %vm1096_vm0, %v1338_v21  ;;  %1130 = vst.msk [vmem:[%s1699_s28 + $0x84] sm:$0xf] %vm1096_vm0, %v1364_v22  ;;  %v854_v27 = vmax.f32 %v680_v23, 0.0  ;;  %v880_v28 = vmax.f32 %v784_v24, 0.0 }
 0x130   : > { %v682_v29 = vpop.f32.mrf.mxu0  ;;  %v786_v30 = vpop.f32.mrf.mxu1 }
 0x131   : > { %v1339_v31 = vpack.c.bf16 %v854_v27, %v854_v27  ;;  %v1365_v32 = vpack.c.bf16 %v880_v28, %v880_v28  ;;  %v683_v33 = vadd.f32 %v1691_v3, %v682_v29  ;;  %v787_v34 = vadd.f32 %v1691_v3, %v786_v30 }
 0x132   : > { %v684_v35 = vpop.f32.mrf.mxu0  ;;  %v788_v36 = vpop.f32.mrf.mxu1 }
 0x133   : > { %1105 = vst.msk [vmem:[%s1699_s28 + $0x20] sm:$0xf] %vm1096_vm0, %v1339_v31  ;;  %1131 = vst.msk [vmem:[%s1699_s28 + $0x88] sm:$0xf] %vm1096_vm0, %v1365_v32  ;;  %v855_v37 = vmax.f32 %v683_v33, 0.0  ;;  %v881_v38 = vmax.f32 %v787_v34, 0.0 }
 0x134   : > { %v687_v39 = vpop.f32.mrf.mxu0  ;;  %v791_v40 = vpop.f32.mrf.mxu1 }
 0x135   : > { %v1340_v41 = vpack.c.bf16 %v855_v37, %v855_v37  ;;  %v1366_v42 = vpack.c.bf16 %v881_v38, %v881_v38  ;;  %v688_v43 = vadd.f32 %v1691_v3, %v687_v39  ;;  %v792_v44 = vadd.f32 %v1691_v3, %v791_v40 }
 0x136   : > { %v689_v45 = vpop.f32.mrf.mxu0  ;;  %v793_v46 = vpop.f32.mrf.mxu1 }
 0x137   : > { %1106 = vst.msk [vmem:[%s1699_s28 + $0x24] sm:$0xf] %vm1096_vm0, %v1340_v41  ;;  %1132 = vst.msk [vmem:[%s1699_s28 + $0x8c] sm:$0xf] %vm1096_vm0, %v1366_v42  ;;  %v856_v47 = vmax.f32 %v688_v43, 0.0  ;;  %v882_v48 = vmax.f32 %v792_v44, 0.0 }
 0x138   : > { %v690_v49 = vpop.f32.mrf.mxu0  ;;  %v794_v50 = vpop.f32.mrf.mxu1 }
 0x139   : > { %v1341_v51 = vpack.c.bf16 %v856_v47, %v856_v47  ;;  %v1367_v52 = vpack.c.bf16 %v882_v48, %v882_v48  ;;  %v691_v53 = vadd.f32 %v1691_v3, %v690_v49  ;;  %v795_v54 = vadd.f32 %v1691_v3, %v794_v50 }
 0x13a   : > { %v692_v55 = vpop.f32.mrf.mxu0  ;;  %v796_v56 = vpop.f32.mrf.mxu1 }
 0x13b   : > { %1107 = vst.msk [vmem:[%s1699_s28 + $0x28] sm:$0xf] %vm1096_vm0, %v1341_v51  ;;  %1133 = vst.msk [vmem:[%s1699_s28 + $0x90] sm:$0xf] %vm1096_vm0, %v1367_v52  ;;  %v857_v57 = vmax.f32 %v691_v53, 0.0  ;;  %v883_v58 = vmax.f32 %v795_v54, 0.0 }
 0x13c   : > { %v695_v59 = vpop.f32.mrf.mxu0  ;;  %v799_v60 = vpop.f32.mrf.mxu1 }
 0x13d   : > { %v1342_v61 = vpack.c.bf16 %v857_v57, %v857_v57  ;;  %v1368_v62 = vpack.c.bf16 %v883_v58, %v883_v58  ;;  %v696_v63 = vadd.f32 %v1691_v3, %v695_v59  ;;  %v800_v0 = vadd.f32 %v1691_v3, %v799_v60 }
 0x13e   : > { %v697_v1 = vpop.f32.mrf.mxu0  ;;  %v801_v2 = vpop.f32.mrf.mxu1 }
 0x13f   : > { %1108 = vst.msk [vmem:[%s1699_s28 + $0x2c] sm:$0xf] %vm1096_vm0, %v1342_v61  ;;  %1134 = vst.msk [vmem:[%s1699_s28 + $0x94] sm:$0xf] %vm1096_vm0, %v1368_v62  ;;  %v858_v4 = vmax.f32 %v696_v63, 0.0  ;;  %v884_v5 = vmax.f32 %v800_v0, 0.0 }
 0x140   : > { %v698_v6 = vpop.f32.mrf.mxu0  ;;  %v802_v7 = vpop.f32.mrf.mxu1 }
 0x141   : > { %v1343_v8 = vpack.c.bf16 %v858_v4, %v858_v4  ;;  %v1369_v9 = vpack.c.bf16 %v884_v5, %v884_v5  ;;  %v699_v10 = vadd.f32 %v1691_v3, %v698_v6  ;;  %v803_v11 = vadd.f32 %v1691_v3, %v802_v7 }
 0x142   : > { %v700_v12 = vpop.f32.mrf.mxu0  ;;  %v804_v13 = vpop.f32.mrf.mxu1 }
 0x143   : > { %1109 = vst.msk [vmem:[%s1699_s28 + $0x30] sm:$0xf] %vm1096_vm0, %v1343_v8  ;;  %1135 = vst.msk [vmem:[%s1699_s28 + $0x98] sm:$0xf] %vm1096_vm0, %v1369_v9  ;;  %v859_v14 = vmax.f32 %v699_v10, 0.0  ;;  %v885_v15 = vmax.f32 %v803_v11, 0.0 }
 0x144   : > { %v703_v16 = vpop.f32.mrf.mxu0  ;;  %v807_v17 = vpop.f32.mrf.mxu1 }
 0x145   : > { %v1344_v18 = vpack.c.bf16 %v859_v14, %v859_v14  ;;  %v1370_v19 = vpack.c.bf16 %v885_v15, %v885_v15  ;;  %v704_v20 = vadd.f32 %v1691_v3, %v703_v16  ;;  %v808_v21 = vadd.f32 %v1691_v3, %v807_v17 }
 0x146   : > { %v705_v22 = vpop.f32.mrf.mxu0  ;;  %v809_v23 = vpop.f32.mrf.mxu1 }
 0x147   : > { %1110 = vst.msk [vmem:[%s1699_s28 + $0x34] sm:$0xf] %vm1096_vm0, %v1344_v18  ;;  %1136 = vst.msk [vmem:[%s1699_s28 + $0x9c] sm:$0xf] %vm1096_vm0, %v1370_v19  ;;  %v860_v24 = vmax.f32 %v704_v20, 0.0  ;;  %v886_v25 = vmax.f32 %v808_v21, 0.0 }
 0x148   : > { %v706_v26 = vpop.f32.mrf.mxu0  ;;  %v810_v27 = vpop.f32.mrf.mxu1 }
 0x149   : > { %v1345_v28 = vpack.c.bf16 %v860_v24, %v860_v24  ;;  %v1371_v29 = vpack.c.bf16 %v886_v25, %v886_v25  ;;  %v707_v30 = vadd.f32 %v1691_v3, %v706_v26  ;;  %v811_v31 = vadd.f32 %v1691_v3, %v810_v27 }
 0x14a   : > { %v708_v32 = vpop.f32.mrf.mxu0  ;;  %v812_v33 = vpop.f32.mrf.mxu1 }
 0x14b   : > { %1111 = vst.msk [vmem:[%s1699_s28 + $0x38] sm:$0xf] %vm1096_vm0, %v1345_v28  ;;  %1137 = vst.msk [vmem:[%s1699_s28 + $0xa0] sm:$0xf] %vm1096_vm0, %v1371_v29  ;;  %v861_v34 = vmax.f32 %v707_v30, 0.0  ;;  %v887_v35 = vmax.f32 %v811_v31, 0.0 }
 0x14c   : > { %v711_v36 = vpop.f32.mrf.mxu0  ;;  %v815_v37 = vpop.f32.mrf.mxu1 }
 0x14d   : > { %v1346_v38 = vpack.c.bf16 %v861_v34, %v861_v34  ;;  %v1372_v39 = vpack.c.bf16 %v887_v35, %v887_v35  ;;  %v712_v40 = vadd.f32 %v1691_v3, %v711_v36  ;;  %v816_v41 = vadd.f32 %v1691_v3, %v815_v37 }
 0x14e   : > { %v713_v42 = vpop.f32.mrf.mxu0  ;;  %v817_v43 = vpop.f32.mrf.mxu1 }
 0x14f   : > { %1112 = vst.msk [vmem:[%s1699_s28 + $0x3c] sm:$0xf] %vm1096_vm0, %v1346_v38  ;;  %1138 = vst.msk [vmem:[%s1699_s28 + $0xa4] sm:$0xf] %vm1096_vm0, %v1372_v39  ;;  %v862_v44 = vmax.f32 %v712_v40, 0.0  ;;  %v888_v45 = vmax.f32 %v816_v41, 0.0 }
 0x150   : > { %v714_v46 = vpop.f32.mrf.mxu0  ;;  %v818_v47 = vpop.f32.mrf.mxu1 }
 0x151   : > { %v1347_v48 = vpack.c.bf16 %v862_v44, %v862_v44  ;;  %v1373_v49 = vpack.c.bf16 %v888_v45, %v888_v45  ;;  %v715_v50 = vadd.f32 %v1691_v3, %v714_v46  ;;  %v819_v51 = vadd.f32 %v1691_v3, %v818_v47 }
 0x152   : > { %v716_v52 = vpop.f32.mrf.mxu0  ;;  %v820_v53 = vpop.f32.mrf.mxu1 }
 0x153   : > { %1113 = vst.msk [vmem:[%s1699_s28 + $0x40] sm:$0xf] %vm1096_vm0, %v1347_v48  ;;  %1139 = vst.msk [vmem:[%s1699_s28 + $0xa8] sm:$0xf] %vm1096_vm0, %v1373_v49  ;;  %v863_v54 = vmax.f32 %v715_v50, 0.0  ;;  %v889_v55 = vmax.f32 %v819_v51, 0.0 }
 0x154   : > { %v719_v56 = vpop.f32.mrf.mxu0  ;;  %v823_v57 = vpop.f32.mrf.mxu1 }
 0x155   : > { %v1348_v58 = vpack.c.bf16 %v863_v54, %v863_v54  ;;  %v1374_v59 = vpack.c.bf16 %v889_v55, %v889_v55  ;;  %v720_v60 = vadd.f32 %v1691_v3, %v719_v56  ;;  %v824_v61 = vadd.f32 %v1691_v3, %v823_v57 }
 0x156   : > { %v721_v62 = vpop.f32.mrf.mxu0  ;;  %v825_v63 = vpop.f32.mrf.mxu1 }
 0x157   : > { %1114 = vst.msk [vmem:[%s1699_s28 + $0x44] sm:$0xf] %vm1096_vm0, %v1348_v58  ;;  %1140 = vst.msk [vmem:[%s1699_s28 + $0xac] sm:$0xf] %vm1096_vm0, %v1374_v59  ;;  %v864_v0 = vmax.f32 %v720_v60, 0.0  ;;  %v890_v1 = vmax.f32 %v824_v61, 0.0 }
 0x158   : > { %v722_v2 = vpop.f32.mrf.mxu0  ;;  %v826_v4 = vpop.f32.mrf.mxu1 }
 0x159   : > { %v1349_v5 = vpack.c.bf16 %v864_v0, %v864_v0  ;;  %v1375_v6 = vpack.c.bf16 %v890_v1, %v890_v1  ;;  %v723_v7 = vadd.f32 %v1691_v3, %v722_v2  ;;  %v827_v8 = vadd.f32 %v1691_v3, %v826_v4 }
 0x15a   : > { %v724_v9 = vpop.f32.mrf.mxu0  ;;  %v828_v10 = vpop.f32.mrf.mxu1 }
 0x15b   : > { %1115 = vst.msk [vmem:[%s1699_s28 + $0x48] sm:$0xf] %vm1096_vm0, %v1349_v5  ;;  %1141 = vst.msk [vmem:[%s1699_s28 + $0xb0] sm:$0xf] %vm1096_vm0, %v1375_v6  ;;  %v865_v11 = vmax.f32 %v723_v7, 0.0  ;;  %v891_v12 = vmax.f32 %v827_v8, 0.0 }
 0x15c   : > { %v727_v13 = vpop.f32.mrf.mxu0  ;;  %v831_v14 = vpop.f32.mrf.mxu1 }
 0x15d   : > { %v1350_v15 = vpack.c.bf16 %v865_v11, %v865_v11  ;;  %v1376_v16 = vpack.c.bf16 %v891_v12, %v891_v12  ;;  %v728_v17 = vadd.f32 %v1691_v3, %v727_v13  ;;  %v832_v18 = vadd.f32 %v1691_v3, %v831_v14 }
 0x15e   : > { %v729_v19 = vpop.f32.mrf.mxu0  ;;  %v833_v20 = vpop.f32.mrf.mxu1 }
 0x15f   : > { %1116 = vst.msk [vmem:[%s1699_s28 + $0x4c] sm:$0xf] %vm1096_vm0, %v1350_v15  ;;  %1142 = vst.msk [vmem:[%s1699_s28 + $0xb4] sm:$0xf] %vm1096_vm0, %v1376_v16  ;;  %v866_v21 = vmax.f32 %v728_v17, 0.0  ;;  %v892_v22 = vmax.f32 %v832_v18, 0.0 }
 0x160   : > { %v730_v23 = vpop.f32.mrf.mxu0  ;;  %v834_v24 = vpop.f32.mrf.mxu1 }
 0x161   : > { %v1351_v25 = vpack.c.bf16 %v866_v21, %v866_v21  ;;  %v1377_v26 = vpack.c.bf16 %v892_v22, %v892_v22  ;;  %v731_v27 = vadd.f32 %v1691_v3, %v730_v23  ;;  %v835_v28 = vadd.f32 %v1691_v3, %v834_v24 }
 0x162   : > { %v732_v29 = vpop.f32.mrf.mxu0  ;;  %v836_v30 = vpop.f32.mrf.mxu1 }
 0x163   : > { %1117 = vst.msk [vmem:[%s1699_s28 + $0x50] sm:$0xf] %vm1096_vm0, %v1351_v25  ;;  %1143 = vst.msk [vmem:[%s1699_s28 + $0xb8] sm:$0xf] %vm1096_vm0, %v1377_v26  ;;  %v867_v31 = vmax.f32 %v731_v27, 0.0  ;;  %v893_v32 = vmax.f32 %v835_v28, 0.0 }
 0x164   : > { %v735_v33 = vpop.f32.mrf.mxu0  ;;  %v839_v34 = vpop.f32.mrf.mxu1 }
 0x165   : > { %v1352_v35 = vpack.c.bf16 %v867_v31, %v867_v31  ;;  %v1378_v36 = vpack.c.bf16 %v893_v32, %v893_v32  ;;  %v736_v37 = vadd.f32 %v1691_v3, %v735_v33  ;;  %v840_v38 = vadd.f32 %v1691_v3, %v839_v34 }
 0x166   : > { %v737_v39 = vpop.f32.mrf.mxu0  ;;  %v841_v40 = vpop.f32.mrf.mxu1 }
 0x167   : > { %1118 = vst.msk [vmem:[%s1699_s28 + $0x54] sm:$0xf] %vm1096_vm0, %v1352_v35  ;;  %1144 = vst.msk [vmem:[%s1699_s28 + $0xbc] sm:$0xf] %vm1096_vm0, %v1378_v36  ;;  %v868_v41 = vmax.f32 %v736_v37, 0.0  ;;  %v894_v42 = vmax.f32 %v840_v38, 0.0 }
 0x168   : > { %v738_v43 = vpop.f32.mrf.mxu0  ;;  %v842_v44 = vpop.f32.mrf.mxu1 }
 0x169   : > { %v1353_v45 = vpack.c.bf16 %v868_v41, %v868_v41  ;;  %v1379_v46 = vpack.c.bf16 %v894_v42, %v894_v42  ;;  %v739_v47 = vadd.f32 %v1691_v3, %v738_v43  ;;  %v843_v48 = vadd.f32 %v1691_v3, %v842_v44 }
 0x16a   : > { %v740_v49 = vpop.f32.mrf.mxu0  ;;  %v844_v50 = vpop.f32.mrf.mxu1 }
 0x16b   : > { %1119 = vst.msk [vmem:[%s1699_s28 + $0x58] sm:$0xf] %vm1096_vm0, %v1353_v45  ;;  %1145 = vst.msk [vmem:[%s1699_s28 + $0xc0] sm:$0xf] %vm1096_vm0, %v1379_v46  ;;  %v869_v51 = vmax.f32 %v739_v47, 0.0  ;;  %v895_v52 = vmax.f32 %v843_v48, 0.0 }
 0x16c   : > { %v743_v53 = vpop.f32.mrf.mxu0 }
 0x16d   : > { %v1354_v54 = vpack.c.bf16 %v869_v51, %v869_v51  ;;  %v1380_v55 = vpack.c.bf16 %v895_v52, %v895_v52  ;;  %v744_v56 = vadd.f32 %v1691_v3, %v743_v53 }
 0x16e   : > { %v745_v57 = vpop.f32.mrf.mxu0 }
 0x16f   : > { %1120 = vst.msk [vmem:[%s1699_s28 + $0x5c] sm:$0xf] %vm1096_vm0, %v1354_v54  ;;  %1146 = vst.msk [vmem:[%s1699_s28 + $0xc4] sm:$0xf] %vm1096_vm0, %v1380_v55  ;;  %v870_v58 = vmax.f32 %v744_v56, 0.0 }
 0x170   : > { %v746_v59 = vpop.f32.mrf.mxu0 }
 0x171   : > { %v1355_v60 = vpack.c.bf16 %v870_v58, %v870_v58  ;;  %v747_v61 = vadd.f32 %v1691_v3, %v746_v59 }
 0x172   : > { %v748_v62 = vpop.f32.mrf.mxu0 }
 0x173   : > { %1121 = vst.msk [vmem:[%s1699_s28 + $0x60] sm:$0xf] %vm1096_vm0, %v1355_v60  ;;  %v871_v63 = vmax.f32 %v747_v61, 0.0 }
 0x175   : > { %v1356_v0 = vpack.c.bf16 %v871_v63, %v871_v63 }
 0x177   : > { %1122 = vst.msk [vmem:[%s1699_s28 + $0x64] sm:$0xf] %vm1096_vm0, %v1356_v0 }
 0x178 PF: > { %s13_s12 = sadd.s32 1, %s1519_s12  }
 0x179   : > { %p10_p4 = scmp.ge.s32.totalorder %s13_s12, 4  }
 0x17b   :  { %12 = sbr.rel (!%p10_p4) target bundleno = 1 (0x1), region = 62 }

// kernel: conv_separate_forward.5
= control target key start
LH: loop header
LB: loop body
LE: loop exit
PB: predicated region body
PF: predicated region fallthrough
CT: control target
= control target key end

     0   :  { %s1903_s12 = smov 0   ;;  %s2281_s0 = inlined_call_operand.vmem [shape: bf16[176,1024], index: 0, kind: input, shape index: {}]   ;;  %s2282_s1 = inlined_call_operand.vmem [shape: bf16[1024,128], index: 1, kind: input, shape index: {}]   ;;  %s2283_s2 = inlined_call_operand.vmem [shape: f32[1,128], index: 2, kind: input, shape index: {}]   ;;  %s2284_s3 = inlined_call_operand.vmem [shape: bf16[176,128], index: 3, kind: output, shape index: {}]  }
   0x1 LB: > { %s1412_s13 = sadd.s32 4294967295, %s1881_s12   ;;  %p1416_p0 = scmp.ge.s32.totalorder %s1881_s12, 1  ;;  %s1881_s12 = sphi %s1903_s12, %s13_s12  }
   0x2   : > { %p139_p1 = scmp.lt.s32.totalorder %s1881_s12, 3 }
   0x4   : > { %p140_p2 = pnand %p1416_p0, %p139_p1 }
   0x5   : > { %s164_s19 = smul.u32 (!%p140_p2), 11, %s1412_s13 }
   0x6   : > { %143 = sbr.rel (%p140_p2) target bundleno = 339 (0x153), region = 32 }
   0x7   : > { %p165_p3 = scmp.lt.s32.totalorder (!%p140_p2), %s164_s19, 21 }
   0xb   : > { %v1803_v0 = vld [vmem:[%s2282_s1 + $0x78] sm:$0xff]   ;;  %v1807_v4 = vld [vmem:[%s2282_s1 + $0x70] sm:$0xff]   ;;  %v1811_v8 = vld [vmem:[%s2282_s1 + $0x68] sm:$0xff]   ;;  %s2286_s19 = smov (!%p165_p3, %s164_s19), 21 }
   0xc   : > { %v1804_v1 = vld [vmem:[%s2282_s1 + $0xf8] sm:$0xff]   ;;  %1587 = vmatprep.subr.bf16.mxu0 %v1803_v0  ;;  %v1808_v5 = vld [vmem:[%s2282_s1 + $0xf0] sm:$0xff]   ;;  %v1812_v9 = vld [vmem:[%s2282_s1 + $0xe8] sm:$0xff]   ;;  %s1546_s18 = sshll.u32 %s2286_s19, 5  ;;  %s1419_s25 = sshll.u32 %s2286_s19, 2 }
   0xd   : > { %v1805_v2 = vld [vmem:[%s2282_s1 + $0x38] sm:$0xff]   ;;  %1639 = vmatprep.subr.bf16.mxu1 %v1804_v1  ;;  %v1809_v6 = vld [vmem:[%s2282_s1 + $0x30] sm:$0xff]   ;;  %v1813_v10 = vld [vmem:[%s2282_s1 + $0x28] sm:$0xff]   ;;  %s2009_s13 = scalar_lea.vmem %s2281_s0, %s1546_s18  ;;  %s2239_s28 = scalar_lea.vmem %s2284_s3, %s1419_s25 }
   0xe   : > { %v1806_v3 = vld [vmem:[%s2282_s1 + $0xb8] sm:$0xff]   ;;  %1588 = vmatpush3.bf16.msra.mxu0 %v1805_v2  ;;  %v1810_v7 = vld [vmem:[%s2282_s1 + $0xb0] sm:$0xff]   ;;  %v1814_v11 = vld [vmem:[%s2282_s1 + $0xa8] sm:$0xff]  }
   0xf   : > { %1640 = vmatpush3.bf16.msra.mxu1 %v1806_v3  ;;  %1589 = vmatprep.subr.bf16.mxu0 %v1807_v4  ;;  %v1815_v12 = vld [vmem:[%s2282_s1 + $0x60] sm:$0xff]   ;;  %v1819_v16 = vld [vmem:[%s2282_s1 + $0x58] sm:$0xff]   ;;  %v1823_v20 = vld [vmem:[%s2282_s1 + $0x50] sm:$0xff]  }
  0x10   : > { %1641 = vmatprep.subr.bf16.mxu1 %v1808_v5  ;;  %v1816_v13 = vld [vmem:[%s2282_s1 + $0xe0] sm:$0xff]   ;;  %v1820_v17 = vld [vmem:[%s2282_s1 + $0xd8] sm:$0xff]   ;;  %v1824_v21 = vld [vmem:[%s2282_s1 + $0xd0] sm:$0xff]  }
  0x11   : > { %v1817_v14 = vld [vmem:[%s2282_s1 + $0x20] sm:$0xff]   ;;  %v1821_v18 = vld [vmem:[%s2282_s1 + $0x18] sm:$0xff]   ;;  %v1825_v22 = vld [vmem:[%s2282_s1 + $0x10] sm:$0xff]  }
  0x12   : > { %1590 = vmatpush3.bf16.msra.mxu0 %v1809_v6  ;;  %v1818_v15 = vld [vmem:[%s2282_s1 + $0xa0] sm:$0xff]   ;;  %v1822_v19 = vld [vmem:[%s2282_s1 + $0x98] sm:$0xff]   ;;  %v1826_v23 = vld [vmem:[%s2282_s1 + $0x90] sm:$0xff]  }
  0x13   : > { %1642 = vmatpush3.bf16.msra.mxu1 %v1810_v7  ;;  %1591 = vmatprep.subr.bf16.mxu0 %v1811_v8  ;;  %v1827_v24 = vld [vmem:[%s2282_s1 + $0x48] sm:$0xff]   ;;  %v1831_v28 = vld [vmem:[%s2282_s1 + $0x40] sm:$0xff]   ;;  %v1835_v40 = vld [vmem:[%s2282_s1 + $0x178] sm:$0xff]  }
  0x14   : > { %1643 = vmatprep.subr.bf16.mxu1 %v1812_v9  ;;  %v1828_v25 = vld [vmem:[%s2282_s1 + $0xc8] sm:$0xff]   ;;  %v1832_v29 = vld [vmem:[%s2282_s1 + $0xc0] sm:$0xff]   ;;  %v1836_v41 = vld [vmem:[%s2282_s1 + $0x138] sm:$0xff]  }
  0x15   : > { %v1829_v26 = vld [vmem:[%s2282_s1 + $0x8] sm:$0xff]   ;;  %v1833_v30 = vld [vmem:[%s2282_s1] sm:$0xff]   ;;  %v1837_v42 = vld [vmem:[%s2282_s1 + $0x1f8] sm:$0xff]  }
  0x16   : > { %1592 = vmatpush3.bf16.msra.mxu0 %v1813_v10  ;;  %v1830_v27 = vld [vmem:[%s2282_s1 + $0x88] sm:$0xff]   ;;  %v1834_v31 = vld [vmem:[%s2282_s1 + $0x80] sm:$0xff]   ;;  %v1838_v43 = vld [vmem:[%s2282_s1 + $0x1b8] sm:$0xff]  }
  0x17   : > { %1644 = vmatpush3.bf16.msra.mxu1 %v1814_v11  ;;  %1593 = vmatprep.subr.bf16.mxu0 %v1815_v12  ;;  %v178_v32 = vld [vmem:[%s2009_s13] sm:$0xff]  ;;  %v179_v34 = vld [vmem:[%s2009_s13 + $0x8] sm:$0xff]  ;;  %v1839_v44 = vld [vmem:[%s2282_s1 + $0x170] sm:$0xff]  }
  0x18   : > { %1645 = vmatprep.subr.bf16.mxu1 %v1816_v13  ;;  %v182_v33 = vld [vmem:[%s2009_s13 + $0x20] sm:$0xff]  ;;  %v183_v37 = vld [vmem:[%s2009_s13 + $0x28] sm:$0xff]  ;;  %v1840_v51 = vld [vmem:[%s2282_s1 + $0x130] sm:$0xff]  }
  0x19   : > { %v1421_v35 = vcombine.low %v178_v32, %v182_v33  ;;  %v1422_v36 = vcombine.high %v178_v32, %v182_v33  ;;  %v1423_v38 = vcombine.low %v179_v34, %v183_v37  ;;  %v1424_v39 = vcombine.high %v179_v34, %v183_v37  ;;  %v186_v45 = vld [vmem:[%s2009_s13 + $0x40] sm:$0xff]  ;;  %v187_v48 = vld [vmem:[%s2009_s13 + $0x48] sm:$0xff]  ;;  %v1841_v54 = vld [vmem:[%s2282_s1 + $0x1f0] sm:$0xff]  }
  0x1a   : > { %1594 = vmatpush3.bf16.msra.mxu0 %v1817_v14  ;;  %v190_v46 = vld [vmem:[%s2009_s13 + $0x60] sm:$0xff]  ;;  %v191_v49 = vld [vmem:[%s2009_s13 + $0x68] sm:$0xff]  ;;  %v1842_v55 = vld [vmem:[%s2282_s1 + $0x1b0] sm:$0xff]  }
  0x1b   : > { %1646 = vmatpush3.bf16.msra.mxu1 %v1818_v15  ;;  %1595 = vmatprep.subr.bf16.mxu0 %v1819_v16  ;;  %v1430_v47 = vcombine.high %v186_v45, %v190_v46  ;;  %v1432_v50 = vcombine.high %v187_v48, %v191_v49  ;;  %v1429_v52 = vcombine.low %v186_v45, %v190_v46  ;;  %v1843_v56 = vld [vmem:[%s2282_s1 + $0x168] sm:$0xff]   ;;  %v194_v59 = vld [vmem:[%s2009_s13 + $0x80] sm:$0xff]  ;;  %v1851_v14 = vld [vmem:[%s2282_s1 + $0x158] sm:$0xff]  }
  0x1c   : > { %1647 = vmatprep.subr.bf16.mxu1 %v1820_v17  ;;  %1001 = vmatprep.mubr.bf16.mxu0 %v1422_v36  ;;  %v1431_v53 = vcombine.low %v187_v48, %v191_v49  ;;  %v1844_v57 = vld [vmem:[%s2282_s1 + $0x128] sm:$0xff]   ;;  %v198_v60 = vld [vmem:[%s2009_s13 + $0xa0] sm:$0xff]  ;;  %v1852_v15 = vld [vmem:[%s2282_s1 + $0x118] sm:$0xff]  }
  0x1d   : > { %1081 = vmatprep.mubr.bf16.mxu1 %v1424_v39  ;;  %v1845_v58 = vld [vmem:[%s2282_s1 + $0x1e8] sm:$0xff]   ;;  %v1438_v63 = vcombine.high %v194_v59, %v198_v60  ;;  %v1437_v2 = vcombine.low %v194_v59, %v198_v60  ;;  %v1847_v3 = vld [vmem:[%s2282_s1 + $0x160] sm:$0xff]   ;;  %v1853_v17 = vld [vmem:[%s2282_s1 + $0x1d8] sm:$0xff]  }
  0x1e   : > { %1596 = vmatpush3.bf16.msra.mxu0 %v1821_v18  ;;  %v195_v61 = vld [vmem:[%s2009_s13 + $0x88] sm:$0xff]  ;;  %v1848_v5 = vld [vmem:[%s2282_s1 + $0x120] sm:$0xff]   ;;  %v184_v45 = vld [vmem:[%s2009_s13 + $0x30] sm:$0xff] }
  0x1f   : > { %1648 = vmatpush3.bf16.msra.mxu1 %v1822_v19  ;;  %1597 = vmatprep.subr.bf16.mxu0 %v1823_v20  ;;  %v199_v62 = vld [vmem:[%s2009_s13 + $0xa8] sm:$0xff]  ;;  %v1849_v6 = vld [vmem:[%s2282_s1 + $0x1e0] sm:$0xff]   ;;  %v1854_v19 = vld [vmem:[%s2282_s1 + $0x198] sm:$0xff]  }
  0x20   : > { %1649 = vmatprep.subr.bf16.mxu1 %v1824_v21  ;;  %v1440_v0 = vcombine.high %v195_v61, %v199_v62  ;;  %v1846_v1 = vld [vmem:[%s2282_s1 + $0x1a8] sm:$0xff]   ;;  %v1439_v4 = vcombine.low %v195_v61, %v199_v62  ;;  %v1850_v7 = vld [vmem:[%s2282_s1 + $0x1a0] sm:$0xff]   ;;  %v1855_v20 = vld [vmem:[%s2282_s1 + $0x150] sm:$0xff]  }
  0x21   : > { %v202_v8 = vld [vmem:[%s2009_s13 + $0xc0] sm:$0xff]  ;;  %v203_v10 = vld [vmem:[%s2009_s13 + $0xc8] sm:$0xff]  ;;  %v185_v48 = vld [vmem:[%s2009_s13 + $0x38] sm:$0xff] }
  0x22   : > { %1598 = vmatpush3.bf16.msra.mxu0 %v1825_v22  ;;  %v206_v9 = vld [vmem:[%s2009_s13 + $0xe0] sm:$0xff]  ;;  %v207_v12 = vld [vmem:[%s2009_s13 + $0xe8] sm:$0xff]  ;;  %v196_v60 = vld [vmem:[%s2009_s13 + $0x90] sm:$0xff] }
  0x23   : > { %1650 = vmatpush3.bf16.msra.mxu1 %v1826_v23  ;;  %1599 = vmatprep.subr.bf16.mxu0 %v1827_v24  ;;  %v1446_v11 = vcombine.high %v202_v8, %v206_v9  ;;  %v1448_v13 = vcombine.high %v203_v10, %v207_v12  ;;  %v1445_v16 = vcombine.low %v202_v8, %v206_v9  ;;  %v210_v21 = vld [vmem:[%s2009_s13 + $0x100] sm:$0xff]  ;;  %v211_v24 = vld [vmem:[%s2009_s13 + $0x108] sm:$0xff]  ;;  %v200_v61 = vld [vmem:[%s2009_s13 + $0xb0] sm:$0xff] }
  0x24   : > { %1651 = vmatprep.subr.bf16.mxu1 %v1828_v25  ;;  %v1447_v18 = vcombine.low %v203_v10, %v207_v12  ;;  %v214_v22 = vld [vmem:[%s2009_s13 + $0x120] sm:$0xff]  ;;  %v215_v25 = vld [vmem:[%s2009_s13 + $0x128] sm:$0xff]  ;;  %v197_v62 = vld [vmem:[%s2009_s13 + $0x98] sm:$0xff]  ;;  %v1441_v8 = vcombine.low %v196_v60, %v200_v61 }
  0x25   : > { %v1454_v23 = vcombine.high %v210_v21, %v214_v22  ;;  %v1860_v32 = vld [vmem:[%s2282_s1 + $0x108] sm:$0xff]   ;;  %v1455_v33 = vcombine.low %v211_v24, %v215_v25  ;;  %v212_v12 = vld [vmem:[%s2009_s13 + $0x110] sm:$0xff] }
  0x26   : > { %1600 = vmatpush3.bf16.msra.mxu0 %v1829_v26  ;;  %v1456_v26 = vcombine.high %v211_v24, %v215_v25  ;;  %v1861_v34 = vld [vmem:[%s2282_s1 + $0x1c8] sm:$0xff]  }
  0x27   : > { %1652 = vmatpush3.bf16.msra.mxu1 %v1830_v27  ;;  %1601 = vmatprep.subr.bf16.mxu0 %v1831_v28  ;;  %v1856_v27 = vld [vmem:[%s2282_s1 + $0x110] sm:$0xff]   ;;  %v219_v37 = vld [vmem:[%s2009_s13 + $0x148] sm:$0xff] }
  0x28   : > { %1653 = vmatprep.subr.bf16.mxu1 %v1832_v29  ;;  %v1857_v28 = vld [vmem:[%s2282_s1 + $0x1d0] sm:$0xff]   ;;  %v1864_v39 = vld [vmem:[%s2282_s1 + $0x188] sm:$0xff]   ;;  %v1463_v49 = vcombine.low %v219_v37, %v219_v37 }
  0x29   : > { %v1858_v29 = vld [vmem:[%s2282_s1 + $0x190] sm:$0xff]  }
  0x2a   : > { %1602 = vmatpush3.bf16.msra.mxu0 %v1833_v30  ;;  %v1859_v30 = vld [vmem:[%s2282_s1 + $0x148] sm:$0xff]  }
  0x2b   : > { %1654 = vmatpush3.bf16.msra.mxu1 %v1834_v31  ;;  %1691 = vmatprep.subr.bf16.mxu0 %v1835_v40  ;;  %v1453_v31 = vcombine.low %v210_v21, %v214_v22  ;;  %v1867_v40 = vld [vmem:[%s2282_s1 + $0x140] sm:$0xff]   ;;  %v221_v21 = vld [vmem:[%s2009_s13 + $0x158] sm:$0xff] }
  0x2c   : > { %1743 = vmatprep.subr.bf16.mxu1 %v1837_v42  ;;  %v1869_v42 = vld [vmem:[%s2282_s1 + $0x1c0] sm:$0xff]   ;;  %v1468_v25 = vcombine.high %v221_v21, %v221_v21 }
  0x2d   : > { %1002 = vmatmul.mubr.bf16.vlgmr.msra.gmra.mxu0 %v1421_v35  ;;  %v218_v35 = vld [vmem:[%s2009_s13 + $0x140] sm:$0xff] }
  0x2e   : > { %1082 = vmatmul.mubr.bf16.vlgmr.msra.gmra.mxu1 %v1423_v38  ;;  %1692 = vmatpush3.bf16.msra.mxu0 %v1836_v41  ;;  %v1462_v36 = vcombine.high %v218_v35, %v218_v35  ;;  %v1464_v38 = vcombine.high %v219_v37, %v219_v37  ;;  %v1868_v41 = vld [vmem:[%s2282_s1 + $0x100] sm:$0xff]   ;;  %v1461_v46 = vcombine.low %v218_v35, %v218_v35 }
  0x2f   : > { %1744 = vmatpush3.bf16.msra.mxu1 %v1838_v43  ;;  %1693 = vmatprep.subr.bf16.mxu0 %v1839_v44  ;;  %v1870_v43 = vld [vmem:[%s2282_s1 + $0x180] sm:$0xff]   ;;  %v180_v44 = vld [vmem:[%s2009_s13 + $0x10] sm:$0xff] }
  0x30   : > { %1009 = vmatprep.mubr.bf16.mxu0 %v1430_v47  ;;  %1089 = vmatprep.mubr.bf16.mxu1 %v1432_v50  ;;  %v181_v47 = vld [vmem:[%s2009_s13 + $0x18] sm:$0xff]  ;;  %v1426_v50 = vcombine.high %v180_v44, %v184_v45 }
  0x31   : > { %1745 = vmatprep.subr.bf16.mxu1 %v1841_v54  ;;  %v189_v54 = vld [vmem:[%s2009_s13 + $0x58] sm:$0xff] }
  0x32   : > { %1694 = vmatpush3.bf16.msra.mxu0 %v1840_v51  ;;  %v1428_v51 = vcombine.high %v181_v47, %v185_v48 }
  0x33   : > { %1746 = vmatpush3.bf16.msra.mxu1 %v1842_v55  ;;  %1695 = vmatprep.subr.bf16.mxu0 %v1843_v56  ;;  %v193_v55 = vld [vmem:[%s2009_s13 + $0x78] sm:$0xff]  ;;  %v1425_v56 = vcombine.low %v180_v44, %v184_v45 }
  0x34   : > { %1747 = vmatprep.subr.bf16.mxu1 %v1845_v58  ;;  %v1436_v59 = vcombine.high %v189_v54, %v193_v55 }
  0x35   : > { %1010 = vmatmul.mubr.bf16.gmra.mxu0 %v1429_v52  ;;  %v188_v52 = vld [vmem:[%s2009_s13 + $0x50] sm:$0xff] }
  0x36   : > { %1090 = vmatmul.mubr.bf16.gmra.mxu1 %v1431_v53  ;;  %1696 = vmatpush3.bf16.msra.mxu0 %v1844_v57  ;;  %v192_v53 = vld [vmem:[%s2009_s13 + $0x70] sm:$0xff]  ;;  %v1427_v57 = vcombine.low %v181_v47, %v185_v48 }
  0x37   : > { %1017 = vmatprep.mubr.bf16.mxu0 %v1438_v63  ;;  %1097 = vmatprep.mubr.bf16.mxu1 %v1440_v0  ;;  %v1434_v58 = vcombine.high %v188_v52, %v192_v53  ;;  %v201_v63 = vld [vmem:[%s2009_s13 + $0xb8] sm:$0xff]  ;;  %v1433_v0 = vcombine.low %v188_v52, %v192_v53 }
  0x38   : > { %1748 = vmatpush3.bf16.msra.mxu1 %v1846_v1  ;;  %1697 = vmatprep.subr.bf16.mxu0 %v1847_v3  ;;  %v1435_v1 = vcombine.low %v189_v54, %v193_v55  ;;  %v1444_v3 = vcombine.high %v197_v62, %v201_v63  ;;  %v1443_v9 = vcombine.low %v197_v62, %v201_v63 }
  0x39   : > { %1749 = vmatprep.subr.bf16.mxu1 %v1849_v6  ;;  %v205_v6 = vld [vmem:[%s2009_s13 + $0xd8] sm:$0xff] }
  0x3a   : > { %1698 = vmatpush3.bf16.msra.mxu0 %v1848_v5  ;;  %v208_v5 = vld [vmem:[%s2009_s13 + $0xf0] sm:$0xff] }
  0x3b   : > { %1699 = vmatprep.subr.bf16.mxu0 %v1851_v14  ;;  %v213_v14 = vld [vmem:[%s2009_s13 + $0x118] sm:$0xff] }
  0x3c   : > { %1750 = vmatpush3.bf16.msra.mxu1 %v1850_v7  ;;  %v209_v7 = vld [vmem:[%s2009_s13 + $0xf8] sm:$0xff] }
  0x3d   : > { %1018 = vmatmul.mubr.bf16.gmra.mxu0 %v1437_v2  ;;  %1751 = vmatprep.subr.bf16.mxu1 %v1853_v17  ;;  %v1442_v2 = vcombine.high %v196_v60, %v200_v61  ;;  %v1451_v17 = vcombine.low %v205_v6, %v209_v7 }
  0x3e   : > { %1098 = vmatmul.mubr.bf16.gmra.mxu1 %v1439_v4  ;;  %1025 = vmatprep.mubr.bf16.mxu0 %v1446_v11  ;;  %v204_v4 = vld [vmem:[%s2009_s13 + $0xd0] sm:$0xff]  ;;  %v1452_v11 = vcombine.high %v205_v6, %v209_v7 }
  0x3f   : > { %1105 = vmatprep.mubr.bf16.mxu1 %v1448_v13  ;;  %1700 = vmatpush3.bf16.msra.mxu0 %v1852_v15  ;;  %v1450_v10 = vcombine.high %v204_v4, %v208_v5  ;;  %v216_v13 = vld [vmem:[%s2009_s13 + $0x130] sm:$0xff]  ;;  %v217_v15 = vld [vmem:[%s2009_s13 + $0x138] sm:$0xff] }
  0x40   : > { %1752 = vmatpush3.bf16.msra.mxu1 %v1854_v19  ;;  %1701 = vmatprep.subr.bf16.mxu0 %v1855_v20  ;;  %v1460_v19 = vcombine.high %v213_v14, %v217_v15  ;;  %v220_v20 = vld [vmem:[%s2009_s13 + $0x150] sm:$0xff]  ;;  %v1457_v22 = vcombine.low %v212_v12, %v216_v13 }
  0x41   : > { %1753 = vmatprep.subr.bf16.mxu1 %v1857_v28  ;;  %v1466_v24 = vcombine.high %v220_v20, %v220_v20 }
  0x43   : > { %1702 = vmatpush3.bf16.msra.mxu0 %v1856_v27  ;;  %v1467_v27 = vcombine.low %v221_v21, %v221_v21 }
  0x44   : > { %1754 = vmatpush3.bf16.msra.mxu1 %v1858_v29  ;;  %1703 = vmatprep.subr.bf16.mxu0 %v1859_v30 }
  0x45   : > { %1026 = vmatmul.mubr.bf16.gmra.mxu0 %v1445_v16  ;;  %1755 = vmatprep.subr.bf16.mxu1 %v1861_v34  ;;  %v1449_v16 = vcombine.low %v204_v4, %v208_v5 }
  0x46   : > { %1106 = vmatmul.mubr.bf16.gmra.mxu1 %v1447_v18  ;;  %1033 = vmatprep.mubr.bf16.mxu0 %v1454_v23  ;;  %v1458_v18 = vcombine.high %v212_v12, %v216_v13  ;;  %v1459_v23 = vcombine.low %v213_v14, %v217_v15 }
  0x47   : > { %1113 = vmatprep.mubr.bf16.mxu1 %v1456_v26  ;;  %1704 = vmatpush3.bf16.msra.mxu0 %v1860_v32  ;;  %v1465_v26 = vcombine.low %v220_v20, %v220_v20 }
  0x48   : > { %1756 = vmatpush3.bf16.msra.mxu1 %v1864_v39  ;;  %1705 = vmatprep.subr.bf16.mxu0 %v1867_v40 }
  0x49   : > { %1757 = vmatprep.subr.bf16.mxu1 %v1869_v42 }
  0x4b   : > { %1706 = vmatpush3.bf16.msra.mxu0 %v1868_v41 }
  0x4c   : > { %1758 = vmatpush3.bf16.msra.mxu1 %v1870_v43 }
  0x4d   : > { %1034 = vmatmul.mubr.bf16.gmra.mxu0 %v1453_v31 }
  0x4e   : > { %1114 = vmatmul.mubr.bf16.gmra.mxu1 %v1455_v33  ;;  %1041 = vmatprep.mubr.bf16.mxu0 %v1462_v36 }
  0x4f   : > { %1121 = vmatprep.mubr.bf16.mxu1 %v1464_v38 }
  0x55   : > { %1042 = vmatmul.mubr.bf16.gmra.mxu0 %v1461_v46 }
  0x56   : > { %1122 = vmatmul.mubr.bf16.gmra.mxu1 %v1463_v49  ;;  %1161 = vmatprep.mubr.bf16.mxu0 %v1426_v50 }
  0x57   : > { %1241 = vmatprep.mubr.bf16.mxu1 %v1428_v51 }
  0x5d   : > { %1162 = vmatmul.mubr.bf16.vlgmr.msra.gmra.mxu0 %v1425_v56 }
  0x5e   : > { %1242 = vmatmul.mubr.bf16.vlgmr.msra.gmra.mxu1 %v1427_v57  ;;  %1169 = vmatprep.mubr.bf16.mxu0 %v1434_v58 }
  0x5f   : > { %1249 = vmatprep.mubr.bf16.mxu1 %v1436_v59 }
  0x65   : > { %1170 = vmatmul.mubr.bf16.gmra.mxu0 %v1433_v0 }
  0x66   : > { %1250 = vmatmul.mubr.bf16.gmra.mxu1 %v1435_v1  ;;  %1177 = vmatprep.mubr.bf16.mxu0 %v1442_v2 }
  0x67   : > { %1257 = vmatprep.mubr.bf16.mxu1 %v1444_v3 }
  0x6d   : > { %1178 = vmatmul.mubr.bf16.gmra.mxu0 %v1441_v8 }
  0x6e   : > { %1258 = vmatmul.mubr.bf16.gmra.mxu1 %v1443_v9  ;;  %1185 = vmatprep.mubr.bf16.mxu0 %v1450_v10  ;;  %v2222_v9 = vld [vmem:[%s2283_s2] ss:$0 sm:$0xff] }
  0x6f   : > { %1265 = vmatprep.mubr.bf16.mxu1 %v1452_v11 }
  0x75   : > { %1186 = vmatmul.mubr.bf16.gmra.mxu0 %v1449_v16 }
  0x76   : > { %1266 = vmatmul.mubr.bf16.gmra.mxu1 %v1451_v17  ;;  %1193 = vmatprep.mubr.bf16.mxu0 %v1458_v18 }
  0x77   : > { %1273 = vmatprep.mubr.bf16.mxu1 %v1460_v19 }
  0x7d   : > { %1194 = vmatmul.mubr.bf16.gmra.mxu0 %v1457_v22 }
  0x7e   : > { %1274 = vmatmul.mubr.bf16.gmra.mxu1 %v1459_v23  ;;  %1201 = vmatprep.mubr.bf16.mxu0 %v1466_v24 }
  0x7f   : > { %1281 = vmatprep.mubr.bf16.mxu1 %v1468_v25 }
  0x85   : > { %1202 = vmatmul.mubr.bf16.gmra.mxu0 %v1465_v26 }
  0x86   : > { %1282 = vmatmul.mubr.bf16.gmra.mxu1 %v1467_v27 }
  0xed   : > { %v1603_v28 = vpop.f32.mrf.mxu0 }
  0xee   : > { %v1655_v29 = vpop.f32.mrf.mxu1 }
  0xef   : > { %v1604_v30 = vpop.f32.mrf.mxu0 }
  0xf0   : > { %v1656_v31 = vpop.f32.mrf.mxu1  ;;  %v1605_v7 = vadd.f32 %v1604_v30, %v1603_v28 }
  0xf1   : > { %v1606_v32 = vpop.f32.mrf.mxu0  ;;  %v1657_v17 = vadd.f32 %v1656_v31, %v1655_v29 }
  0xf2   : > { %v1658_v33 = vpop.f32.mrf.mxu1  ;;  %v1004_v13 = vadd.f32 %v1605_v7, %v2222_v9 }
  0xf3   : > { %v1607_v34 = vpop.f32.mrf.mxu0 }
  0xf4   : > { %v1659_v35 = vpop.f32.mrf.mxu1  ;;  %v1608_v14 = vadd.f32 %v1607_v34, %v1606_v32  ;;  %v1084_v20 = vadd.f32 %v1657_v17, %v1004_v13 }
  0xf5   : > { %v1609_v36 = vpop.f32.mrf.mxu0  ;;  %v1660_v26 = vadd.f32 %v1659_v35, %v1658_v33 }
  0xf6   : > { %v2157_v37 = vpop.f32.mrf.mxu1  ;;  %v1007_v21 = vadd.f32 %v1608_v14, %v2222_v9 }
  0xf7   : > { %v1610_v38 = vpop.f32.mrf.mxu0 }
  0xf8   : > { %v1662_v39 = vpop.f32.mrf.mxu1  ;;  %v1611_v22 = vadd.f32 %v1610_v38, %v1609_v36  ;;  %v1087_v7 = vadd.f32 %v1660_v26, %v1007_v21 }
  0xf9   : > { %v1612_v40 = vpop.f32.mrf.mxu0 }
  0xfa   : > { %v2159_v41 = vpop.f32.mrf.mxu1  ;;  %v1012_v32 = vadd.f32 %v1611_v22, %v2222_v9 }
  0xfb   : > { %v1613_v42 = vpop.f32.mrf.mxu0 }
  0xfc   : > { %v2161_v43 = vpop.f32.mrf.mxu1  ;;  %v1614_v30 = vadd.f32 %v1613_v42, %v1612_v40 }
  0xfd   : > { %v2163_v44 = vpop.f32.mrf.mxu0 }
  0xfe   : > { %v2165_v45 = vpop.f32.mrf.mxu1  ;;  %v1015_v33 = vadd.f32 %v1614_v30, %v2222_v9 }
  0xff   : > { %v2167_v46 = vpop.f32.mrf.mxu0 }
 0x100   : > { %v2169_v47 = vpop.f32.mrf.mxu1  ;;  %v1617_v40 = vadd.f32 %v2167_v46, %v2163_v44 }
 0x101   : > { %v2171_v48 = vpop.f32.mrf.mxu0 }
 0x102   : > { %v2173_v49 = vpop.f32.mrf.mxu1  ;;  %v1020_v46 = vadd.f32 %v1617_v40, %v2222_v9 }
 0x103   : > { %v2175_v50 = vpop.f32.mrf.mxu0 }
 0x104   : > { %v2177_v51 = vpop.f32.mrf.mxu1 }
 0x105   : > { %v2179_v52 = vpop.f32.mrf.mxu0 }
 0x106   : > { %v2181_v53 = vpop.f32.mrf.mxu1 }
 0x107   : > { %v2183_v54 = vpop.f32.mrf.mxu0 }
 0x108   : > { %v2185_v55 = vpop.f32.mrf.mxu1 }
 0x109   : > { %v2187_v56 = vpop.f32.mrf.mxu0 }
 0x10a   : > { %v2189_v57 = vpop.f32.mrf.mxu1 }
 0x10b   : > { %v2191_v58 = vpop.f32.mrf.mxu0 }
 0x10c   : > { %v2193_v59 = vpop.f32.mrf.mxu1 }
 0x10d   : > { %v2195_v60 = vpop.f32.mrf.mxu0 }
 0x10e   : > { %v2197_v61 = vpop.f32.mrf.mxu1 }
 0x10f   : > { %v2199_v62 = vpop.f32.mrf.mxu0 }
 0x110   : > { %v2201_v63 = vpop.f32.mrf.mxu1 }
 0x111   : > { %v2203_v0 = vpop.f32.mrf.mxu0 }
 0x112   : > { %v2205_v1 = vpop.f32.mrf.mxu1 }
 0x113   : > { %v2207_v2 = vpop.f32.mrf.mxu0 }
 0x114   : > { %v2209_v3 = vpop.f32.mrf.mxu1 }
 0x115   : > { %v2211_v4 = vpop.f32.mrf.mxu0 }
 0x116   : > { %v2213_v5 = vpop.f32.mrf.mxu1 }
 0x117   : > { %v2215_v6 = vpop.f32.mrf.mxu0 }
 0x118   : > { %v2217_v8 = vpop.f32.mrf.mxu1 }
 0x119   : > { %v1636_v10 = vpop.f32.mrf.mxu0 }
 0x11a   : > { %v1688_v11 = vpop.f32.mrf.mxu1 }
 0x11b   : > { %v1637_v12 = vpop.f32.mrf.mxu0 }
 0x11c   : > { %v1689_v15 = vpop.f32.mrf.mxu1  ;;  %v1663_v12 = vadd.f32 %v1662_v39, %v2157_v37 }
 0x11d   : > { %v1707_v16 = vpop.f32.mrf.mxu0 }
 0x11e   : > { %v1759_v18 = vpop.f32.mrf.mxu1  ;;  %v1092_v15 = vadd.f32 %v1663_v12, %v1012_v32  ;;  %v1672_v12 = vadd.f32 %v2177_v51, %v2173_v49  ;;  %v1675_v49 = vadd.f32 %v2185_v55, %v2181_v53 }
 0x11f   : > { %v1708_v19 = vpop.f32.mrf.mxu0 }
 0x120   : > { %v1709_v23 = vadd.f32 %v1708_v19, %v1707_v16  ;;  %v1760_v24 = vpop.f32.mrf.mxu1 }
 0x121   : > { %v1710_v25 = vpop.f32.mrf.mxu0  ;;  %v1761_v34 = vadd.f32 %v1760_v24, %v1759_v18  ;;  %v1666_v18 = vadd.f32 %v2161_v43, %v2159_v41 }
 0x122   : > { %v1164_v27 = vadd.f32 %v1709_v23, %v1084_v20  ;;  %v1762_v28 = vpop.f32.mrf.mxu1  ;;  %v1620_v23 = vadd.f32 %v2175_v50, %v2171_v48 }
 0x123   : > { %v1711_v10 = vpop.f32.mrf.mxu0  ;;  %v1095_v22 = vadd.f32 %v1666_v18, %v1015_v33  ;;  %v1626_v33 = vadd.f32 %v2191_v58, %v2187_v56  ;;  %v1629_v58 = vadd.f32 %v2199_v62, %v2195_v60 }
 0x124   : > { %v1712_v29 = vadd.f32 %v1711_v10, %v1710_v25  ;;  %v1763_v31 = vpop.f32.mrf.mxu1  ;;  %v1244_v13 = vadd.f32 %v1761_v34, %v1164_v27  ;;  %v1669_v27 = vadd.f32 %v2169_v47, %v2165_v45  ;;  %v1023_v10 = vadd.f32 %v1620_v23, %v2222_v9 }
 0x125   : > { %v1713_v11 = vpop.f32.mrf.mxu0  ;;  %v1764_v38 = vadd.f32 %v1763_v31, %v1762_v28  ;;  %v1623_v34 = vadd.f32 %v2183_v54, %v2179_v52  ;;  %v1678_v23 = vadd.f32 %v2193_v59, %v2189_v57  ;;  %v1681_v57 = vadd.f32 %v2201_v63, %v2197_v61 }
 0x126   : > { %v1167_v36 = vadd.f32 %v1712_v29, %v1087_v7  ;;  %v1765_v14 = vpop.f32.mrf.mxu1  ;;  %v1289_v37 = vmax.f32 %v1244_v13, 0.0  ;;  %v1100_v32 = vadd.f32 %v1669_v27, %v1020_v46 }
 0x127   : > { %v1714_v35 = vpop.f32.mrf.mxu0 }
 0x128   : > { %v1247_v42 = vadd.f32 %v1764_v38, %v1167_v36  ;;  %v1715_v16 = vadd.f32 %v1714_v35, %v1713_v11  ;;  %v1766_v17 = vpop.f32.mrf.mxu1 }
 0x129   : > { %v1716_v19 = vpop.f32.mrf.mxu0  ;;  %v1767_v41 = vadd.f32 %v1766_v17, %v1765_v14  ;;  %v1103_v14 = vadd.f32 %v1672_v12, %v1023_v10 }
 0x12a   : > { %v1290_v39 = vmax.f32 %v1247_v42, 0.0  ;;  %v1172_v20 = vadd.f32 %v1715_v16, %v1092_v15  ;;  %v1768_v21 = vpop.f32.mrf.mxu1  ;;  %v1028_v15 = vadd.f32 %v1623_v34, %v2222_v9 }
 0x12b   : > { %v1717_v44 = vpop.f32.mrf.mxu0 }
 0x12c   : > { %v1561_v24 = vpack.c.bf16 %v1290_v39, %v1289_v37  ;;  %v1718_v43 = vadd.f32 %v1717_v44, %v1716_v19  ;;  %v1769_v25 = vpop.f32.mrf.mxu1  ;;  %v1252_v28 = vadd.f32 %v1767_v41, %v1172_v20  ;;  %v1031_v37 = vadd.f32 %v1626_v33, %v2222_v9 }
 0x12d   : > { %v1719_v26 = vpop.f32.mrf.mxu0  ;;  %v1770_v50 = vadd.f32 %v1769_v25, %v1768_v21  ;;  %v1108_v56 = vadd.f32 %v1675_v49, %v1028_v15  ;;  %v1687_v15 = vadd.f32 %v2217_v8, %v2213_v5 }
 0x12e   : > { %1562 = vst [vmem:[%s2239_s28] sm:$0xff] %v1561_v24   ;;  %v1175_v48 = vadd.f32 %v1718_v43, %v1095_v22  ;;  %v1771_v30 = vpop.f32.mrf.mxu1  ;;  %v1291_v47 = vmax.f32 %v1252_v28, 0.0  ;;  %v1111_v41 = vadd.f32 %v1678_v23, %v1031_v37  ;;  %v1632_v43 = vadd.f32 %v2207_v2, %v2203_v0 }
 0x12f   : > { %v1720_v7 = vpop.f32.mrf.mxu0  ;;  %v1635_v2 = vadd.f32 %v2215_v6, %v2211_v4 }
 0x130   : > { %v1255_v29 = vadd.f32 %v1770_v50, %v1175_v48  ;;  %v1721_v31 = vadd.f32 %v1720_v7, %v1719_v26  ;;  %v1772_v11 = vpop.f32.mrf.mxu1  ;;  %v1036_v26 = vadd.f32 %v1629_v58, %v2222_v9  ;;  %v1039_v7 = vadd.f32 %v1632_v43, %v2222_v9 }
 0x131   : > { %v1722_v45 = vpop.f32.mrf.mxu0  ;;  %v1773_v54 = vadd.f32 %v1772_v11, %v1771_v30  ;;  %v1684_v11 = vadd.f32 %v2209_v3, %v2205_v1 }
 0x132   : > { %v1292_v13 = vmax.f32 %v1255_v29, 0.0  ;;  %v1180_v36 = vadd.f32 %v1721_v31, %v1100_v32  ;;  %v1774_v38 = vpop.f32.mrf.mxu1  ;;  %v1116_v0 = vadd.f32 %v1681_v57, %v1036_v26 }
 0x133   : > { %v1723_v35 = vpop.f32.mrf.mxu0 }
 0x134   : > { %v1566_v52 = vpack.c.bf16 %v1292_v13, %v1291_v47  ;;  %v1724_v40 = vadd.f32 %v1723_v35, %v1722_v45  ;;  %v1775_v42 = vpop.f32.mrf.mxu1  ;;  %v1260_v51 = vadd.f32 %v1773_v54, %v1180_v36  ;;  %v1119_v13 = vadd.f32 %v1684_v11, %v1039_v7 }
 0x135   : > { %v1725_v16 = vpop.f32.mrf.mxu0  ;;  %v1776_v18 = vadd.f32 %v1775_v42, %v1774_v38  ;;  %v1044_v38 = vadd.f32 %v1635_v2, %v2222_v9 }
 0x136   : > { %1583 = vst [vmem:[%s2239_s28 + $0x8] sm:$0xff] %v1566_v52   ;;  %v1183_v17 = vadd.f32 %v1724_v40, %v1103_v14  ;;  %v1777_v19 = vpop.f32.mrf.mxu1  ;;  %v1293_v55 = vmax.f32 %v1260_v51, 0.0 }
 0x137   : > { %v1726_v39 = vpop.f32.mrf.mxu0  ;;  %v1124_v42 = vadd.f32 %v1687_v15, %v1044_v38 }
 0x138   : > { %v1263_v20 = vadd.f32 %v1776_v18, %v1183_v17  ;;  %v1727_v21 = vadd.f32 %v1726_v39, %v1725_v16  ;;  %v1778_v22 = vpop.f32.mrf.mxu1 }
 0x139   : > { %v1728_v53 = vpop.f32.mrf.mxu0  ;;  %v1779_v62 = vadd.f32 %v1778_v22, %v1777_v19 }
 0x13a   : > { %v1294_v44 = vmax.f32 %v1263_v20, 0.0  ;;  %v1188_v46 = vadd.f32 %v1727_v21, %v1108_v56  ;;  %v1780_v24 = vpop.f32.mrf.mxu1 }
 0x13b   : > { %v1729_v25 = vpop.f32.mrf.mxu0 }
 0x13c   : > { %v1571_v60 = vpack.c.bf16 %v1294_v44, %v1293_v55  ;;  %v1730_v27 = vadd.f32 %v1729_v25, %v1728_v53  ;;  %v1781_v28 = vpop.f32.mrf.mxu1  ;;  %v1268_v59 = vadd.f32 %v1779_v62, %v1188_v46 }
 0x13d   : > { %v1731_v48 = vpop.f32.mrf.mxu0  ;;  %v1782_v30 = vadd.f32 %v1781_v28, %v1780_v24 }
 0x13e   : > { %1584 = vst [vmem:[%s2239_s28 + $0x10] sm:$0xff] %v1571_v60   ;;  %v1191_v50 = vadd.f32 %v1730_v27, %v1111_v41  ;;  %v1783_v10 = vpop.f32.mrf.mxu1  ;;  %v1295_v63 = vmax.f32 %v1268_v59, 0.0 }
 0x13f   : > { %v1732_v32 = vpop.f32.mrf.mxu0 }
 0x140   : > { %v1271_v34 = vadd.f32 %v1782_v30, %v1191_v50  ;;  %v1733_v29 = vadd.f32 %v1732_v32, %v1731_v48  ;;  %v1784_v31 = vpop.f32.mrf.mxu1 }
 0x141   : > { %v1734_v61 = vpop.f32.mrf.mxu0  ;;  %v1785_v33 = vadd.f32 %v1784_v31, %v1783_v10 }
 0x142   : > { %v1296_v12 = vmax.f32 %v1271_v34, 0.0  ;;  %v1196_v45 = vadd.f32 %v1733_v29, %v1116_v0  ;;  %v1786_v47 = vpop.f32.mrf.mxu1 }
 0x143   : > { %v1735_v36 = vpop.f32.mrf.mxu0 }
 0x144   : > { %v1576_v14 = vpack.c.bf16 %v1296_v12, %v1295_v63  ;;  %v1736_v35 = vadd.f32 %v1735_v36, %v1734_v61  ;;  %v1787_v4 = vpop.f32.mrf.mxu1  ;;  %v1276_v52 = vadd.f32 %v1785_v33, %v1196_v45 }
 0x145   : > { %v1737_v6 = vpop.f32.mrf.mxu0  ;;  %v1788_v3 = vadd.f32 %v1787_v4, %v1786_v47 }
 0x146   : > { %1585 = vst [vmem:[%s2239_s28 + $0x18] sm:$0xff] %v1576_v14   ;;  %v1199_v1 = vadd.f32 %v1736_v35, %v1119_v13  ;;  %v1789_v54 = vpop.f32.mrf.mxu1  ;;  %v1297_v17 = vmax.f32 %v1276_v52, 0.0 }
 0x147   : > { %v1738_v40 = vpop.f32.mrf.mxu0 }
 0x148   : > { %v1279_v16 = vadd.f32 %v1788_v3, %v1199_v1  ;;  %v1739_v49 = vadd.f32 %v1738_v40, %v1737_v6  ;;  %v1790_v9 = vpop.f32.mrf.mxu1 }
 0x149   : > { %v1740_v51 = vpop.f32.mrf.mxu0  ;;  %v1791_v37 = vadd.f32 %v1790_v9, %v1789_v54 }
 0x14a   : > { %v1298_v18 = vmax.f32 %v1279_v16, 0.0  ;;  %v1204_v19 = vadd.f32 %v1739_v49, %v1124_v42  ;;  %v1792_v39 = vpop.f32.mrf.mxu1 }
 0x14b   : > { %v1741_v56 = vpop.f32.mrf.mxu0 }
 0x14c   : > { %v1581_v5 = vpack.c.bf16 %v1298_v18, %v1297_v17  ;;  %v1284_v8 = vadd.f32 %v1791_v37, %v1204_v19  ;;  %v1793_v58 = vpop.f32.mrf.mxu1 }
 0x14e   : > { %1586 = vst [vmem:[%s2239_s28 + $0x20] sm:$0xff] %v1581_v5   ;;  %v1299_v20 = vmax.f32 %v1284_v8, 0.0 }
 0x150   : > { %v1557_v21 = vpack.c.bf16 %v1299_v20, %v1299_v20 }
 0x152   : > { %1355 = vst [vmem:[%s2239_s28 + $0x28] sm:$0xf] %v1557_v21 }
 0x153 PF: > { %s13_s12 = sadd.s32 1, %s1881_s12  }
 0x154   : > { %p10_p4 = scmp.ge.s32.totalorder %s13_s12, 4  }
 0x156   :  { %12 = sbr.rel (!%p10_p4) target bundleno = 1 (0x1), region = 62 }

// kernel: conv_separate_forward.6
= control target key start
LH: loop header
LB: loop body
LE: loop exit
PB: predicated region body
PF: predicated region fallthrough
CT: control target
= control target key end

     0   :  { %s1903_s12 = smov 0   ;;  %s2236_s0 = inlined_call_operand.vmem [shape: bf16[112,1152], index: 0, kind: input, shape index: {}]   ;;  %s2237_s1 = inlined_call_operand.vmem [shape: bf16[1152,128], index: 1, kind: input, shape index: {}]   ;;  %s2238_s2 = inlined_call_operand.vmem [shape: f32[1,128], index: 2, kind: input, shape index: {}]   ;;  %s2239_s3 = inlined_call_operand.vmem [shape: bf16[112,128], index: 3, kind: output, shape index: {}]  }
   0x1 LB: > { %s1385_s13 = sadd.s32 4294967295, %s1881_s12   ;;  %p1389_p0 = scmp.ge.s32.totalorder %s1881_s12, 1  ;;  %s1881_s12 = sphi %s1903_s12, %s13_s12  }
   0x2   : > { %p139_p1 = scmp.lt.s32.totalorder %s1881_s12, 3 }
   0x4   : > { %p140_p2 = pnand %p1389_p0, %p139_p1 }
   0x6   : > { %143 = sbr.rel (%p140_p2) target bundleno = 317 (0x13d), region = 32 }
   0xb   : > { %v1755_v0 = vld [vmem:[%s2237_s1 + $0x78] sm:$0xff]   ;;  %v1759_v4 = vld [vmem:[%s2237_s1 + $0x70] sm:$0xff]   ;;  %v1763_v8 = vld [vmem:[%s2237_s1 + $0x68] sm:$0xff]   ;;  %s164_s17 = smul.u32 7, %s1385_s13 }
   0xc   : > { %v1756_v1 = vld [vmem:[%s2237_s1 + $0xf8] sm:$0xff]   ;;  %1534 = vmatprep.subr.bf16.mxu0 %v1755_v0  ;;  %v1760_v5 = vld [vmem:[%s2237_s1 + $0xf0] sm:$0xff]   ;;  %v1764_v9 = vld [vmem:[%s2237_s1 + $0xe8] sm:$0xff]  }
   0xd   : > { %v1757_v2 = vld [vmem:[%s2237_s1 + $0x38] sm:$0xff]   ;;  %1574 = vmatprep.subr.bf16.mxu1 %v1756_v1  ;;  %v1761_v6 = vld [vmem:[%s2237_s1 + $0x30] sm:$0xff]   ;;  %v1765_v10 = vld [vmem:[%s2237_s1 + $0x28] sm:$0xff]   ;;  %p165_p3 = scmp.lt.s32.totalorder %s164_s17, 13 }
   0xe   : > { %v1758_v3 = vld [vmem:[%s2237_s1 + $0xb8] sm:$0xff]   ;;  %1535 = vmatpush3.bf16.msra.mxu0 %v1757_v2  ;;  %v1762_v7 = vld [vmem:[%s2237_s1 + $0xb0] sm:$0xff]   ;;  %v1766_v11 = vld [vmem:[%s2237_s1 + $0xa8] sm:$0xff]  }
   0xf   : > { %1575 = vmatpush3.bf16.msra.mxu1 %v1758_v3  ;;  %1536 = vmatprep.subr.bf16.mxu0 %v1759_v4  ;;  %v1767_v12 = vld [vmem:[%s2237_s1 + $0x60] sm:$0xff]   ;;  %v1771_v16 = vld [vmem:[%s2237_s1 + $0x58] sm:$0xff]   ;;  %v1775_v20 = vld [vmem:[%s2237_s1 + $0x50] sm:$0xff]   ;;  %s2245_s17 = smov (!%p165_p3, %s164_s17), 13 }
  0x10   : > { %1576 = vmatprep.subr.bf16.mxu1 %v1760_v5  ;;  %v1768_v13 = vld [vmem:[%s2237_s1 + $0xe0] sm:$0xff]   ;;  %v1772_v17 = vld [vmem:[%s2237_s1 + $0xd8] sm:$0xff]   ;;  %v1776_v21 = vld [vmem:[%s2237_s1 + $0xd0] sm:$0xff]   ;;  %s1746_s16 = smul.u32 36, %s2245_s17 }
  0x11   : > { %v1769_v14 = vld [vmem:[%s2237_s1 + $0x20] sm:$0xff]   ;;  %v1773_v18 = vld [vmem:[%s2237_s1 + $0x18] sm:$0xff]   ;;  %v1777_v22 = vld [vmem:[%s2237_s1 + $0x10] sm:$0xff]  }
  0x12   : > { %1537 = vmatpush3.bf16.msra.mxu0 %v1761_v6  ;;  %v1770_v15 = vld [vmem:[%s2237_s1 + $0xa0] sm:$0xff]   ;;  %v1774_v19 = vld [vmem:[%s2237_s1 + $0x98] sm:$0xff]   ;;  %v1778_v23 = vld [vmem:[%s2237_s1 + $0x90] sm:$0xff]   ;;  %s2009_s27 = scalar_lea.vmem %s2236_s0, %s1746_s16  ;;  %s1391_s16 = sshll.u32 %s2245_s17, 2 }
  0x13   : > { %1577 = vmatpush3.bf16.msra.mxu1 %v1762_v7  ;;  %1538 = vmatprep.subr.bf16.mxu0 %v1763_v8  ;;  %v1779_v24 = vld [vmem:[%s2237_s1 + $0x48] sm:$0xff]   ;;  %v1783_v28 = vld [vmem:[%s2237_s1 + $0x40] sm:$0xff]   ;;  %v1793_v36 = vld [vmem:[%s2237_s1 + $0x178] sm:$0xff]   ;;  %s175_s20 = scalar_lea.vmem %s2239_s3, %s1391_s16 }
  0x14   : > { %1578 = vmatprep.subr.bf16.mxu1 %v1764_v9  ;;  %v1780_v25 = vld [vmem:[%s2237_s1 + $0xc8] sm:$0xff]   ;;  %v1784_v29 = vld [vmem:[%s2237_s1 + $0xc0] sm:$0xff]   ;;  %v1794_v37 = vld [vmem:[%s2237_s1 + $0x1f8] sm:$0xff]  }
  0x15   : > { %v1781_v26 = vld [vmem:[%s2237_s1 + $0x8] sm:$0xff]   ;;  %v1785_v30 = vld [vmem:[%s2237_s1] sm:$0xff]   ;;  %v1795_v38 = vld [vmem:[%s2237_s1 + $0x138] sm:$0xff]  }
  0x16   : > { %1539 = vmatpush3.bf16.msra.mxu0 %v1765_v10  ;;  %v1782_v27 = vld [vmem:[%s2237_s1 + $0x88] sm:$0xff]   ;;  %v1786_v31 = vld [vmem:[%s2237_s1 + $0x80] sm:$0xff]   ;;  %v1796_v39 = vld [vmem:[%s2237_s1 + $0x1b8] sm:$0xff]  }
  0x17   : > { %1579 = vmatpush3.bf16.msra.mxu1 %v1766_v11  ;;  %1540 = vmatprep.subr.bf16.mxu0 %v1767_v12  ;;  %v1787_v32 = vld [vmem:[%s2009_s27] ss:$36 sps:$4 sm:$0xff]   ;;  %v1790_v34 = vld [vmem:[%s2009_s27 + $0x8] ss:$36 sps:$4 sm:$0xff]   ;;  %v1797_v40 = vld [vmem:[%s2237_s1 + $0x170] sm:$0xff]  }
  0x18   : > { %1580 = vmatprep.subr.bf16.mxu1 %v1768_v13  ;;  %v1789_v33 = vld [vmem:[%s2009_s27 + $0x4] ss:$36 sps:$4 sm:$0xff]   ;;  %v1792_v35 = vld [vmem:[%s2009_s27 + $0xc] ss:$36 sps:$4 sm:$0xff]   ;;  %v1803_v45 = vld [vmem:[%s2009_s27 + $0x54] ss:$36 sps:$4 sm:$0xff]  }
  0x19   : > { %998 = vmatprep.mubr.bf16.mxu0 %v1789_v33  ;;  %1062 = vmatprep.mubr.bf16.mxu1 %v1792_v35  ;;  %v1798_v41 = vld [vmem:[%s2237_s1 + $0x1f0] sm:$0xff]   ;;  %v1805_v46 = vld [vmem:[%s2009_s27 + $0x48] ss:$36 sps:$4 sm:$0xff]   ;;  %v1811_v52 = vld [vmem:[%s2237_s1 + $0x160] sm:$0xff]  }
  0x1a   : > { %1541 = vmatpush3.bf16.msra.mxu0 %v1769_v14  ;;  %v1799_v42 = vld [vmem:[%s2237_s1 + $0x130] sm:$0xff]   ;;  %v1807_v48 = vld [vmem:[%s2237_s1 + $0x168] sm:$0xff]   ;;  %v1812_v53 = vld [vmem:[%s2237_s1 + $0x1e0] sm:$0xff]  }
  0x1b   : > { %1581 = vmatpush3.bf16.msra.mxu1 %v1770_v15  ;;  %1542 = vmatprep.subr.bf16.mxu0 %v1771_v16  ;;  %v1800_v43 = vld [vmem:[%s2237_s1 + $0x1b0] sm:$0xff]   ;;  %v1808_v49 = vld [vmem:[%s2237_s1 + $0x1e8] sm:$0xff]   ;;  %v1813_v54 = vld [vmem:[%s2237_s1 + $0x120] sm:$0xff]  }
  0x1c   : > { %1582 = vmatprep.subr.bf16.mxu1 %v1772_v17  ;;  %v1801_v44 = vld [vmem:[%s2009_s27 + $0x4c] ss:$36 sps:$4 sm:$0xff]   ;;  %v1814_v55 = vld [vmem:[%s2237_s1 + $0x1a0] sm:$0xff]   ;;  %v1815_v56 = vld [vmem:[%s2009_s27 + $0x94] ss:$36 sps:$4 sm:$0xff]  }
  0x1d   : > { %v1806_v47 = vld [vmem:[%s2009_s27 + $0x50] ss:$36 sps:$4 sm:$0xff]   ;;  %v1809_v50 = vld [vmem:[%s2237_s1 + $0x128] sm:$0xff]   ;;  %v1817_v57 = vld [vmem:[%s2009_s27 + $0x9c] ss:$36 sps:$4 sm:$0xff]  }
  0x1e   : > { %1543 = vmatpush3.bf16.msra.mxu0 %v1773_v18  ;;  %v1810_v51 = vld [vmem:[%s2237_s1 + $0x1a8] sm:$0xff]   ;;  %v1819_v58 = vld [vmem:[%s2009_s27 + $0x90] ss:$36 sps:$4 sm:$0xff]   ;;  %v1820_v59 = vld [vmem:[%s2009_s27 + $0x98] ss:$36 sps:$4 sm:$0xff]  }
  0x1f   : > { %1583 = vmatpush3.bf16.msra.mxu1 %v1774_v19  ;;  %1544 = vmatprep.subr.bf16.mxu0 %v1775_v20  ;;  %v1821_v60 = vld [vmem:[%s2237_s1 + $0x158] sm:$0xff]   ;;  %v1825_v0 = vld [vmem:[%s2237_s1 + $0x150] sm:$0xff]   ;;  %v209_v5 = vld [vmem:[%s2009_s27 + $0xe0] sm:$0xff] }
  0x20   : > { %1584 = vmatprep.subr.bf16.mxu1 %v1776_v21  ;;  %v1822_v61 = vld [vmem:[%s2237_s1 + $0x1d8] sm:$0xff]   ;;  %v1826_v1 = vld [vmem:[%s2237_s1 + $0x1d0] sm:$0xff]   ;;  %v1423_v7 = vcombine.high %v209_v5, %v209_v5  ;;  %v1422_v9 = vcombine.low %v209_v5, %v209_v5  ;;  %v1833_v10 = vld [vmem:[%s2237_s1 + $0x148] sm:$0xff]  }
  0x21   : > { %v1823_v62 = vld [vmem:[%s2237_s1 + $0x118] sm:$0xff]   ;;  %v1827_v2 = vld [vmem:[%s2237_s1 + $0x110] sm:$0xff]   ;;  %v1834_v11 = vld [vmem:[%s2237_s1 + $0x1c8] sm:$0xff]  }
  0x22   : > { %1545 = vmatpush3.bf16.msra.mxu0 %v1777_v22  ;;  %v1824_v63 = vld [vmem:[%s2237_s1 + $0x198] sm:$0xff]   ;;  %v1828_v3 = vld [vmem:[%s2237_s1 + $0x190] sm:$0xff]   ;;  %v1835_v12 = vld [vmem:[%s2237_s1 + $0x108] sm:$0xff]  }
  0x23   : > { %1585 = vmatpush3.bf16.msra.mxu1 %v1778_v23  ;;  %1546 = vmatprep.subr.bf16.mxu0 %v1779_v24  ;;  %v208_v4 = vld [vmem:[%s2009_s27 + $0xd8] sm:$0xff]  ;;  %v1836_v13 = vld [vmem:[%s2237_s1 + $0x188] sm:$0xff]   ;;  %v1837_v14 = vld [vmem:[%s2237_s1 + $0x140] sm:$0xff]  }
  0x24   : > { %1586 = vmatprep.subr.bf16.mxu1 %v1780_v25  ;;  %v1421_v6 = vcombine.high %v208_v4, %v208_v4  ;;  %v1420_v8 = vcombine.low %v208_v4, %v208_v4  ;;  %v1838_v15 = vld [vmem:[%s2237_s1 + $0x1c0] sm:$0xff]   ;;  %v1841_v18 = vld [vmem:[%s2009_s27 + $0x10] ss:$36 sps:$4 sm:$0xff]   ;;  %v1844_v20 = vld [vmem:[%s2009_s27 + $0x18] ss:$36 sps:$4 sm:$0xff]  }
  0x25   : > { %v1839_v16 = vld [vmem:[%s2237_s1 + $0x100] sm:$0xff]   ;;  %v1843_v19 = vld [vmem:[%s2009_s27 + $0x14] ss:$36 sps:$4 sm:$0xff]   ;;  %v210_v33 = vld [vmem:[%s2009_s27 + $0xe8] sm:$0xff] }
  0x26   : > { %1547 = vmatpush3.bf16.msra.mxu0 %v1781_v26  ;;  %v1840_v17 = vld [vmem:[%s2237_s1 + $0x180] sm:$0xff]   ;;  %v1847_v22 = vld [vmem:[%s2237_s1 + $0x238] sm:$0xff]   ;;  %v1848_v23 = vld [vmem:[%s2237_s1 + $0x230] sm:$0xff]  }
  0x27   : > { %1587 = vmatpush3.bf16.msra.mxu1 %v1782_v27  ;;  %1548 = vmatprep.subr.bf16.mxu0 %v1783_v28  ;;  %v1846_v21 = vld [vmem:[%s2009_s27 + $0x1c] ss:$36 sps:$4 sm:$0xff]   ;;  %v1851_v25 = vld [vmem:[%s2009_s27 + $0x64] ss:$36 sps:$4 sm:$0xff]  }
  0x28   : > { %1588 = vmatprep.subr.bf16.mxu1 %v1784_v29  ;;  %v1849_v24 = vld [vmem:[%s2009_s27 + $0x5c] ss:$36 sps:$4 sm:$0xff]   ;;  %v1855_v27 = vld [vmem:[%s2237_s1 + $0x228] sm:$0xff]  }
  0x29   : > { %v1853_v26 = vld [vmem:[%s2009_s27 + $0x58] ss:$36 sps:$4 sm:$0xff]   ;;  %v1854_v28 = vld [vmem:[%s2009_s27 + $0x60] ss:$36 sps:$4 sm:$0xff]  }
  0x2a   : > { %1549 = vmatpush3.bf16.msra.mxu0 %v1785_v30  ;;  %v1857_v29 = vld [vmem:[%s2009_s27 + $0xa4] ss:$36 sps:$4 sm:$0xff]   ;;  %v1859_v30 = vld [vmem:[%s2009_s27 + $0xac] ss:$36 sps:$4 sm:$0xff]  }
  0x2b   : > { %1589 = vmatpush3.bf16.msra.mxu1 %v1786_v31  ;;  %1614 = vmatprep.subr.bf16.mxu0 %v1793_v36  ;;  %v1856_v31 = vld [vmem:[%s2237_s1 + $0x220] sm:$0xff]   ;;  %v1862_v36 = vld [vmem:[%s2009_s27 + $0xa8] ss:$36 sps:$4 sm:$0xff]  }
  0x2c   : > { %1654 = vmatprep.subr.bf16.mxu1 %v1794_v37  ;;  %v1861_v35 = vld [vmem:[%s2009_s27 + $0xa0] ss:$36 sps:$4 sm:$0xff]   ;;  %v1425_v37 = vcombine.high %v210_v33, %v210_v33 }
  0x2d   : > { %999 = vmatmul.mubr.bf16.vlgmr.msra.gmra.mxu0 %v1787_v32  ;;  %v1863_v32 = vld [vmem:[%s2237_s1 + $0x218] sm:$0xff]  }
  0x2e   : > { %1063 = vmatmul.mubr.bf16.vlgmr.msra.gmra.mxu1 %v1790_v34  ;;  %1615 = vmatpush3.bf16.msra.mxu0 %v1795_v38  ;;  %v211_v34 = vld [vmem:[%s2009_s27 + $0xf0] sm:$0xff] }
  0x2f   : > { %1655 = vmatpush3.bf16.msra.mxu1 %v1796_v39  ;;  %1616 = vmatprep.subr.bf16.mxu0 %v1797_v40  ;;  %v1427_v38 = vcombine.high %v211_v34, %v211_v34  ;;  %v1864_v39 = vld [vmem:[%s2237_s1 + $0x210] sm:$0xff]   ;;  %v1869_v40 = vld [vmem:[%s2237_s1 + $0x208] sm:$0xff]  }
  0x30   : > { %1656 = vmatprep.subr.bf16.mxu1 %v1798_v41  ;;  %1006 = vmatprep.mubr.bf16.mxu0 %v1801_v44  ;;  %v1424_v41 = vcombine.low %v210_v33, %v210_v33  ;;  %v1872_v44 = vld [vmem:[%s2009_s27 + $0xb0] ss:$36 sps:$4 sm:$0xff]  }
  0x31   : > { %1070 = vmatprep.mubr.bf16.mxu1 %v1803_v45  ;;  %v1870_v45 = vld [vmem:[%s2237_s1 + $0x200] sm:$0xff]  }
  0x32   : > { %1617 = vmatpush3.bf16.msra.mxu0 %v1799_v42  ;;  %v1426_v42 = vcombine.low %v211_v34, %v211_v34 }
  0x33   : > { %1657 = vmatpush3.bf16.msra.mxu1 %v1800_v43  ;;  %1618 = vmatprep.subr.bf16.mxu0 %v1807_v48  ;;  %v1871_v43 = vld [vmem:[%s2009_s27 + $0x20] ss:$36 sps:$4 sm:$0xff]  }
  0x34   : > { %1658 = vmatprep.subr.bf16.mxu1 %v1808_v49 }
  0x35   : > { %1007 = vmatmul.mubr.bf16.gmra.mxu0 %v1805_v46  ;;  %v1873_v46 = vld [vmem:[%s2009_s27 + $0x68] ss:$36 sps:$4 sm:$0xff]  }
  0x36   : > { %1071 = vmatmul.mubr.bf16.gmra.mxu1 %v1806_v47  ;;  %1619 = vmatpush3.bf16.msra.mxu0 %v1809_v50  ;;  %v1874_v47 = vld [vmem:[%s2009_s27 + $0xf8] ss:$0 sps:$4 sm:$0xff]  }
  0x37   : > { %1659 = vmatpush3.bf16.msra.mxu1 %v1810_v51  ;;  %1620 = vmatprep.subr.bf16.mxu0 %v1811_v52 }
  0x38   : > { %1660 = vmatprep.subr.bf16.mxu1 %v1812_v53  ;;  %1014 = vmatprep.mubr.bf16.mxu0 %v1815_v56 }
  0x39   : > { %1078 = vmatprep.mubr.bf16.mxu1 %v1817_v57 }
  0x3a   : > { %1621 = vmatpush3.bf16.msra.mxu0 %v1813_v54 }
  0x3b   : > { %1661 = vmatpush3.bf16.msra.mxu1 %v1814_v55  ;;  %1622 = vmatprep.subr.bf16.mxu0 %v1821_v60 }
  0x3c   : > { %1662 = vmatprep.subr.bf16.mxu1 %v1822_v61 }
  0x3d   : > { %1015 = vmatmul.mubr.bf16.gmra.mxu0 %v1819_v58 }
  0x3e   : > { %1079 = vmatmul.mubr.bf16.gmra.mxu1 %v1820_v59  ;;  %1623 = vmatpush3.bf16.msra.mxu0 %v1823_v62 }
  0x3f   : > { %1663 = vmatpush3.bf16.msra.mxu1 %v1824_v63  ;;  %1624 = vmatprep.subr.bf16.mxu0 %v1825_v0 }
  0x40   : > { %1664 = vmatprep.subr.bf16.mxu1 %v1826_v1  ;;  %1022 = vmatprep.mubr.bf16.mxu0 %v1421_v6 }
  0x41   : > { %1086 = vmatprep.mubr.bf16.mxu1 %v1423_v7 }
  0x42   : > { %1625 = vmatpush3.bf16.msra.mxu0 %v1827_v2 }
  0x43   : > { %1665 = vmatpush3.bf16.msra.mxu1 %v1828_v3  ;;  %1626 = vmatprep.subr.bf16.mxu0 %v1833_v10 }
  0x44   : > { %1666 = vmatprep.subr.bf16.mxu1 %v1834_v11 }
  0x45   : > { %1023 = vmatmul.mubr.bf16.gmra.mxu0 %v1420_v8 }
  0x46   : > { %1087 = vmatmul.mubr.bf16.gmra.mxu1 %v1422_v9  ;;  %1627 = vmatpush3.bf16.msra.mxu0 %v1835_v12 }
  0x47   : > { %1667 = vmatpush3.bf16.msra.mxu1 %v1836_v13  ;;  %1628 = vmatprep.subr.bf16.mxu0 %v1837_v14 }
  0x48   : > { %1668 = vmatprep.subr.bf16.mxu1 %v1838_v15  ;;  %1126 = vmatprep.mubr.bf16.mxu0 %v1843_v19 }
  0x49   : > { %1190 = vmatprep.mubr.bf16.mxu1 %v1846_v21 }
  0x4a   : > { %1629 = vmatpush3.bf16.msra.mxu0 %v1839_v16 }
  0x4b   : > { %1669 = vmatpush3.bf16.msra.mxu1 %v1840_v17  ;;  %1706 = vmatprep.subr.bf16.mxu0 %v1847_v22 }
  0x4c   : > { %1730 = vmatprep.subr.bf16.mxu1 %v1847_v22 }
  0x4d   : > { %1127 = vmatmul.mubr.bf16.vlgmr.msra.gmra.mxu0 %v1841_v18 }
  0x4e   : > { %1191 = vmatmul.mubr.bf16.vlgmr.msra.gmra.mxu1 %v1844_v20  ;;  %1707 = vmatpush3.bf16.msra.mxu0 %v1847_v22 }
  0x4f   : > { %1738 = vmatpush3.bf16.msra.mxu1 %v1847_v22  ;;  %1708 = vmatprep.subr.bf16.mxu0 %v1848_v23 }
  0x50   : > { %1731 = vmatprep.subr.bf16.mxu1 %v1848_v23  ;;  %1134 = vmatprep.mubr.bf16.mxu0 %v1849_v24 }
  0x51   : > { %1198 = vmatprep.mubr.bf16.mxu1 %v1851_v25 }
  0x52   : > { %1709 = vmatpush3.bf16.msra.mxu0 %v1848_v23 }
  0x53   : > { %1739 = vmatpush3.bf16.msra.mxu1 %v1848_v23  ;;  %1710 = vmatprep.subr.bf16.mxu0 %v1855_v27 }
  0x54   : > { %1732 = vmatprep.subr.bf16.mxu1 %v1855_v27 }
  0x55   : > { %1135 = vmatmul.mubr.bf16.gmra.mxu0 %v1853_v26 }
  0x56   : > { %1199 = vmatmul.mubr.bf16.gmra.mxu1 %v1854_v28  ;;  %1142 = vmatprep.mubr.bf16.mxu0 %v1857_v29 }
  0x57   : > { %1711 = vmatpush3.bf16.msra.mxu0 %v1855_v27  ;;  %1206 = vmatprep.mubr.bf16.mxu1 %v1859_v30 }
  0x58   : > { %1740 = vmatpush3.bf16.msra.mxu1 %v1855_v27  ;;  %1712 = vmatprep.subr.bf16.mxu0 %v1856_v31 }
  0x59   : > { %1733 = vmatprep.subr.bf16.mxu1 %v1856_v31 }
  0x5b   : > { %1713 = vmatpush3.bf16.msra.mxu0 %v1856_v31 }
  0x5c   : > { %1741 = vmatpush3.bf16.msra.mxu1 %v1856_v31  ;;  %1714 = vmatprep.subr.bf16.mxu0 %v1863_v32 }
  0x5d   : > { %1143 = vmatmul.mubr.bf16.gmra.mxu0 %v1861_v35  ;;  %1734 = vmatprep.subr.bf16.mxu1 %v1863_v32 }
  0x5e   : > { %1207 = vmatmul.mubr.bf16.gmra.mxu1 %v1862_v36  ;;  %1150 = vmatprep.mubr.bf16.mxu0 %v1425_v37  ;;  %v1392_v36 = vld [vmem:[%s2238_s2] ss:$0 sm:$0xff] }
  0x5f   : > { %1715 = vmatpush3.bf16.msra.mxu0 %v1863_v32  ;;  %1214 = vmatprep.mubr.bf16.mxu1 %v1427_v38 }
  0x60   : > { %1742 = vmatpush3.bf16.msra.mxu1 %v1863_v32  ;;  %1716 = vmatprep.subr.bf16.mxu0 %v1864_v39 }
  0x61   : > { %1735 = vmatprep.subr.bf16.mxu1 %v1864_v39 }
  0x63   : > { %1717 = vmatpush3.bf16.msra.mxu0 %v1864_v39 }
  0x64   : > { %1743 = vmatpush3.bf16.msra.mxu1 %v1864_v39  ;;  %1718 = vmatprep.subr.bf16.mxu0 %v1869_v40 }
  0x65   : > { %1151 = vmatmul.mubr.bf16.gmra.mxu0 %v1424_v41  ;;  %1736 = vmatprep.subr.bf16.mxu1 %v1869_v40 }
  0x66   : > { %1215 = vmatmul.mubr.bf16.gmra.mxu1 %v1426_v42  ;;  %1722 = vmatprep.mubr.bf16.mxu0 %v1871_v43 }
  0x67   : > { %1719 = vmatpush3.bf16.msra.mxu0 %v1869_v40  ;;  %1726 = vmatprep.mubr.bf16.mxu1 %v1872_v44 }
  0x68   : > { %1744 = vmatpush3.bf16.msra.mxu1 %v1869_v40  ;;  %1720 = vmatprep.subr.bf16.mxu0 %v1870_v45 }
  0x69   : > { %1737 = vmatprep.subr.bf16.mxu1 %v1870_v45 }
  0x6b   : > { %1721 = vmatpush3.bf16.msra.mxu0 %v1870_v45 }
  0x6c   : > { %1745 = vmatpush3.bf16.msra.mxu1 %v1870_v45 }
  0x6e   : > { %1723 = vmatmul.mubr.bf16.vlgmr.msra.gmra.mxu0 %v1873_v46 }
  0x6f   : > { %1727 = vmatmul.mubr.bf16.vlgmr.msra.gmra.mxu1 %v1874_v47 }
  0xed   : > { %v1550_v48 = vpop.f32.mrf.mxu0 }
  0xee   : > { %v2169_v49 = vpop.f32.mrf.mxu1 }
  0xef   : > { %v1551_v50 = vpop.f32.mrf.mxu0 }
  0xf0   : > { %v2171_v51 = vpop.f32.mrf.mxu1  ;;  %v1552_v34 = vadd.f32 %v1551_v50, %v1550_v48 }
  0xf1   : > { %v1553_v52 = vpop.f32.mrf.mxu0  ;;  %v1592_v48 = vadd.f32 %v2171_v51, %v2169_v49 }
  0xf2   : > { %v2173_v53 = vpop.f32.mrf.mxu1  ;;  %v1001_v42 = vadd.f32 %v1552_v34, %v1392_v36 }
  0xf3   : > { %v1554_v54 = vpop.f32.mrf.mxu0 }
  0xf4   : > { %v2175_v55 = vpop.f32.mrf.mxu1  ;;  %v1555_v43 = vadd.f32 %v1554_v54, %v1553_v52 }
  0xf5   : > { %v1556_v56 = vpop.f32.mrf.mxu0 }
  0xf6   : > { %v1596_v57 = vpop.f32.mrf.mxu1 }
  0xf7   : > { %v1557_v58 = vpop.f32.mrf.mxu0 }
  0xf8   : > { %v1597_v59 = vpop.f32.mrf.mxu1  ;;  %v1558_v37 = vadd.f32 %v1557_v58, %v1556_v56 }
  0xf9   : > { %v1559_v60 = vpop.f32.mrf.mxu0 }
  0xfa   : > { %v2177_v61 = vpop.f32.mrf.mxu1  ;;  %v1009_v46 = vadd.f32 %v1558_v37, %v1392_v36 }
  0xfb   : > { %v1560_v62 = vpop.f32.mrf.mxu0 }
  0xfc   : > { %v2179_v63 = vpop.f32.mrf.mxu1  ;;  %v1561_v44 = vadd.f32 %v1560_v62, %v1559_v60 }
  0xfd   : > { %v1562_v0 = vpop.f32.mrf.mxu0 }
  0xfe   : > { %v2181_v1 = vpop.f32.mrf.mxu1 }
  0xff   : > { %v1563_v2 = vpop.f32.mrf.mxu0 }
 0x100   : > { %v2183_v3 = vpop.f32.mrf.mxu1  ;;  %v1564_v47 = vadd.f32 %v1563_v2, %v1562_v0  ;;  %v1601_v2 = vadd.f32 %v2179_v63, %v2177_v61 }
 0x101   : > { %v1565_v4 = vpop.f32.mrf.mxu0  ;;  %v1604_v49 = vadd.f32 %v2183_v3, %v2181_v1 }
 0x102   : > { %v2185_v5 = vpop.f32.mrf.mxu1  ;;  %v1017_v54 = vadd.f32 %v1564_v47, %v1392_v36 }
 0x103   : > { %v1566_v6 = vpop.f32.mrf.mxu0 }
 0x104   : > { %v2187_v7 = vpop.f32.mrf.mxu1 }
 0x105   : > { %v1568_v8 = vpop.f32.mrf.mxu0  ;;  %v1607_v61 = vadd.f32 %v2187_v7, %v2185_v5 }
 0x106   : > { %v1608_v9 = vpop.f32.mrf.mxu1 }
 0x107   : > { %v1569_v10 = vpop.f32.mrf.mxu0 }
 0x108   : > { %v1609_v11 = vpop.f32.mrf.mxu1  ;;  %v1570_v38 = vadd.f32 %v1569_v10, %v1568_v8  ;;  %v1065_v8 = vadd.f32 %v1592_v48, %v1001_v42  ;;  %v1004_v10 = vadd.f32 %v1555_v43, %v1392_v36 }
 0x109   : > { %v1571_v12 = vpop.f32.mrf.mxu0  ;;  %v1610_v56 = vadd.f32 %v1609_v11, %v1608_v9 }
 0x10a   : > { %v1611_v13 = vpop.f32.mrf.mxu1  ;;  %v1025_v12 = vadd.f32 %v1570_v38, %v1392_v36 }
 0x10b   : > { %v1572_v14 = vpop.f32.mrf.mxu0 }
 0x10c   : > { %v1612_v15 = vpop.f32.mrf.mxu1  ;;  %v1598_v14 = vadd.f32 %v1597_v59, %v1596_v57  ;;  %v1089_v60 = vadd.f32 %v1610_v56, %v1025_v12 }
 0x10d   : > { %v1630_v16 = vpop.f32.mrf.mxu0  ;;  %v1567_v15 = vadd.f32 %v1566_v6, %v1565_v4 }
 0x10e   : > { %v2189_v17 = vpop.f32.mrf.mxu1  ;;  %v1073_v52 = vadd.f32 %v1598_v14, %v1009_v46 }
 0x10f   : > { %v1631_v18 = vpop.f32.mrf.mxu0  ;;  %v1020_v4 = vadd.f32 %v1567_v15, %v1392_v36 }
 0x110   : > { %v2191_v19 = vpop.f32.mrf.mxu1  ;;  %v1632_v51 = vadd.f32 %v1631_v18, %v1630_v16 }
 0x111   : > { %v1633_v20 = vpop.f32.mrf.mxu0 }
 0x112   : > { %v2193_v21 = vpop.f32.mrf.mxu1  ;;  %v1129_v18 = vadd.f32 %v1632_v51, %v1065_v8 }
 0x113   : > { %v1634_v22 = vpop.f32.mrf.mxu0 }
 0x114   : > { %v2195_v23 = vpop.f32.mrf.mxu1  ;;  %v1635_v38 = vadd.f32 %v1634_v22, %v1633_v20 }
 0x115   : > { %2240 = vst [vmem:[#allocation2_spill] sm:$0xff] %v2195_v23  ;;  %v1636_v24 = vpop.f32.mrf.mxu0  ;;  %v1012_v23 = vadd.f32 %v1561_v44, %v1392_v36  ;;  %v1081_v44 = vadd.f32 %v1604_v49, %v1017_v54 }
 0x116   : > { %v2197_v25 = vpop.f32.mrf.mxu1 }
 0x117   : > { %v1637_v26 = vpop.f32.mrf.mxu0  ;;  %v1076_v37 = vadd.f32 %v1601_v2, %v1012_v23 }
 0x118   : > { %v1677_v27 = vpop.f32.mrf.mxu1 }
 0x119   : > { %v1639_v28 = vpop.f32.mrf.mxu0 }
 0x11a   : > { %v2199_v29 = vpop.f32.mrf.mxu1 }
 0x11b   : > { %v1640_v30 = vpop.f32.mrf.mxu0 }
 0x11c   : > { %v2201_v31 = vpop.f32.mrf.mxu1  ;;  %v1641_v57 = vadd.f32 %v1640_v30, %v1639_v28  ;;  %v1678_v28 = vadd.f32 %v1677_v27, %v2197_v25  ;;  %v2242_v25 = vld [vmem:[#allocation2_spill] sm:$0xff] }
 0x11d   : > { %v1642_v32 = vpop.f32.mrf.mxu0  ;;  %v1681_v22 = vadd.f32 %v2201_v31, %v2199_v29  ;;  %v1675_v27 = vadd.f32 %v2242_v25, %v2193_v21 }
 0x11e   : > { %v2203_v33 = vpop.f32.mrf.mxu1  ;;  %v1140_v30 = vadd.f32 %v1641_v57, %v1076_v37 }
 0x11f   : > { %v1643_v35 = vpop.f32.mrf.mxu0 }
 0x120   : > { %v1683_v39 = vpop.f32.mrf.mxu1  ;;  %v1644_v6 = vadd.f32 %v1643_v35, %v1642_v32  ;;  %v1084_v32 = vadd.f32 %v1607_v61, %v1020_v4  ;;  %v1204_v12 = vadd.f32 %v1681_v22, %v1140_v30 }
 0x121   : > { %v1645_v40 = vpop.f32.mrf.mxu0  ;;  %v1684_v23 = vadd.f32 %v1683_v39, %v2203_v33 }
 0x122   : > { %v2208_v41 = vpop.f32.mrf.mxu1  ;;  %v1145_v35 = vadd.f32 %v1644_v6, %v1081_v44 }
 0x123   : > { %2241 = vst [vmem:[#allocation3_spill] sm:$0xff] %v2208_v41  ;;  %v1646_v45 = vpop.f32.mrf.mxu0  ;;  %v1638_v41 = vadd.f32 %v1637_v26, %v1636_v24  ;;  %v1595_v26 = vadd.f32 %v2175_v55, %v2173_v53  ;;  %v1672_v55 = vadd.f32 %v2191_v19, %v2189_v17 }
 0x124   : > { %v1686_v13 = vpop.f32.mrf.mxu1  ;;  %v1647_v63 = vadd.f32 %v1646_v45, %v1645_v40 }
 0x125   : > { %v1648_v50 = vpop.f32.mrf.mxu0  ;;  %v1137_v42 = vadd.f32 %v1638_v41, %v1073_v52  ;;  %v1068_v16 = vadd.f32 %v1595_v26, %v1004_v10  ;;  %v1193_v46 = vadd.f32 %v1672_v55, %v1129_v18 }
 0x126   : > { %v1688_v58 = vpop.f32.mrf.mxu1  ;;  %v1148_v36 = vadd.f32 %v1647_v63, %v1084_v32 }
 0x127   : > { %v1649_v34 = vpop.f32.mrf.mxu0  ;;  %v1132_v20 = vadd.f32 %v1635_v38, %v1068_v16  ;;  %v1201_v5 = vadd.f32 %v1678_v28, %v1137_v42 }
 0x128   : > { %v1650_v62 = vadd.f32 %v1649_v34, %v1648_v50  ;;  %v1689_v0 = vpop.f32.mrf.mxu1  ;;  %v1209_v50 = vadd.f32 %v1684_v23, %v1145_v35 }
 0x129   : > { %v1651_v59 = vpop.f32.mrf.mxu0  ;;  %v1690_v11 = vadd.f32 %v1689_v0, %v1688_v58  ;;  %v1196_v14 = vadd.f32 %v1675_v27, %v1132_v20 }
 0x12a   : > { %v1153_v9 = vadd.f32 %v1650_v62, %v1089_v60  ;;  %v1691_v24 = vpop.f32.mrf.mxu1  ;;  %v2243_v17 = vld [vmem:[#allocation3_spill] sm:$0xff] }
 0x12b   : > { %v1652_v43 = vpop.f32.mrf.mxu0  ;;  %v1687_v19 = vadd.f32 %v1686_v13, %v2243_v17 }
 0x12c   : > { %v1692_v1 = vpop.f32.mrf.mxu1  ;;  %v1217_v3 = vadd.f32 %v1690_v11, %v1153_v9 }
 0x12d   : > { %v1212_v58 = vadd.f32 %v1687_v19, %v1148_v36 }
 0x12e   : > { %v1724_v53 = vpop.f32.mrf.mxu0 }
 0x12f   : > { %v1728_v7 = vpop.f32.mrf.mxu1  ;;  %v1265_v45 = vadd.f32 %v1724_v53, %v1201_v5 }
 0x130   : > { %v1281_v40 = vadd.f32 %v1728_v7, %v1217_v3  ;;  %v1256_v41 = vpop.f32.mrf.mxu0 }
 0x131   : > { %v1272_v47 = vpop.f32.mrf.mxu1  ;;  %v1257_v31 = vadd.f32 %v1256_v41, %v1193_v46  ;;  %v1288_v8 = vmax.f32 %v1265_v45, 0.0 }
 0x132   : > { %v1292_v48 = vmax.f32 %v1281_v40, 0.0  ;;  %v1725_v29 = vpop.f32.mrf.mxu0  ;;  %v1273_v56 = vadd.f32 %v1272_v47, %v1209_v50 }
 0x133   : > { %v1268_v33 = vadd.f32 %v1725_v29, %v1204_v12  ;;  %v1729_v39 = vpop.f32.mrf.mxu1  ;;  %v1286_v54 = vmax.f32 %v1257_v31, 0.0 }
 0x134   : > { %v1516_v15 = vpack.c.bf16 %v1292_v48, %v1292_v48  ;;  %v1259_v21 = vpop.f32.mrf.mxu0  ;;  %v1290_v0 = vmax.f32 %v1273_v56, 0.0 }
 0x135   : > { %v1289_v10 = vmax.f32 %v1268_v33, 0.0  ;;  %v1260_v34 = vadd.f32 %v1259_v21, %v1196_v14  ;;  %v1275_v52 = vpop.f32.mrf.mxu1 }
 0x136   : > { %1328 = vst [vmem:[%s175_s20 + $0x18] sm:$0xf] %v1516_v15  ;;  %v1276_v13 = vadd.f32 %v1275_v52, %v1212_v58 }
 0x137   : > { %v1525_v60 = vpack.c.bf16 %v1289_v10, %v1288_v8  ;;  %v1287_v62 = vmax.f32 %v1260_v34, 0.0 }
 0x138   : > { %v1291_v2 = vmax.f32 %v1276_v13, 0.0 }
 0x139   : > { %1532 = vst [vmem:[%s175_s20 + $0x8] sm:$0xff] %v1525_v60   ;;  %v1520_v49 = vpack.c.bf16 %v1287_v62, %v1286_v54 }
 0x13a   : > { %v1530_v51 = vpack.c.bf16 %v1291_v2, %v1290_v0 }
 0x13b   : > { %1521 = vst [vmem:[%s175_s20] sm:$0xff] %v1520_v49  }
 0x13c   : > { %1533 = vst [vmem:[%s175_s20 + $0x10] sm:$0xff] %v1530_v51  }
 0x13d PF: > { %s13_s12 = sadd.s32 1, %s1881_s12  }
 0x13e   : > { %p10_p4 = scmp.ge.s32.totalorder %s13_s12, 4  }
 0x140   :  { %12 = sbr.rel (!%p10_p4) target bundleno = 1 (0x1), region = 62 }

// kernel: conv_separate_forward.7
= control target key start
LH: loop header
LB: loop body
LE: loop exit
PB: predicated region body
PF: predicated region fallthrough
CT: control target
= control target key end

     0   :  { %s8962_s18 = smov 0   ;;  %s8964_s19 = smov 0   ;;  %s10084_s0 = inlined_call_operand.vmem [shape: bf16[2,2,3136], index: 0, kind: input, shape index: {}]   ;;  %s10085_s1 = inlined_call_operand.vmem [shape: bf16[2,3136,512], index: 1, kind: input, shape index: {}]   ;;  %s10086_s2 = inlined_call_operand.vmem [shape: f32[2,1,512], index: 2, kind: input, shape index: {}]   ;;  %s10087_s3 = inlined_call_operand.vmem [shape: bf16[2,512,128], index: 3, kind: input, shape index: {}]   ;;  %s10088_s4 = inlined_call_operand.vmem [shape: f32[2,1,128], index: 4, kind: input, shape index: {}]   ;;  %s10089_s5 = inlined_call_operand.vmem [shape: f32[2,2,128], index: 5, kind: output, shape index: {}]  }
   0x1   :  { %s8966_s20 = smov 0  }
   0x2 LB: > { %s27_s21 = sadd.s32 1, %s8924_s19  ;;  %p6793_p0 = scmp.ge.s32.totalorder %s8928_s20, 1  ;;  %s8928_s20 = sphi %s8966_s20, %s15_s20   ;;  %s8924_s19 = sphi %s8964_s19, %s10091_s19   ;;  %s8920_s18 = sphi %s8962_s18, %s10090_s18  }
   0x3   : > { %p29_p1 = scmp.ge.s32.totalorder %s27_s21, 2  ;;  %p243_p2 = scmp.lt.s32.totalorder %s8928_s20, 3 }
   0x5   : > { %s10093_s21 = smov (%p29_p1, %s27_s21), 0  ;;  %p244_p3 = pnand %p6793_p0, %p243_p2 }
   0x6   : > { %p293_p4 = scmp.lt.s32.totalorder (!%p244_p3), %s8920_s18, 1 }
   0x7   : > { %247 = sbr.rel (%p244_p3) target bundleno = 1205 (0x4b5), region = 40 }
   0xc   : > { %s10095_s18 = smov (!%p293_p4, %s8920_s18), 1  ;;  %v1116_v36 = vlaneseq  ;;  %v8930_v37 = vmov 1966171168   ;;  %vm5245_vm0 = vcmask 523264  }
   0xd   : > { %s7667_s22 = smul.u32 6272, %s10095_s18  ;;  %v1142_v38 = vunpack.c.l.s4 %v8930_v37  ;;  %s6795_s30 = sshll.u32 %s10095_s18, 2 }
   0xe   : > { %s7666_s26 = smul.u32 25, %s10095_s18  ;;  %v9028_v42 = vshrl.u32 %v1116_v36, 7  ;;  %s9351_s8 = scalar_lea.vmem %s10086_s2, %s6795_s30 }
   0xf   : > { %s8986_s25 = scalar_lea.vmem %s10085_s1, %s7667_s22  ;;  %v1143_v43 = vunpack.c.0.s8 %v1142_v38  ;;  %s7621_s9 = sshll.u32 %s10095_s18, 8 }
  0x10   : > { %v7694_v0 = vld [vmem:[%s8986_s25 + $0xe4] ss:$16 sps:$4 sm:$0xff]   ;;  %v7698_v2 = vld [vmem:[%s8986_s25 + $0xe0] ss:$16 sps:$4 sm:$0xff]   ;;  %s9038_s29 = scalar_lea.vmem %s10084_s0, %s7666_s26  ;;  %s9885_s12 = scalar_lea.vmem %s10087_s3, %s7621_s9 }
  0x11   : > { %v7696_v1 = vld [vmem:[%s8986_s25 + $0x2e4] ss:$16 sps:$4 sm:$0xff]   ;;  %5249 = vmatprep.subr.bf16.mxu0 %v7694_v0  ;;  %v7699_v3 = vld [vmem:[%s8986_s25 + $0x2e0] ss:$16 sps:$4 sm:$0xff]   ;;  %v9041_v49 = vsub.s32 %v1143_v43, %v9028_v42  ;;  %s317_s15 = scalar_lea.vmem %s10088_s4, %s10095_s18  ;;  %s6798_s16 = sshll.u32 %s10095_s18, 1 }
  0x12   : > { %5290 = vmatprep.subr.bf16.mxu1 %v7696_v1  ;;  %v7700_v4 = vld [vmem:[%s8986_s25 + $0xc4] ss:$16 sps:$4 sm:$0xff]   ;;  %5250 = vmatpush1.bf16.msra.mxu0 %v7698_v2  ;;  %v7704_v6 = vld [vmem:[%s8986_s25 + $0xc0] ss:$16 sps:$4 sm:$0xff]   ;;  %s324_s23 = scalar_lea.vmem %s10089_s5, %s6798_s16 }
  0x13   : > { %5291 = vmatpush1.bf16.msra.mxu1 %v7699_v3  ;;  %v7702_v5 = vld [vmem:[%s8986_s25 + $0x2c4] ss:$16 sps:$4 sm:$0xff]   ;;  %5251 = vmatprep.subr.bf16.mxu0 %v7700_v4  ;;  %v7705_v7 = vld [vmem:[%s8986_s25 + $0x2c0] ss:$16 sps:$4 sm:$0xff]  }
  0x14   : > { %5292 = vmatprep.subr.bf16.mxu1 %v7702_v5  ;;  %v7706_v8 = vld [vmem:[%s8986_s25 + $0xa4] ss:$16 sps:$4 sm:$0xff]   ;;  %v7710_v10 = vld [vmem:[%s8986_s25 + $0xa0] ss:$16 sps:$4 sm:$0xff]  }
  0x15   : > { %v7708_v9 = vld [vmem:[%s8986_s25 + $0x2a4] ss:$16 sps:$4 sm:$0xff]   ;;  %v7711_v11 = vld [vmem:[%s8986_s25 + $0x2a0] ss:$16 sps:$4 sm:$0xff]  }
  0x16   : > { %5252 = vmatpush1.bf16.msra.mxu0 %v7704_v6  ;;  %v7712_v12 = vld [vmem:[%s8986_s25 + $0x84] ss:$16 sps:$4 sm:$0xff]   ;;  %v7716_v14 = vld [vmem:[%s8986_s25 + $0x80] ss:$16 sps:$4 sm:$0xff]  }
  0x17   : > { %5293 = vmatpush1.bf16.msra.mxu1 %v7705_v7  ;;  %5253 = vmatprep.subr.bf16.mxu0 %v7706_v8  ;;  %v7714_v13 = vld [vmem:[%s8986_s25 + $0x284] ss:$16 sps:$4 sm:$0xff]   ;;  %v7717_v15 = vld [vmem:[%s8986_s25 + $0x280] ss:$16 sps:$4 sm:$0xff]  }
  0x18   : > { %5294 = vmatprep.subr.bf16.mxu1 %v7708_v9  ;;  %v7718_v16 = vld [vmem:[%s8986_s25 + $0x64] ss:$16 sps:$4 sm:$0xff]   ;;  %v7722_v18 = vld [vmem:[%s8986_s25 + $0x60] ss:$16 sps:$4 sm:$0xff]  }
  0x19   : > { %v7720_v17 = vld [vmem:[%s8986_s25 + $0x264] ss:$16 sps:$4 sm:$0xff]   ;;  %v7723_v19 = vld [vmem:[%s8986_s25 + $0x260] ss:$16 sps:$4 sm:$0xff]  }
  0x1a   : > { %5254 = vmatpush1.bf16.msra.mxu0 %v7710_v10  ;;  %v7724_v20 = vld [vmem:[%s8986_s25 + $0x44] ss:$16 sps:$4 sm:$0xff]   ;;  %v7728_v22 = vld [vmem:[%s8986_s25 + $0x40] ss:$16 sps:$4 sm:$0xff]  }
  0x1b   : > { %5295 = vmatpush1.bf16.msra.mxu1 %v7711_v11  ;;  %5255 = vmatprep.subr.bf16.mxu0 %v7712_v12  ;;  %v7726_v21 = vld [vmem:[%s8986_s25 + $0x244] ss:$16 sps:$4 sm:$0xff]   ;;  %v7729_v23 = vld [vmem:[%s8986_s25 + $0x240] ss:$16 sps:$4 sm:$0xff]  }
  0x1c   : > { %5296 = vmatprep.subr.bf16.mxu1 %v7714_v13  ;;  %v7730_v24 = vld [vmem:[%s8986_s25 + $0x24] ss:$16 sps:$4 sm:$0xff]   ;;  %v7734_v26 = vld [vmem:[%s8986_s25 + $0x20] ss:$16 sps:$4 sm:$0xff]  }
  0x1d   : > { %v7732_v25 = vld [vmem:[%s8986_s25 + $0x224] ss:$16 sps:$4 sm:$0xff]   ;;  %v7735_v27 = vld [vmem:[%s8986_s25 + $0x220] ss:$16 sps:$4 sm:$0xff]  }
  0x1e   : > { %5256 = vmatpush1.bf16.msra.mxu0 %v7716_v14  ;;  %v7736_v28 = vld [vmem:[%s8986_s25 + $0x4] ss:$16 sps:$4 sm:$0xff]   ;;  %v7740_v30 = vld [vmem:[%s8986_s25] ss:$16 sps:$4 sm:$0xff]  }
  0x1f   : > { %5297 = vmatpush1.bf16.msra.mxu1 %v7717_v15  ;;  %5257 = vmatprep.subr.bf16.mxu0 %v7718_v16  ;;  %v7738_v29 = vld [vmem:[%s8986_s25 + $0x204] ss:$16 sps:$4 sm:$0xff]   ;;  %v7741_v31 = vld [vmem:[%s8986_s25 + $0x200] ss:$16 sps:$4 sm:$0xff]  }
  0x20   : > { %5298 = vmatprep.subr.bf16.mxu1 %v7720_v17  ;;  %v7742_v32 = vld [vmem:[%s8986_s25 + $0x1e4] ss:$16 sps:$4 sm:$0xff]   ;;  %v7746_v34 = vld [vmem:[%s8986_s25 + $0x1e0] ss:$16 sps:$4 sm:$0xff]  }
  0x21   : > { %v7744_v33 = vld [vmem:[%s8986_s25 + $0x3e4] ss:$16 sps:$4 sm:$0xff]   ;;  %v7747_v35 = vld [vmem:[%s8986_s25 + $0x3e0] ss:$16 sps:$4 sm:$0xff]  }
  0x22   : > { %5258 = vmatpush1.bf16.msra.mxu0 %v7722_v18  ;;  %v7748_v39 = vld [vmem:[%s8986_s25 + $0x1c4] ss:$16 sps:$4 sm:$0xff]   ;;  %v7752_v41 = vld [vmem:[%s8986_s25 + $0x1c0] ss:$16 sps:$4 sm:$0xff]  }
  0x23   : > { %5299 = vmatpush1.bf16.msra.mxu1 %v7723_v19  ;;  %5259 = vmatprep.subr.bf16.mxu0 %v7724_v20  ;;  %v7750_v40 = vld [vmem:[%s8986_s25 + $0x3c4] ss:$16 sps:$4 sm:$0xff]   ;;  %v7753_v44 = vld [vmem:[%s8986_s25 + $0x3c0] ss:$16 sps:$4 sm:$0xff]  }
  0x24   : > { %5300 = vmatprep.subr.bf16.mxu1 %v7726_v21  ;;  %v7754_v45 = vld [vmem:[%s8986_s25 + $0x1a4] ss:$16 sps:$4 sm:$0xff]   ;;  %v7758_v47 = vld [vmem:[%s8986_s25 + $0x1a0] ss:$16 sps:$4 sm:$0xff]  }
  0x25   : > { %v7756_v46 = vld [vmem:[%s8986_s25 + $0x3a4] ss:$16 sps:$4 sm:$0xff]   ;;  %v7759_v48 = vld [vmem:[%s8986_s25 + $0x3a0] ss:$16 sps:$4 sm:$0xff]  }
  0x26   : > { %5260 = vmatpush1.bf16.msra.mxu0 %v7728_v22  ;;  %v7760_v50 = vld [vmem:[%s8986_s25 + $0x184] ss:$16 sps:$4 sm:$0xff]   ;;  %v7764_v53 = vld [vmem:[%s8986_s25 + $0x180] ss:$16 sps:$4 sm:$0xff]  }
  0x27   : > { %5301 = vmatpush1.bf16.msra.mxu1 %v7729_v23  ;;  %5261 = vmatprep.subr.bf16.mxu0 %v7730_v24  ;;  %v7762_v51 = vld [vmem:[%s8986_s25 + $0x384] ss:$16 sps:$4 sm:$0xff]   ;;  %v7765_v55 = vld [vmem:[%s8986_s25 + $0x380] ss:$16 sps:$4 sm:$0xff]  }
  0x28   : > { %5302 = vmatprep.subr.bf16.mxu1 %v7732_v25  ;;  %v326_v52 = vld [vmem:[%s9038_s29] sm:$0xff] }
  0x29   : > { %v1147_v54 = vrot.slane %v326_v52, %v9041_v49  ;;  %v7766_v56 = vld [vmem:[%s8986_s25 + $0x164] ss:$16 sps:$4 sm:$0xff]   ;;  %v7770_v59 = vld [vmem:[%s8986_s25 + $0x160] ss:$16 sps:$4 sm:$0xff]   ;;  %v1140_v1 = vcombine.high %v326_v52, %v326_v52 }
  0x2a   : > { %5262 = vmatpush1.bf16.msra.mxu0 %v7734_v26  ;;  %v7768_v57 = vld [vmem:[%s8986_s25 + $0x364] ss:$16 sps:$4 sm:$0xff]   ;;  %v7771_v61 = vld [vmem:[%s8986_s25 + $0x360] ss:$16 sps:$4 sm:$0xff]  }
  0x2b   : > { %5303 = vmatpush1.bf16.msra.mxu1 %v7735_v27  ;;  %5263 = vmatprep.subr.bf16.mxu0 %v7736_v28  ;;  %v1155_v58 = vcombine.high %v1147_v54, %v1147_v54  ;;  %v7772_v62 = vld [vmem:[%s8986_s25 + $0x144] ss:$16 sps:$4 sm:$0xff]   ;;  %v7776_v2 = vld [vmem:[%s8986_s25 + $0x140] ss:$16 sps:$4 sm:$0xff]   ;;  %v9069_v6 = vrot.slane %v1140_v1, %v9041_v49  ;;  %v9079_v13 = vrot.slane %v1147_v54, %v9041_v49 }
  0x2c   : > { %5304 = vmatprep.subr.bf16.mxu1 %v7738_v29  ;;  %v7774_v63 = vld [vmem:[%s8986_s25 + $0x344] ss:$16 sps:$4 sm:$0xff]   ;;  %v7777_v3 = vld [vmem:[%s8986_s25 + $0x340] ss:$16 sps:$4 sm:$0xff]  }
  0x2d   : > { %v9053_v60 = vrot.slane %v1155_v58, %v9041_v49  ;;  %v7778_v4 = vld [vmem:[%s8986_s25 + $0x124] ss:$16 sps:$4 sm:$0xff]   ;;  %v7782_v7 = vld [vmem:[%s8986_s25 + $0x120] ss:$16 sps:$4 sm:$0xff]   ;;  %v1156_v11 = vcombine.high %v9069_v6, %v9069_v6  ;;  %v9089_v18 = vcombine.high %v9079_v13, %v9079_v13 }
  0x2e   : > { %5264 = vmatpush1.bf16.msra.mxu0 %v7740_v30  ;;  %v7780_v5 = vld [vmem:[%s8986_s25 + $0x324] ss:$16 sps:$4 sm:$0xff]   ;;  %v7783_v8 = vld [vmem:[%s8986_s25 + $0x320] ss:$16 sps:$4 sm:$0xff]  }
  0x2f   : > { %5305 = vmatpush1.bf16.msra.mxu1 %v7741_v31  ;;  %5265 = vmatprep.subr.bf16.mxu0 %v7742_v32  ;;  %v9060_v0 = vcombine.high %v9053_v60, %v9053_v60  ;;  %v7784_v9 = vld [vmem:[%s8986_s25 + $0x104] ss:$16 sps:$4 sm:$0xff]   ;;  %v7788_v12 = vld [vmem:[%s8986_s25 + $0x100] ss:$16 sps:$4 sm:$0xff]   ;;  %v9085_v17 = vrot.slane %v1156_v11, %v9041_v49 }
  0x30   : > { %5306 = vmatprep.subr.bf16.mxu1 %v7744_v33  ;;  %5281 = vmatprep.mubr.bf16.mxu0 %v9053_v60  ;;  %v7786_v10 = vld [vmem:[%s8986_s25 + $0x304] ss:$16 sps:$4 sm:$0xff]   ;;  %v7789_v14 = vld [vmem:[%s8986_s25 + $0x300] ss:$16 sps:$4 sm:$0xff]  }
  0x31   : > { %5322 = vmatprep.mubr.bf16.mxu1 %v9060_v0  ;;  %v7792_v15 = vld [vmem:[%s8986_s25 + $0x4e4] ss:$16 sps:$4 sm:$0xff]   ;;  %v7790_v19 = vld [vmem:[%s8986_s25 + $0x4e0] ss:$16 sps:$4 sm:$0xff]   ;;  %v9097_v23 = vcombine.high %v9085_v17, %v9085_v17 }
  0x32   : > { %5266 = vmatpush2.bf16.msra.mxu0 %v7746_v34  ;;  %v7795_v16 = vld [vmem:[%s8986_s25 + $0x6e4] ss:$16 sps:$4 sm:$0xff]   ;;  %v7793_v20 = vld [vmem:[%s8986_s25 + $0x6e0] ss:$16 sps:$4 sm:$0xff]  }
  0x33   : > { %5307 = vmatpush2.bf16.msra.mxu1 %v7747_v35  ;;  %5267 = vmatprep.subr.bf16.mxu0 %v7748_v39  ;;  %v7798_v21 = vld [vmem:[%s8986_s25 + $0x4c4] ss:$16 sps:$4 sm:$0xff]   ;;  %v7796_v24 = vld [vmem:[%s8986_s25 + $0x4c0] ss:$16 sps:$4 sm:$0xff]  }
  0x34   : > { %5308 = vmatprep.subr.bf16.mxu1 %v7750_v40  ;;  %v7801_v22 = vld [vmem:[%s8986_s25 + $0x6c4] ss:$16 sps:$4 sm:$0xff]   ;;  %v7799_v25 = vld [vmem:[%s8986_s25 + $0x6c0] ss:$16 sps:$4 sm:$0xff]  }
  0x35   : > { %v7804_v26 = vld [vmem:[%s8986_s25 + $0x4a4] ss:$16 sps:$4 sm:$0xff]   ;;  %v7802_v28 = vld [vmem:[%s8986_s25 + $0x4a0] ss:$16 sps:$4 sm:$0xff]  }
  0x36   : > { %5268 = vmatpush2.bf16.msra.mxu0 %v7752_v41  ;;  %v7807_v27 = vld [vmem:[%s8986_s25 + $0x6a4] ss:$16 sps:$4 sm:$0xff]   ;;  %v7805_v29 = vld [vmem:[%s8986_s25 + $0x6a0] ss:$16 sps:$4 sm:$0xff]  }
  0x37   : > { %5309 = vmatpush2.bf16.msra.mxu1 %v7753_v44  ;;  %5269 = vmatprep.subr.bf16.mxu0 %v7754_v45  ;;  %v7810_v30 = vld [vmem:[%s8986_s25 + $0x484] ss:$16 sps:$4 sm:$0xff]   ;;  %v7808_v32 = vld [vmem:[%s8986_s25 + $0x480] ss:$16 sps:$4 sm:$0xff]  }
  0x38   : > { %5310 = vmatprep.subr.bf16.mxu1 %v7756_v46  ;;  %v7813_v31 = vld [vmem:[%s8986_s25 + $0x684] ss:$16 sps:$4 sm:$0xff]   ;;  %v7811_v33 = vld [vmem:[%s8986_s25 + $0x680] ss:$16 sps:$4 sm:$0xff]  }
  0x39   : > { %v7816_v34 = vld [vmem:[%s8986_s25 + $0x464] ss:$16 sps:$4 sm:$0xff]   ;;  %v7814_v36 = vld [vmem:[%s8986_s25 + $0x460] ss:$16 sps:$4 sm:$0xff]  }
  0x3a   : > { %5270 = vmatpush2.bf16.msra.mxu0 %v7758_v47  ;;  %v7819_v35 = vld [vmem:[%s8986_s25 + $0x664] ss:$16 sps:$4 sm:$0xff]   ;;  %v7817_v37 = vld [vmem:[%s8986_s25 + $0x660] ss:$16 sps:$4 sm:$0xff]  }
  0x3b   : > { %5311 = vmatpush2.bf16.msra.mxu1 %v7759_v48  ;;  %5271 = vmatprep.subr.bf16.mxu0 %v7760_v50  ;;  %v7822_v38 = vld [vmem:[%s8986_s25 + $0x444] ss:$16 sps:$4 sm:$0xff]   ;;  %v7820_v40 = vld [vmem:[%s8986_s25 + $0x440] ss:$16 sps:$4 sm:$0xff]  }
  0x3c   : > { %5312 = vmatprep.subr.bf16.mxu1 %v7762_v51  ;;  %v7825_v39 = vld [vmem:[%s8986_s25 + $0x644] ss:$16 sps:$4 sm:$0xff]   ;;  %v7823_v41 = vld [vmem:[%s8986_s25 + $0x640] ss:$16 sps:$4 sm:$0xff]  }
  0x3d   : > { %v7828_v43 = vld [vmem:[%s8986_s25 + $0x424] ss:$16 sps:$4 sm:$0xff]   ;;  %v7826_v45 = vld [vmem:[%s8986_s25 + $0x420] ss:$16 sps:$4 sm:$0xff]  }
  0x3e   : > { %5272 = vmatpush2.bf16.msra.mxu0 %v7764_v53  ;;  %v7831_v44 = vld [vmem:[%s8986_s25 + $0x624] ss:$16 sps:$4 sm:$0xff]   ;;  %v7829_v46 = vld [vmem:[%s8986_s25 + $0x620] ss:$16 sps:$4 sm:$0xff]  }
  0x3f   : > { %5313 = vmatpush2.bf16.msra.mxu1 %v7765_v55  ;;  %5273 = vmatprep.subr.bf16.mxu0 %v7766_v56  ;;  %v7834_v47 = vld [vmem:[%s8986_s25 + $0x404] ss:$16 sps:$4 sm:$0xff]   ;;  %v7832_v50 = vld [vmem:[%s8986_s25 + $0x400] ss:$16 sps:$4 sm:$0xff]  }
  0x40   : > { %5314 = vmatprep.subr.bf16.mxu1 %v7768_v57  ;;  %v7837_v48 = vld [vmem:[%s8986_s25 + $0x604] ss:$16 sps:$4 sm:$0xff]   ;;  %v7835_v51 = vld [vmem:[%s8986_s25 + $0x600] ss:$16 sps:$4 sm:$0xff]  }
  0x41   : > { %v7840_v52 = vld [vmem:[%s8986_s25 + $0x5e4] ss:$16 sps:$4 sm:$0xff]   ;;  %v7838_v54 = vld [vmem:[%s8986_s25 + $0x5e0] ss:$16 sps:$4 sm:$0xff]  }
  0x42   : > { %5274 = vmatpush2.bf16.msra.mxu0 %v7770_v59  ;;  %v7843_v53 = vld [vmem:[%s8986_s25 + $0x7e4] ss:$16 sps:$4 sm:$0xff]   ;;  %v7841_v55 = vld [vmem:[%s8986_s25 + $0x7e0] ss:$16 sps:$4 sm:$0xff]  }
  0x43   : > { %5315 = vmatpush2.bf16.msra.mxu1 %v7771_v61  ;;  %5275 = vmatprep.subr.bf16.mxu0 %v7772_v62  ;;  %v7846_v56 = vld [vmem:[%s8986_s25 + $0x5c4] ss:$16 sps:$4 sm:$0xff]   ;;  %v7844_v58 = vld [vmem:[%s8986_s25 + $0x5c0] ss:$16 sps:$4 sm:$0xff]  }
  0x44   : > { %5316 = vmatprep.subr.bf16.mxu1 %v7774_v63  ;;  %v7849_v57 = vld [vmem:[%s8986_s25 + $0x7c4] ss:$16 sps:$4 sm:$0xff]   ;;  %v7847_v59 = vld [vmem:[%s8986_s25 + $0x7c0] ss:$16 sps:$4 sm:$0xff]  }
  0x45   : > { %v7852_v61 = vld [vmem:[%s8986_s25 + $0x5a4] ss:$16 sps:$4 sm:$0xff]   ;;  %v7850_v63 = vld [vmem:[%s8986_s25 + $0x5a0] ss:$16 sps:$4 sm:$0xff]  }
  0x46   : > { %5276 = vmatpush2.bf16.msra.mxu0 %v7776_v2  ;;  %v7855_v62 = vld [vmem:[%s8986_s25 + $0x7a4] ss:$16 sps:$4 sm:$0xff]   ;;  %v7853_v1 = vld [vmem:[%s8986_s25 + $0x7a0] ss:$16 sps:$4 sm:$0xff]  }
  0x47   : > { %5317 = vmatpush2.bf16.msra.mxu1 %v7777_v3  ;;  %5277 = vmatprep.subr.bf16.mxu0 %v7778_v4  ;;  %v7858_v2 = vld [vmem:[%s8986_s25 + $0x584] ss:$16 sps:$4 sm:$0xff]   ;;  %v7856_v4 = vld [vmem:[%s8986_s25 + $0x580] ss:$16 sps:$4 sm:$0xff]  }
  0x48   : > { %5318 = vmatprep.subr.bf16.mxu1 %v7780_v5  ;;  %v7861_v3 = vld [vmem:[%s8986_s25 + $0x784] ss:$16 sps:$4 sm:$0xff]   ;;  %v7859_v5 = vld [vmem:[%s8986_s25 + $0x780] ss:$16 sps:$4 sm:$0xff]  }
  0x49   : > { %v7870_v11 = vld [vmem:[%s8986_s25 + $0x544] ss:$16 sps:$4 sm:$0xff]  }
  0x4a   : > { %5278 = vmatpush2.bf16.msra.mxu0 %v7782_v7  ;;  %v7864_v7 = vld [vmem:[%s8986_s25 + $0x564] ss:$16 sps:$4 sm:$0xff]  }
  0x4b   : > { %5319 = vmatpush2.bf16.msra.mxu1 %v7783_v8  ;;  %5279 = vmatprep.subr.bf16.mxu0 %v7784_v9  ;;  %v7867_v8 = vld [vmem:[%s8986_s25 + $0x764] ss:$16 sps:$4 sm:$0xff]   ;;  %v7862_v9 = vld [vmem:[%s8986_s25 + $0x560] ss:$16 sps:$4 sm:$0xff]  }
  0x4c   : > { %5320 = vmatprep.subr.bf16.mxu1 %v7786_v10  ;;  %v7865_v10 = vld [vmem:[%s8986_s25 + $0x760] ss:$16 sps:$4 sm:$0xff]  }
  0x4e   : > { %5280 = vmatpush2.bf16.msra.mxu0 %v7788_v12  ;;  %v7873_v12 = vld [vmem:[%s8986_s25 + $0x744] ss:$16 sps:$4 sm:$0xff]  }
  0x4f   : > { %5321 = vmatpush2.bf16.msra.mxu1 %v7789_v14  ;;  %5331 = vmatprep.subr.bf16.mxu0 %v7792_v15  ;;  %v7868_v14 = vld [vmem:[%s8986_s25 + $0x540] ss:$16 sps:$4 sm:$0xff]  }
  0x50   : > { %5372 = vmatprep.subr.bf16.mxu1 %v7795_v16  ;;  %v7871_v15 = vld [vmem:[%s8986_s25 + $0x740] ss:$16 sps:$4 sm:$0xff]   ;;  %v7876_v16 = vld [vmem:[%s8986_s25 + $0x524] ss:$16 sps:$4 sm:$0xff]  }
  0x51   : > { %5282 = vmatmul.mubr.bf16.vlgmr.msra.gmra.mxu0 %v9079_v13 }
  0x52   : > { %5323 = vmatmul.mubr.bf16.vlgmr.msra.gmra.mxu1 %v9089_v18  ;;  %5332 = vmatpush1.bf16.msra.mxu0 %v7790_v19  ;;  %v7879_v19 = vld [vmem:[%s8986_s25 + $0x724] ss:$16 sps:$4 sm:$0xff]  }
  0x53   : > { %5373 = vmatpush1.bf16.msra.mxu1 %v7793_v20  ;;  %5333 = vmatprep.subr.bf16.mxu0 %v7798_v21  ;;  %v7874_v20 = vld [vmem:[%s8986_s25 + $0x520] ss:$16 sps:$4 sm:$0xff]  }
  0x54   : > { %5374 = vmatprep.subr.bf16.mxu1 %v7801_v22  ;;  %5363 = vmatprep.mubr.bf16.mxu0 %v9085_v17  ;;  %v7877_v21 = vld [vmem:[%s8986_s25 + $0x720] ss:$16 sps:$4 sm:$0xff]   ;;  %v7882_v22 = vld [vmem:[%s8986_s25 + $0x504] ss:$16 sps:$4 sm:$0xff]  }
  0x55   : > { %5404 = vmatprep.mubr.bf16.mxu1 %v9097_v23 }
  0x56   : > { %5334 = vmatpush1.bf16.msra.mxu0 %v7796_v24  ;;  %v7885_v24 = vld [vmem:[%s8986_s25 + $0x704] ss:$16 sps:$4 sm:$0xff]  }
  0x57   : > { %5375 = vmatpush1.bf16.msra.mxu1 %v7799_v25  ;;  %5335 = vmatprep.subr.bf16.mxu0 %v7804_v26  ;;  %v7880_v25 = vld [vmem:[%s8986_s25 + $0x500] ss:$16 sps:$4 sm:$0xff]   ;;  %v9162_v26 = vrot.slane %v9069_v6, %v9041_v49 }
  0x58   : > { %5376 = vmatprep.subr.bf16.mxu1 %v7807_v27  ;;  %v7883_v27 = vld [vmem:[%s8986_s25 + $0x700] ss:$16 sps:$4 sm:$0xff]  }
  0x59   : > { %v7890_v6 = vld [vmem:[%s8986_s25 + $0xae0] ss:$16 sps:$4 sm:$0xff]  }
  0x5a   : > { %5336 = vmatpush1.bf16.msra.mxu0 %v7802_v28  ;;  %v7889_v28 = vld [vmem:[%s8986_s25 + $0x8e4] ss:$16 sps:$4 sm:$0xff]  }
  0x5b   : > { %5377 = vmatpush1.bf16.msra.mxu1 %v7805_v29  ;;  %5337 = vmatprep.subr.bf16.mxu0 %v7810_v30  ;;  %v7892_v29 = vld [vmem:[%s8986_s25 + $0xae4] ss:$16 sps:$4 sm:$0xff]   ;;  %v9169_v30 = vcombine.high %v9162_v26, %v9162_v26 }
  0x5c   : > { %5378 = vmatprep.subr.bf16.mxu1 %v7813_v31  ;;  %v7887_v31 = vld [vmem:[%s8986_s25 + $0x8e0] ss:$16 sps:$4 sm:$0xff]  }
  0x5e   : > { %5338 = vmatpush1.bf16.msra.mxu0 %v7808_v32  ;;  %v9174_v32 = vld [vmem:[%s9038_s29 + $0x8] sm:$0xff] }
  0x5f   : > { %5379 = vmatpush1.bf16.msra.mxu1 %v7811_v33  ;;  %5339 = vmatprep.subr.bf16.mxu0 %v7816_v34  ;;  %v7895_v33 = vld [vmem:[%s8986_s25 + $0x8c4] ss:$16 sps:$4 sm:$0xff]  }
  0x60   : > { %5380 = vmatprep.subr.bf16.mxu1 %v7819_v35  ;;  %v7898_v34 = vld [vmem:[%s8986_s25 + $0xac4] ss:$16 sps:$4 sm:$0xff]   ;;  %v9180_v35 = vrot.slane %v9174_v32, %v9041_v49 }
  0x62   : > { %5340 = vmatpush1.bf16.msra.mxu0 %v7814_v36  ;;  %v1204_v36 = vcombine.high %v9180_v35, %v9180_v35 }
  0x63   : > { %5381 = vmatpush1.bf16.msra.mxu1 %v7817_v37  ;;  %5341 = vmatprep.subr.bf16.mxu0 %v7822_v38  ;;  %v7893_v37 = vld [vmem:[%s8986_s25 + $0x8c0] ss:$16 sps:$4 sm:$0xff]  }
  0x64   : > { %5382 = vmatprep.subr.bf16.mxu1 %v7825_v39  ;;  %v7896_v38 = vld [vmem:[%s8986_s25 + $0xac0] ss:$16 sps:$4 sm:$0xff]   ;;  %v7901_v39 = vld [vmem:[%s8986_s25 + $0x8a4] ss:$16 sps:$4 sm:$0xff]  }
  0x66   : > { %5342 = vmatpush1.bf16.msra.mxu0 %v7820_v40  ;;  %v7904_v40 = vld [vmem:[%s8986_s25 + $0xaa4] ss:$16 sps:$4 sm:$0xff]  }
  0x67   : > { %5383 = vmatpush1.bf16.msra.mxu1 %v7823_v41  ;;  %5343 = vmatprep.subr.bf16.mxu0 %v7828_v43  ;;  %v9191_v41 = vrot.slane %v1204_v36, %v9041_v49  ;;  %v7965_v36 = vld [vmem:[%s8986_s25 + $0x940] ss:$16 sps:$4 sm:$0xff]  }
  0x68   : > { %5384 = vmatprep.subr.bf16.mxu1 %v7831_v44  ;;  %v7899_v44 = vld [vmem:[%s8986_s25 + $0x8a0] ss:$16 sps:$4 sm:$0xff]  }
  0x69   : > { %v9196_v43 = vcombine.high %v9191_v41, %v9191_v41 }
  0x6a   : > { %5344 = vmatpush1.bf16.msra.mxu0 %v7826_v45  ;;  %v7902_v45 = vld [vmem:[%s8986_s25 + $0xaa0] ss:$16 sps:$4 sm:$0xff]  }
  0x6b   : > { %5385 = vmatpush1.bf16.msra.mxu1 %v7829_v46  ;;  %5345 = vmatprep.subr.bf16.mxu0 %v7834_v47  ;;  %v7907_v46 = vld [vmem:[%s8986_s25 + $0x884] ss:$16 sps:$4 sm:$0xff]  }
  0x6c   : > { %5386 = vmatprep.subr.bf16.mxu1 %v7837_v48  ;;  %v7910_v47 = vld [vmem:[%s8986_s25 + $0xa84] ss:$16 sps:$4 sm:$0xff]   ;;  %v7905_v48 = vld [vmem:[%s8986_s25 + $0x880] ss:$16 sps:$4 sm:$0xff]  }
  0x6e   : > { %5346 = vmatpush1.bf16.msra.mxu0 %v7832_v50  ;;  %v7908_v50 = vld [vmem:[%s8986_s25 + $0xa80] ss:$16 sps:$4 sm:$0xff]  }
  0x6f   : > { %5387 = vmatpush1.bf16.msra.mxu1 %v7835_v51  ;;  %5347 = vmatprep.subr.bf16.mxu0 %v7840_v52  ;;  %v7913_v51 = vld [vmem:[%s8986_s25 + $0x864] ss:$16 sps:$4 sm:$0xff]  }
  0x70   : > { %5388 = vmatprep.subr.bf16.mxu1 %v7843_v53  ;;  %v7916_v52 = vld [vmem:[%s8986_s25 + $0xa64] ss:$16 sps:$4 sm:$0xff]   ;;  %v7911_v53 = vld [vmem:[%s8986_s25 + $0x860] ss:$16 sps:$4 sm:$0xff]  }
  0x72   : > { %5348 = vmatpush2.bf16.msra.mxu0 %v7838_v54  ;;  %v7914_v54 = vld [vmem:[%s8986_s25 + $0xa60] ss:$16 sps:$4 sm:$0xff]  }
  0x73   : > { %5389 = vmatpush2.bf16.msra.mxu1 %v7841_v55  ;;  %5349 = vmatprep.subr.bf16.mxu0 %v7846_v56  ;;  %v7919_v55 = vld [vmem:[%s8986_s25 + $0x844] ss:$16 sps:$4 sm:$0xff]  }
  0x74   : > { %5390 = vmatprep.subr.bf16.mxu1 %v7849_v57  ;;  %v7922_v56 = vld [vmem:[%s8986_s25 + $0xa44] ss:$16 sps:$4 sm:$0xff]   ;;  %v7917_v57 = vld [vmem:[%s8986_s25 + $0x840] ss:$16 sps:$4 sm:$0xff]  }
  0x76   : > { %5350 = vmatpush2.bf16.msra.mxu0 %v7844_v58  ;;  %v7920_v58 = vld [vmem:[%s8986_s25 + $0xa40] ss:$16 sps:$4 sm:$0xff]  }
  0x77   : > { %5391 = vmatpush2.bf16.msra.mxu1 %v7847_v59  ;;  %5351 = vmatprep.subr.bf16.mxu0 %v7852_v61  ;;  %v7925_v59 = vld [vmem:[%s8986_s25 + $0x824] ss:$16 sps:$4 sm:$0xff]  }
  0x78   : > { %5392 = vmatprep.subr.bf16.mxu1 %v7855_v62  ;;  %v7928_v61 = vld [vmem:[%s8986_s25 + $0xa24] ss:$16 sps:$4 sm:$0xff]   ;;  %v7923_v62 = vld [vmem:[%s8986_s25 + $0x820] ss:$16 sps:$4 sm:$0xff]  }
  0x7a   : > { %5352 = vmatpush2.bf16.msra.mxu0 %v7850_v63  ;;  %v7926_v63 = vld [vmem:[%s8986_s25 + $0xa20] ss:$16 sps:$4 sm:$0xff]  }
  0x7b   : > { %5393 = vmatpush2.bf16.msra.mxu1 %v7853_v1  ;;  %5353 = vmatprep.subr.bf16.mxu0 %v7858_v2  ;;  %v7931_v1 = vld [vmem:[%s8986_s25 + $0x804] ss:$16 sps:$4 sm:$0xff]  }
  0x7c   : > { %5394 = vmatprep.subr.bf16.mxu1 %v7861_v3  ;;  %v7934_v2 = vld [vmem:[%s8986_s25 + $0xa04] ss:$16 sps:$4 sm:$0xff]   ;;  %v7929_v3 = vld [vmem:[%s8986_s25 + $0x800] ss:$16 sps:$4 sm:$0xff]  }
  0x7e   : > { %5354 = vmatpush2.bf16.msra.mxu0 %v7856_v4  ;;  %v7932_v4 = vld [vmem:[%s8986_s25 + $0xa00] ss:$16 sps:$4 sm:$0xff]  }
  0x7f   : > { %5395 = vmatpush2.bf16.msra.mxu1 %v7859_v5  ;;  %5355 = vmatprep.subr.bf16.mxu0 %v7864_v7  ;;  %v7937_v5 = vld [vmem:[%s8986_s25 + $0x9e4] ss:$16 sps:$4 sm:$0xff]  }
  0x80   : > { %5396 = vmatprep.subr.bf16.mxu1 %v7867_v8  ;;  %v7940_v7 = vld [vmem:[%s8986_s25 + $0xbe4] ss:$16 sps:$4 sm:$0xff]   ;;  %v7935_v8 = vld [vmem:[%s8986_s25 + $0x9e0] ss:$16 sps:$4 sm:$0xff]  }
  0x82   : > { %5356 = vmatpush2.bf16.msra.mxu0 %v7862_v9  ;;  %v7938_v9 = vld [vmem:[%s8986_s25 + $0xbe0] ss:$16 sps:$4 sm:$0xff]  }
  0x83   : > { %5397 = vmatpush2.bf16.msra.mxu1 %v7865_v10  ;;  %5357 = vmatprep.subr.bf16.mxu0 %v7870_v11  ;;  %v7943_v10 = vld [vmem:[%s8986_s25 + $0x9c4] ss:$16 sps:$4 sm:$0xff]  }
  0x84   : > { %5398 = vmatprep.subr.bf16.mxu1 %v7873_v12  ;;  %v7946_v11 = vld [vmem:[%s8986_s25 + $0xbc4] ss:$16 sps:$4 sm:$0xff]   ;;  %v7941_v12 = vld [vmem:[%s8986_s25 + $0x9c0] ss:$16 sps:$4 sm:$0xff]  }
  0x86   : > { %5358 = vmatpush2.bf16.msra.mxu0 %v7868_v14  ;;  %v7944_v14 = vld [vmem:[%s8986_s25 + $0xbc0] ss:$16 sps:$4 sm:$0xff]  }
  0x87   : > { %5399 = vmatpush2.bf16.msra.mxu1 %v7871_v15  ;;  %5359 = vmatprep.subr.bf16.mxu0 %v7876_v16  ;;  %v7949_v15 = vld [vmem:[%s8986_s25 + $0x9a4] ss:$16 sps:$4 sm:$0xff]  }
  0x88   : > { %5400 = vmatprep.subr.bf16.mxu1 %v7879_v19  ;;  %v7952_v16 = vld [vmem:[%s8986_s25 + $0xba4] ss:$16 sps:$4 sm:$0xff]   ;;  %v7947_v19 = vld [vmem:[%s8986_s25 + $0x9a0] ss:$16 sps:$4 sm:$0xff]  }
  0x8a   : > { %5360 = vmatpush2.bf16.msra.mxu0 %v7874_v20  ;;  %v7950_v20 = vld [vmem:[%s8986_s25 + $0xba0] ss:$16 sps:$4 sm:$0xff]  }
  0x8b   : > { %5401 = vmatpush2.bf16.msra.mxu1 %v7877_v21  ;;  %5361 = vmatprep.subr.bf16.mxu0 %v7882_v22  ;;  %v7955_v21 = vld [vmem:[%s8986_s25 + $0x984] ss:$16 sps:$4 sm:$0xff]  }
  0x8c   : > { %5402 = vmatprep.subr.bf16.mxu1 %v7885_v24  ;;  %v7958_v22 = vld [vmem:[%s8986_s25 + $0xb84] ss:$16 sps:$4 sm:$0xff]   ;;  %v7953_v24 = vld [vmem:[%s8986_s25 + $0x980] ss:$16 sps:$4 sm:$0xff]  }
  0x8e   : > { %5362 = vmatpush2.bf16.msra.mxu0 %v7880_v25  ;;  %v7956_v25 = vld [vmem:[%s8986_s25 + $0xb80] ss:$16 sps:$4 sm:$0xff]  }
  0x8f   : > { %5403 = vmatpush2.bf16.msra.mxu1 %v7883_v27  ;;  %5413 = vmatprep.subr.bf16.mxu0 %v7889_v28  ;;  %v7961_v27 = vld [vmem:[%s8986_s25 + $0x964] ss:$16 sps:$4 sm:$0xff]  }
  0x90   : > { %5454 = vmatprep.subr.bf16.mxu1 %v7892_v29  ;;  %v7964_v28 = vld [vmem:[%s8986_s25 + $0xb64] ss:$16 sps:$4 sm:$0xff]   ;;  %v7959_v29 = vld [vmem:[%s8986_s25 + $0x960] ss:$16 sps:$4 sm:$0xff]  }
  0x91   : > { %5364 = vmatmul.mubr.bf16.vlgmr.msra.gmra.mxu0 %v9162_v26 }
  0x92   : > { %5405 = vmatmul.mubr.bf16.vlgmr.msra.gmra.mxu1 %v9169_v30  ;;  %5414 = vmatpush1.bf16.msra.mxu0 %v7887_v31  ;;  %v7962_v31 = vld [vmem:[%s8986_s25 + $0xb60] ss:$16 sps:$4 sm:$0xff]  }
  0x93   : > { %5455 = vmatpush1.bf16.msra.mxu1 %v7890_v6  ;;  %5415 = vmatprep.subr.bf16.mxu0 %v7895_v33  ;;  %v7967_v6 = vld [vmem:[%s8986_s25 + $0x944] ss:$16 sps:$4 sm:$0xff]  }
  0x94   : > { %5456 = vmatprep.subr.bf16.mxu1 %v7898_v34  ;;  %5445 = vmatprep.mubr.bf16.mxu0 %v9191_v41  ;;  %v7970_v33 = vld [vmem:[%s8986_s25 + $0xb44] ss:$16 sps:$4 sm:$0xff]   ;;  %v1189_v34 = vcombine.high %v9174_v32, %v9174_v32  ;;  %v7974_v32 = vld [vmem:[%s8986_s25 + $0xb20] ss:$16 sps:$4 sm:$0xff]  }
  0x95   : > { %5486 = vmatprep.mubr.bf16.mxu1 %v9196_v43 }
  0x96   : > { %5416 = vmatpush1.bf16.msra.mxu0 %v7893_v37  ;;  %v7968_v37 = vld [vmem:[%s8986_s25 + $0xb40] ss:$16 sps:$4 sm:$0xff]  }
  0x97   : > { %5457 = vmatpush1.bf16.msra.mxu1 %v7896_v38  ;;  %5417 = vmatprep.subr.bf16.mxu0 %v7901_v39  ;;  %v7973_v38 = vld [vmem:[%s8986_s25 + $0x924] ss:$16 sps:$4 sm:$0xff]  }
  0x98   : > { %5458 = vmatprep.subr.bf16.mxu1 %v7904_v40  ;;  %v7976_v39 = vld [vmem:[%s8986_s25 + $0xb24] ss:$16 sps:$4 sm:$0xff]   ;;  %v9250_v40 = vrot.slane %v1189_v34, %v9041_v49  ;;  %v8034_v34 = vld [vmem:[%s8986_s25 + $0xfe0] ss:$16 sps:$4 sm:$0xff]  }
  0x9a   : > { %5418 = vmatpush1.bf16.msra.mxu0 %v7899_v44  ;;  %v7971_v44 = vld [vmem:[%s8986_s25 + $0x920] ss:$16 sps:$4 sm:$0xff]  }
  0x9b   : > { %5459 = vmatpush1.bf16.msra.mxu1 %v7902_v45  ;;  %5419 = vmatprep.subr.bf16.mxu0 %v7907_v46  ;;  %v7979_v45 = vld [vmem:[%s8986_s25 + $0x904] ss:$16 sps:$4 sm:$0xff]  }
  0x9c   : > { %5460 = vmatprep.subr.bf16.mxu1 %v7910_v47  ;;  %v7982_v46 = vld [vmem:[%s8986_s25 + $0xb04] ss:$16 sps:$4 sm:$0xff]   ;;  %v1205_v47 = vcombine.high %v9250_v40, %v9250_v40 }
  0x9e   : > { %5420 = vmatpush1.bf16.msra.mxu0 %v7905_v48  ;;  %v7977_v48 = vld [vmem:[%s8986_s25 + $0x900] ss:$16 sps:$4 sm:$0xff]  }
  0x9f   : > { %5461 = vmatpush1.bf16.msra.mxu1 %v7908_v50  ;;  %5421 = vmatprep.subr.bf16.mxu0 %v7913_v51  ;;  %v9261_v50 = vrot.slane %v9180_v35, %v9041_v49  ;;  %v7980_v51 = vld [vmem:[%s8986_s25 + $0xb00] ss:$16 sps:$4 sm:$0xff]  }
  0xa0   : > { %5462 = vmatprep.subr.bf16.mxu1 %v7916_v52  ;;  %v7985_v52 = vld [vmem:[%s8986_s25 + $0xce4] ss:$16 sps:$4 sm:$0xff]   ;;  %v7983_v35 = vld [vmem:[%s8986_s25 + $0xce0] ss:$16 sps:$4 sm:$0xff]  }
  0xa2   : > { %5422 = vmatpush1.bf16.msra.mxu0 %v7911_v53  ;;  %v7988_v53 = vld [vmem:[%s8986_s25 + $0xee4] ss:$16 sps:$4 sm:$0xff]  }
  0xa3   : > { %5463 = vmatpush1.bf16.msra.mxu1 %v7914_v54  ;;  %5423 = vmatprep.subr.bf16.mxu0 %v7919_v55  ;;  %v9267_v54 = vrot.slane %v1205_v47, %v9041_v49  ;;  %v9271_v55 = vcombine.high %v9261_v50, %v9261_v50  ;;  %v8051_v47 = vld [vmem:[%s8986_s25 + $0xd84] ss:$16 sps:$4 sm:$0xff]  }
  0xa4   : > { %5464 = vmatprep.subr.bf16.mxu1 %v7922_v56  ;;  %v7986_v56 = vld [vmem:[%s8986_s25 + $0xee0] ss:$16 sps:$4 sm:$0xff]  }
  0xa6   : > { %5424 = vmatpush1.bf16.msra.mxu0 %v7917_v57  ;;  %v7991_v57 = vld [vmem:[%s8986_s25 + $0xcc4] ss:$16 sps:$4 sm:$0xff]  }
  0xa7   : > { %5465 = vmatpush1.bf16.msra.mxu1 %v7920_v58  ;;  %5425 = vmatprep.subr.bf16.mxu0 %v7925_v59  ;;  %v7994_v58 = vld [vmem:[%s8986_s25 + $0xec4] ss:$16 sps:$4 sm:$0xff]   ;;  %v9279_v59 = vcombine.high %v9267_v54, %v9267_v54 }
  0xa8   : > { %5466 = vmatprep.subr.bf16.mxu1 %v7928_v61  ;;  %v7989_v61 = vld [vmem:[%s8986_s25 + $0xcc0] ss:$16 sps:$4 sm:$0xff]  }
  0xaa   : > { %5426 = vmatpush1.bf16.msra.mxu0 %v7923_v62  ;;  %v7992_v62 = vld [vmem:[%s8986_s25 + $0xec0] ss:$16 sps:$4 sm:$0xff]  }
  0xab   : > { %5467 = vmatpush1.bf16.msra.mxu1 %v7926_v63  ;;  %5427 = vmatprep.subr.bf16.mxu0 %v7931_v1  ;;  %v7997_v63 = vld [vmem:[%s8986_s25 + $0xca4] ss:$16 sps:$4 sm:$0xff]  }
  0xac   : > { %5468 = vmatprep.subr.bf16.mxu1 %v7934_v2  ;;  %v8000_v1 = vld [vmem:[%s8986_s25 + $0xea4] ss:$16 sps:$4 sm:$0xff]   ;;  %v7995_v2 = vld [vmem:[%s8986_s25 + $0xca0] ss:$16 sps:$4 sm:$0xff]  }
  0xae   : > { %5428 = vmatpush1.bf16.msra.mxu0 %v7929_v3  ;;  %v7998_v3 = vld [vmem:[%s8986_s25 + $0xea0] ss:$16 sps:$4 sm:$0xff]  }
  0xaf   : > { %5469 = vmatpush1.bf16.msra.mxu1 %v7932_v4  ;;  %5429 = vmatprep.subr.bf16.mxu0 %v7937_v5  ;;  %v8003_v4 = vld [vmem:[%s8986_s25 + $0xc84] ss:$16 sps:$4 sm:$0xff]  }
  0xb0   : > { %5470 = vmatprep.subr.bf16.mxu1 %v7940_v7  ;;  %v8006_v5 = vld [vmem:[%s8986_s25 + $0xe84] ss:$16 sps:$4 sm:$0xff]   ;;  %v8001_v7 = vld [vmem:[%s8986_s25 + $0xc80] ss:$16 sps:$4 sm:$0xff]  }
  0xb2   : > { %5430 = vmatpush2.bf16.msra.mxu0 %v7935_v8  ;;  %v8004_v8 = vld [vmem:[%s8986_s25 + $0xe80] ss:$16 sps:$4 sm:$0xff]  }
  0xb3   : > { %5471 = vmatpush2.bf16.msra.mxu1 %v7938_v9  ;;  %5431 = vmatprep.subr.bf16.mxu0 %v7943_v10  ;;  %v8009_v9 = vld [vmem:[%s8986_s25 + $0xc64] ss:$16 sps:$4 sm:$0xff]  }
  0xb4   : > { %5472 = vmatprep.subr.bf16.mxu1 %v7946_v11  ;;  %v8012_v10 = vld [vmem:[%s8986_s25 + $0xe64] ss:$16 sps:$4 sm:$0xff]   ;;  %v8007_v11 = vld [vmem:[%s8986_s25 + $0xc60] ss:$16 sps:$4 sm:$0xff]  }
  0xb6   : > { %5432 = vmatpush2.bf16.msra.mxu0 %v7941_v12  ;;  %v8010_v12 = vld [vmem:[%s8986_s25 + $0xe60] ss:$16 sps:$4 sm:$0xff]  }
  0xb7   : > { %5473 = vmatpush2.bf16.msra.mxu1 %v7944_v14  ;;  %5433 = vmatprep.subr.bf16.mxu0 %v7949_v15  ;;  %v8015_v14 = vld [vmem:[%s8986_s25 + $0xc44] ss:$16 sps:$4 sm:$0xff]  }
  0xb8   : > { %5474 = vmatprep.subr.bf16.mxu1 %v7952_v16  ;;  %v8018_v15 = vld [vmem:[%s8986_s25 + $0xe44] ss:$16 sps:$4 sm:$0xff]   ;;  %v8013_v16 = vld [vmem:[%s8986_s25 + $0xc40] ss:$16 sps:$4 sm:$0xff]  }
  0xba   : > { %5434 = vmatpush2.bf16.msra.mxu0 %v7947_v19  ;;  %v8016_v19 = vld [vmem:[%s8986_s25 + $0xe40] ss:$16 sps:$4 sm:$0xff]  }
  0xbb   : > { %5475 = vmatpush2.bf16.msra.mxu1 %v7950_v20  ;;  %5435 = vmatprep.subr.bf16.mxu0 %v7955_v21  ;;  %v8021_v20 = vld [vmem:[%s8986_s25 + $0xc24] ss:$16 sps:$4 sm:$0xff]  }
  0xbc   : > { %5476 = vmatprep.subr.bf16.mxu1 %v7958_v22  ;;  %v8024_v21 = vld [vmem:[%s8986_s25 + $0xe24] ss:$16 sps:$4 sm:$0xff]   ;;  %v8019_v22 = vld [vmem:[%s8986_s25 + $0xc20] ss:$16 sps:$4 sm:$0xff]  }
  0xbe   : > { %5436 = vmatpush2.bf16.msra.mxu0 %v7953_v24  ;;  %v8022_v24 = vld [vmem:[%s8986_s25 + $0xe20] ss:$16 sps:$4 sm:$0xff]  }
  0xbf   : > { %5477 = vmatpush2.bf16.msra.mxu1 %v7956_v25  ;;  %5437 = vmatprep.subr.bf16.mxu0 %v7961_v27  ;;  %v8027_v25 = vld [vmem:[%s8986_s25 + $0xc04] ss:$16 sps:$4 sm:$0xff]  }
  0xc0   : > { %5478 = vmatprep.subr.bf16.mxu1 %v7964_v28  ;;  %v8030_v27 = vld [vmem:[%s8986_s25 + $0xe04] ss:$16 sps:$4 sm:$0xff]   ;;  %v8025_v28 = vld [vmem:[%s8986_s25 + $0xc00] ss:$16 sps:$4 sm:$0xff]  }
  0xc2   : > { %5438 = vmatpush2.bf16.msra.mxu0 %v7959_v29  ;;  %v8028_v29 = vld [vmem:[%s8986_s25 + $0xe00] ss:$16 sps:$4 sm:$0xff]  }
  0xc3   : > { %5479 = vmatpush2.bf16.msra.mxu1 %v7962_v31  ;;  %5439 = vmatprep.subr.bf16.mxu0 %v7967_v6  ;;  %v8033_v31 = vld [vmem:[%s8986_s25 + $0xde4] ss:$16 sps:$4 sm:$0xff]  }
  0xc4   : > { %5480 = vmatprep.subr.bf16.mxu1 %v7970_v33  ;;  %v8036_v6 = vld [vmem:[%s8986_s25 + $0xfe4] ss:$16 sps:$4 sm:$0xff]   ;;  %v8031_v33 = vld [vmem:[%s8986_s25 + $0xde0] ss:$16 sps:$4 sm:$0xff]  }
  0xc6   : > { %5440 = vmatpush2.bf16.msra.mxu0 %v7965_v36  ;;  %v8039_v36 = vld [vmem:[%s8986_s25 + $0xdc4] ss:$16 sps:$4 sm:$0xff]  }
  0xc7   : > { %5481 = vmatpush2.bf16.msra.mxu1 %v7968_v37  ;;  %5441 = vmatprep.subr.bf16.mxu0 %v7973_v38  ;;  %v8042_v37 = vld [vmem:[%s8986_s25 + $0xfc4] ss:$16 sps:$4 sm:$0xff]   ;;  %v8037_v38 = vld [vmem:[%s8986_s25 + $0xdc0] ss:$16 sps:$4 sm:$0xff]  }
  0xc8   : > { %5482 = vmatprep.subr.bf16.mxu1 %v7976_v39  ;;  %v8040_v39 = vld [vmem:[%s8986_s25 + $0xfc0] ss:$16 sps:$4 sm:$0xff]  }
  0xca   : > { %5442 = vmatpush2.bf16.msra.mxu0 %v7971_v44  ;;  %v8045_v44 = vld [vmem:[%s8986_s25 + $0xda4] ss:$16 sps:$4 sm:$0xff]  }
  0xcb   : > { %5483 = vmatpush2.bf16.msra.mxu1 %v7974_v32  ;;  %5443 = vmatprep.subr.bf16.mxu0 %v7979_v45  ;;  %v8048_v32 = vld [vmem:[%s8986_s25 + $0xfa4] ss:$16 sps:$4 sm:$0xff]   ;;  %v8043_v45 = vld [vmem:[%s8986_s25 + $0xda0] ss:$16 sps:$4 sm:$0xff]  }
  0xcc   : > { %5484 = vmatprep.subr.bf16.mxu1 %v7982_v46  ;;  %v8046_v46 = vld [vmem:[%s8986_s25 + $0xfa0] ss:$16 sps:$4 sm:$0xff]  }
  0xce   : > { %5444 = vmatpush2.bf16.msra.mxu0 %v7977_v48  ;;  %v8054_v48 = vld [vmem:[%s8986_s25 + $0xf84] ss:$16 sps:$4 sm:$0xff]  }
  0xcf   : > { %5485 = vmatpush2.bf16.msra.mxu1 %v7980_v51  ;;  %5495 = vmatprep.subr.bf16.mxu0 %v7985_v52  ;;  %v8049_v51 = vld [vmem:[%s8986_s25 + $0xd80] ss:$16 sps:$4 sm:$0xff]  }
  0xd0   : > { %5536 = vmatprep.subr.bf16.mxu1 %v7988_v53  ;;  %v8052_v52 = vld [vmem:[%s8986_s25 + $0xf80] ss:$16 sps:$4 sm:$0xff]   ;;  %v8057_v53 = vld [vmem:[%s8986_s25 + $0xd64] ss:$16 sps:$4 sm:$0xff]  }
  0xd1   : > { %5446 = vmatmul.mubr.bf16.vlgmr.msra.gmra.mxu0 %v9261_v50 }
  0xd2   : > { %5487 = vmatmul.mubr.bf16.vlgmr.msra.gmra.mxu1 %v9271_v55  ;;  %5496 = vmatpush1.bf16.msra.mxu0 %v7983_v35  ;;  %v8060_v35 = vld [vmem:[%s8986_s25 + $0xf64] ss:$16 sps:$4 sm:$0xff]  }
  0xd3   : > { %5537 = vmatpush1.bf16.msra.mxu1 %v7986_v56  ;;  %5497 = vmatprep.subr.bf16.mxu0 %v7991_v57  ;;  %v8055_v56 = vld [vmem:[%s8986_s25 + $0xd60] ss:$16 sps:$4 sm:$0xff]  }
  0xd4   : > { %5538 = vmatprep.subr.bf16.mxu1 %v7994_v58  ;;  %5527 = vmatprep.mubr.bf16.mxu0 %v9267_v54  ;;  %v8058_v57 = vld [vmem:[%s8986_s25 + $0xf60] ss:$16 sps:$4 sm:$0xff]   ;;  %v8063_v58 = vld [vmem:[%s8986_s25 + $0xd44] ss:$16 sps:$4 sm:$0xff]  }
  0xd5   : > { %5568 = vmatprep.mubr.bf16.mxu1 %v9279_v59 }
  0xd6   : > { %5498 = vmatpush1.bf16.msra.mxu0 %v7989_v61  ;;  %v8066_v61 = vld [vmem:[%s8986_s25 + $0xf44] ss:$16 sps:$4 sm:$0xff]  }
  0xd7   : > { %5539 = vmatpush1.bf16.msra.mxu1 %v7992_v62  ;;  %5499 = vmatprep.subr.bf16.mxu0 %v7997_v63  ;;  %v8061_v62 = vld [vmem:[%s8986_s25 + $0xd40] ss:$16 sps:$4 sm:$0xff]  }
  0xd8   : > { %5540 = vmatprep.subr.bf16.mxu1 %v8000_v1  ;;  %v8064_v63 = vld [vmem:[%s8986_s25 + $0xf40] ss:$16 sps:$4 sm:$0xff]  }
  0xd9   : > { %v9336_v1 = vld [vmem:[%s9038_s29 + $0x10] sm:$0xff] }
  0xda   : > { %5500 = vmatpush1.bf16.msra.mxu0 %v7995_v2  ;;  %v8069_v2 = vld [vmem:[%s8986_s25 + $0xd24] ss:$16 sps:$4 sm:$0xff]  }
  0xdb   : > { %5541 = vmatpush1.bf16.msra.mxu1 %v7998_v3  ;;  %5501 = vmatprep.subr.bf16.mxu0 %v8003_v4  ;;  %v8072_v3 = vld [vmem:[%s8986_s25 + $0xf24] ss:$16 sps:$4 sm:$0xff]   ;;  %v9343_v4 = vrot.slane %v9336_v1, %v9041_v49 }
  0xdc   : > { %5542 = vmatprep.subr.bf16.mxu1 %v8006_v5  ;;  %v8067_v5 = vld [vmem:[%s8986_s25 + $0xd20] ss:$16 sps:$4 sm:$0xff]  }
  0xde   : > { %5502 = vmatpush1.bf16.msra.mxu0 %v8001_v7  ;;  %v8070_v7 = vld [vmem:[%s8986_s25 + $0xf20] ss:$16 sps:$4 sm:$0xff]  }
  0xdf   : > { %5543 = vmatpush1.bf16.msra.mxu1 %v8004_v8  ;;  %5503 = vmatprep.subr.bf16.mxu0 %v8009_v9  ;;  %v8075_v8 = vld [vmem:[%s8986_s25 + $0xd04] ss:$16 sps:$4 sm:$0xff]  }
  0xe0   : > { %5544 = vmatprep.subr.bf16.mxu1 %v8012_v10  ;;  %v8078_v9 = vld [vmem:[%s8986_s25 + $0xf04] ss:$16 sps:$4 sm:$0xff]   ;;  %v8073_v10 = vld [vmem:[%s8986_s25 + $0xd00] ss:$16 sps:$4 sm:$0xff]  }
  0xe2   : > { %5504 = vmatpush1.bf16.msra.mxu0 %v8007_v11  ;;  %v1253_v11 = vcombine.high %v9343_v4, %v9343_v4 }
  0xe3   : > { %5545 = vmatpush1.bf16.msra.mxu1 %v8010_v12  ;;  %5505 = vmatprep.subr.bf16.mxu0 %v8015_v14  ;;  %v8076_v12 = vld [vmem:[%s8986_s25 + $0xf00] ss:$16 sps:$4 sm:$0xff]  }
  0xe4   : > { %5546 = vmatprep.subr.bf16.mxu1 %v8018_v15  ;;  %v1114_v14 = vld [vmem:[%s9351_s8] sm:$0xf]  ;;  %v9361_v15 = vrot.slane %v9250_v40, %v9041_v49 }
  0xe5   : > { %v8080_v40 = vld [vmem:[%s8986_s25 + $0x10e0] ss:$16 sps:$4 sm:$0xff]  }
  0xe6   : > { %5506 = vmatpush1.bf16.msra.mxu0 %v8013_v16  ;;  %v1118_v16 = vsub.s32 0, %v9028_v42 }
  0xe7   : > { %5547 = vmatpush1.bf16.msra.mxu1 %v8016_v19  ;;  %5507 = vmatprep.subr.bf16.mxu0 %v8021_v20  ;;  %v8082_v19 = vld [vmem:[%s8986_s25 + $0x10e4] ss:$16 sps:$4 sm:$0xff]  }
  0xe8   : > { %5548 = vmatprep.subr.bf16.mxu1 %v8024_v21  ;;  %v8085_v20 = vld [vmem:[%s8986_s25 + $0x12e4] ss:$16 sps:$4 sm:$0xff]   ;;  %v1122_v21 = vsub.s32 1, %v9028_v42 }
  0xea   : > { %5508 = vmatpush1.bf16.msra.mxu0 %v8019_v22  ;;  %v9368_v22 = vrot.slane %v1253_v11, %v9041_v49  ;;  %v8113_v11 = vld [vmem:[%s8986_s25 + $0x1240] ss:$16 sps:$4 sm:$0xff]  }
  0xeb   : > { %5549 = vmatpush1.bf16.msra.mxu1 %v8022_v24  ;;  %5509 = vmatprep.subr.bf16.mxu0 %v8027_v25  ;;  %v9372_v24 = vcombine.high %v9361_v15, %v9361_v15  ;;  %v8083_v25 = vld [vmem:[%s8986_s25 + $0x12e0] ss:$16 sps:$4 sm:$0xff]  }
  0xec   : > { %5550 = vmatprep.subr.bf16.mxu1 %v8030_v27  ;;  %v1119_v27 = vrot.slane %v1114_v14, %v1118_v16  ;;  %v8116_v16 = vld [vmem:[%s8986_s25 + $0x1020] ss:$16 sps:$4 sm:$0xff]  }
  0xee   : > { %5510 = vmatpush1.bf16.msra.mxu0 %v8025_v28  ;;  %v8088_v28 = vld [vmem:[%s8986_s25 + $0x10c4] ss:$16 sps:$4 sm:$0xff]  }
  0xef   : > { %5551 = vmatpush1.bf16.msra.mxu1 %v8028_v29  ;;  %5511 = vmatprep.subr.bf16.mxu0 %v8033_v31  ;;  %v8091_v29 = vld [vmem:[%s8986_s25 + $0x12c4] ss:$16 sps:$4 sm:$0xff]   ;;  %v1123_v31 = vrot.slane %v1114_v14, %v1122_v21 }
  0xf0   : > { %5552 = vmatprep.subr.bf16.mxu1 %v8036_v6  ;;  %v9380_v6 = vcombine.high %v9368_v22, %v9368_v22  ;;  %v8121_v14 = vld [vmem:[%s8986_s25 + $0x1224] ss:$16 sps:$4 sm:$0xff]  }
  0xf1   : > { %v8127_v21 = vld [vmem:[%s8986_s25 + $0x1204] ss:$16 sps:$4 sm:$0xff]  }
  0xf2   : > { %5512 = vmatpush2.bf16.msra.mxu0 %v8031_v33 }
  0xf3   : > { %5553 = vmatpush2.bf16.msra.mxu1 %v8034_v34  ;;  %5513 = vmatprep.subr.bf16.mxu0 %v8039_v36  ;;  %v8086_v36 = vld [vmem:[%s8986_s25 + $0x10c0] ss:$16 sps:$4 sm:$0xff]  }
  0xf4   : > { %5554 = vmatprep.subr.bf16.mxu1 %v8042_v37  ;;  %v8089_v37 = vld [vmem:[%s8986_s25 + $0x12c0] ss:$16 sps:$4 sm:$0xff]  }
  0xf6   : > { %5514 = vmatpush2.bf16.msra.mxu0 %v8037_v38 }
  0xf7   : > { %5555 = vmatpush2.bf16.msra.mxu1 %v8040_v39  ;;  %5515 = vmatprep.subr.bf16.mxu0 %v8045_v44 }
  0xf8   : > { %5556 = vmatprep.subr.bf16.mxu1 %v8048_v32  ;;  %v8094_v32 = vld [vmem:[%s8986_s25 + $0x10a4] ss:$16 sps:$4 sm:$0xff]  }
  0xfa   : > { %5516 = vmatpush2.bf16.msra.mxu0 %v8043_v45  ;;  %v8097_v45 = vld [vmem:[%s8986_s25 + $0x12a4] ss:$16 sps:$4 sm:$0xff]  }
  0xfb   : > { %5557 = vmatpush2.bf16.msra.mxu1 %v8046_v46  ;;  %5517 = vmatprep.subr.bf16.mxu0 %v8051_v47 }
  0xfc   : > { %5558 = vmatprep.subr.bf16.mxu1 %v8054_v48  ;;  %v8092_v48 = vld [vmem:[%s8986_s25 + $0x10a0] ss:$16 sps:$4 sm:$0xff]  }
  0xfe   : > { %5518 = vmatpush2.bf16.msra.mxu0 %v8049_v51  ;;  %v8095_v51 = vld [vmem:[%s8986_s25 + $0x12a0] ss:$16 sps:$4 sm:$0xff]  }
  0xff   : > { %5559 = vmatpush2.bf16.msra.mxu1 %v8052_v52  ;;  %5519 = vmatprep.subr.bf16.mxu0 %v8057_v53 }
 0x100   : > { %5560 = vmatprep.subr.bf16.mxu1 %v8060_v35 }
 0x102   : > { %5520 = vmatpush2.bf16.msra.mxu0 %v8055_v56 }
 0x103   : > { %5561 = vmatpush2.bf16.msra.mxu1 %v8058_v57  ;;  %5521 = vmatprep.subr.bf16.mxu0 %v8063_v58  ;;  %v8100_v58 = vld [vmem:[%s8986_s25 + $0x1084] ss:$16 sps:$4 sm:$0xff]  }
 0x104   : > { %5562 = vmatprep.subr.bf16.mxu1 %v8066_v61  ;;  %v8103_v61 = vld [vmem:[%s8986_s25 + $0x1284] ss:$16 sps:$4 sm:$0xff]  }
 0x106   : > { %5522 = vmatpush2.bf16.msra.mxu0 %v8061_v62  ;;  %v8098_v62 = vld [vmem:[%s8986_s25 + $0x1080] ss:$16 sps:$4 sm:$0xff]  }
 0x107   : > { %5563 = vmatpush2.bf16.msra.mxu1 %v8064_v63  ;;  %5523 = vmatprep.subr.bf16.mxu0 %v8069_v2  ;;  %v8101_v63 = vld [vmem:[%s8986_s25 + $0x1280] ss:$16 sps:$4 sm:$0xff]   ;;  %v8106_v2 = vld [vmem:[%s8986_s25 + $0x1064] ss:$16 sps:$4 sm:$0xff]  }
 0x108   : > { %5564 = vmatprep.subr.bf16.mxu1 %v8072_v3  ;;  %v8109_v3 = vld [vmem:[%s8986_s25 + $0x1264] ss:$16 sps:$4 sm:$0xff]  }
 0x10a   : > { %5524 = vmatpush2.bf16.msra.mxu0 %v8067_v5  ;;  %v8104_v5 = vld [vmem:[%s8986_s25 + $0x1060] ss:$16 sps:$4 sm:$0xff]  }
 0x10b   : > { %5565 = vmatpush2.bf16.msra.mxu1 %v8070_v7  ;;  %5525 = vmatprep.subr.bf16.mxu0 %v8075_v8  ;;  %v8107_v7 = vld [vmem:[%s8986_s25 + $0x1260] ss:$16 sps:$4 sm:$0xff]   ;;  %v8112_v8 = vld [vmem:[%s8986_s25 + $0x1044] ss:$16 sps:$4 sm:$0xff]  }
 0x10c   : > { %5566 = vmatprep.subr.bf16.mxu1 %v8078_v9  ;;  %v8115_v9 = vld [vmem:[%s8986_s25 + $0x1244] ss:$16 sps:$4 sm:$0xff]  }
 0x10e   : > { %5526 = vmatpush2.bf16.msra.mxu0 %v8073_v10  ;;  %v8110_v10 = vld [vmem:[%s8986_s25 + $0x1040] ss:$16 sps:$4 sm:$0xff]  }
 0x10f   : > { %5567 = vmatpush2.bf16.msra.mxu1 %v8076_v12  ;;  %5577 = vmatprep.subr.bf16.mxu0 %v8082_v19  ;;  %v8118_v12 = vld [vmem:[%s8986_s25 + $0x1024] ss:$16 sps:$4 sm:$0xff]   ;;  %v8119_v19 = vld [vmem:[%s8986_s25 + $0x1220] ss:$16 sps:$4 sm:$0xff]  }
 0x110   : > { %5618 = vmatprep.subr.bf16.mxu1 %v8085_v20  ;;  %v8124_v20 = vld [vmem:[%s8986_s25 + $0x1004] ss:$16 sps:$4 sm:$0xff]  }
 0x111   : > { %v5283_v33 = vpop.f32.mrf.mxu0  ;;  %5528 = vmatmul.mubr.bf16.vlgmr.msra.gmra.mxu0 %v9361_v15 }
 0x112   : > { %v5324_v34 = vpop.f32.mrf.mxu1  ;;  %5569 = vmatmul.mubr.bf16.vlgmr.msra.gmra.mxu1 %v9372_v24  ;;  %v5284_v38 = vadd.f32 %v5283_v33, %v1119_v27  ;;  %5578 = vmatpush1.bf16.msra.mxu0 %v8080_v40  ;;  %v8122_v40 = vld [vmem:[%s8986_s25 + $0x1000] ss:$16 sps:$4 sm:$0xff]   ;;  %v8130_v27 = vld [vmem:[%s8986_s25 + $0x11e4] ss:$16 sps:$4 sm:$0xff]  }
 0x113   : > { %5619 = vmatpush1.bf16.msra.mxu1 %v8083_v25  ;;  %v5285_v39 = vpop.f32.mrf.mxu0  ;;  %5579 = vmatprep.subr.bf16.mxu0 %v8088_v28  ;;  %v8125_v25 = vld [vmem:[%s8986_s25 + $0x1200] ss:$16 sps:$4 sm:$0xff]   ;;  %v8133_v28 = vld [vmem:[%s8986_s25 + $0x13e4] ss:$16 sps:$4 sm:$0xff]  }
 0x114   : > { %v5326_v44 = vpop.f32.mrf.mxu1  ;;  %5620 = vmatprep.subr.bf16.mxu1 %v8091_v29  ;;  %v9388_v46 = vadd.f32 %v5324_v34, %v5284_v38  ;;  %v5286_v47 = vadd.f32 %v5285_v39, %v1123_v31  ;;  %5609 = vmatprep.mubr.bf16.mxu0 %v9368_v22  ;;  %v8128_v29 = vld [vmem:[%s8986_s25 + $0x11e0] ss:$16 sps:$4 sm:$0xff]   ;;  %v8136_v33 = vld [vmem:[%s8986_s25 + $0x11c4] ss:$16 sps:$4 sm:$0xff]  }
 0x115   : > { %5650 = vmatprep.mubr.bf16.mxu1 %v9380_v6  ;;  %v5287_v52 = vpop.f32.mrf.mxu0  ;;  %v8131_v31 = vld [vmem:[%s8986_s25 + $0x13e0] ss:$16 sps:$4 sm:$0xff]   ;;  %v8139_v34 = vld [vmem:[%s8986_s25 + $0x13c4] ss:$16 sps:$4 sm:$0xff]  }
 0x116   : > { %v5328_v53 = vpop.f32.mrf.mxu1  ;;  %v9394_v35 = vadd.f32 %v5326_v44, %v5286_v47  ;;  %5580 = vmatpush1.bf16.msra.mxu0 %v8086_v36  ;;  %v8134_v36 = vld [vmem:[%s8986_s25 + $0x11c0] ss:$16 sps:$4 sm:$0xff]   ;;  %v8142_v38 = vld [vmem:[%s8986_s25 + $0x11a4] ss:$16 sps:$4 sm:$0xff]  }
 0x117   : > { %5621 = vmatpush1.bf16.msra.mxu1 %v8089_v37  ;;  %v5288_v56 = vpop.f32.mrf.mxu0  ;;  %5581 = vmatprep.subr.bf16.mxu0 %v8094_v32  ;;  %v8137_v37 = vld [vmem:[%s8986_s25 + $0x13c0] ss:$16 sps:$4 sm:$0xff]   ;;  %v8145_v39 = vld [vmem:[%s8986_s25 + $0x13a4] ss:$16 sps:$4 sm:$0xff]  }
 0x118   : > { %v5329_v57 = vpop.f32.mrf.mxu1  ;;  %5622 = vmatprep.subr.bf16.mxu1 %v8097_v45  ;;  %v8140_v44 = vld [vmem:[%s8986_s25 + $0x11a0] ss:$16 sps:$4 sm:$0xff]   ;;  %v8148_v45 = vld [vmem:[%s8986_s25 + $0x1184] ss:$16 sps:$4 sm:$0xff]  }
 0x119   : > { %v8143_v32 = vld [vmem:[%s8986_s25 + $0x13a0] ss:$16 sps:$4 sm:$0xff]   ;;  %v8151_v47 = vld [vmem:[%s8986_s25 + $0x1384] ss:$16 sps:$4 sm:$0xff]  }
 0x11a   : > { %5582 = vmatpush1.bf16.msra.mxu0 %v8092_v48  ;;  %v8146_v48 = vld [vmem:[%s8986_s25 + $0x1180] ss:$16 sps:$4 sm:$0xff]   ;;  %v8154_v52 = vld [vmem:[%s8986_s25 + $0x1164] ss:$16 sps:$4 sm:$0xff]  }
 0x11b   : > { %5623 = vmatpush1.bf16.msra.mxu1 %v8095_v51  ;;  %5583 = vmatprep.subr.bf16.mxu0 %v8100_v58  ;;  %v8149_v51 = vld [vmem:[%s8986_s25 + $0x1380] ss:$16 sps:$4 sm:$0xff]   ;;  %v8157_v53 = vld [vmem:[%s8986_s25 + $0x1364] ss:$16 sps:$4 sm:$0xff]  }
 0x11c   : > { %5624 = vmatprep.subr.bf16.mxu1 %v8103_v61  ;;  %v8152_v56 = vld [vmem:[%s8986_s25 + $0x1160] ss:$16 sps:$4 sm:$0xff]   ;;  %v8160_v58 = vld [vmem:[%s8986_s25 + $0x1144] ss:$16 sps:$4 sm:$0xff]  }
 0x11d   : > { %v8155_v57 = vld [vmem:[%s8986_s25 + $0x1360] ss:$16 sps:$4 sm:$0xff]   ;;  %v8163_v61 = vld [vmem:[%s8986_s25 + $0x1344] ss:$16 sps:$4 sm:$0xff]  }
 0x11e   : > { %5584 = vmatpush1.bf16.msra.mxu0 %v8098_v62  ;;  %v1238_v62 = vcombine.high %v9336_v1, %v9336_v1  ;;  %v8164_v1 = vld [vmem:[%s8986_s25 + $0x1120] ss:$16 sps:$4 sm:$0xff]  }
 0x11f   : > { %5625 = vmatpush1.bf16.msra.mxu1 %v8101_v63  ;;  %5585 = vmatprep.subr.bf16.mxu0 %v8106_v2  ;;  %v8158_v63 = vld [vmem:[%s8986_s25 + $0x1140] ss:$16 sps:$4 sm:$0xff]  }
 0x120   : > { %5626 = vmatprep.subr.bf16.mxu1 %v8109_v3  ;;  %v8161_v2 = vld [vmem:[%s8986_s25 + $0x1340] ss:$16 sps:$4 sm:$0xff]   ;;  %v8166_v3 = vld [vmem:[%s8986_s25 + $0x1124] ss:$16 sps:$4 sm:$0xff]  }
 0x122   : > { %5586 = vmatpush1.bf16.msra.mxu0 %v8104_v5  ;;  %v8169_v5 = vld [vmem:[%s8986_s25 + $0x1324] ss:$16 sps:$4 sm:$0xff]  }
 0x123   : > { %5627 = vmatpush1.bf16.msra.mxu1 %v8107_v7  ;;  %5587 = vmatprep.subr.bf16.mxu0 %v8112_v8  ;;  %v9445_v7 = vrot.slane %v1238_v62, %v9041_v49  ;;  %v8167_v8 = vld [vmem:[%s8986_s25 + $0x1320] ss:$16 sps:$4 sm:$0xff]  }
 0x124   : > { %5628 = vmatprep.subr.bf16.mxu1 %v8115_v9  ;;  %v8172_v9 = vld [vmem:[%s8986_s25 + $0x1104] ss:$16 sps:$4 sm:$0xff]   ;;  %v8197_v62 = vld [vmem:[%s8986_s25 + $0x1680] ss:$16 sps:$4 sm:$0xff]  }
 0x126   : > { %5588 = vmatpush1.bf16.msra.mxu0 %v8110_v10  ;;  %v8175_v10 = vld [vmem:[%s8986_s25 + $0x1304] ss:$16 sps:$4 sm:$0xff]  }
 0x127   : > { %5629 = vmatpush1.bf16.msra.mxu1 %v8113_v11  ;;  %5589 = vmatprep.subr.bf16.mxu0 %v8118_v12  ;;  %v1254_v11 = vcombine.high %v9445_v7, %v9445_v7  ;;  %v9455_v12 = vrot.slane %v9343_v4, %v9041_v49 }
 0x128   : > { %5630 = vmatprep.subr.bf16.mxu1 %v8121_v14  ;;  %v8170_v14 = vld [vmem:[%s8986_s25 + $0x1100] ss:$16 sps:$4 sm:$0xff]  }
 0x129   : > { %v9468_v4 = vcombine.high %v9455_v12, %v9455_v12 }
 0x12a   : > { %5590 = vmatpush1.bf16.msra.mxu0 %v8116_v16  ;;  %v8173_v16 = vld [vmem:[%s8986_s25 + $0x1300] ss:$16 sps:$4 sm:$0xff]  }
 0x12b   : > { %5631 = vmatpush1.bf16.msra.mxu1 %v8119_v19  ;;  %5591 = vmatprep.subr.bf16.mxu0 %v8124_v20  ;;  %v8178_v19 = vld [vmem:[%s8986_s25 + $0x14e4] ss:$16 sps:$4 sm:$0xff]  }
 0x12c   : > { %5632 = vmatprep.subr.bf16.mxu1 %v8127_v21  ;;  %v8181_v20 = vld [vmem:[%s8986_s25 + $0x16e4] ss:$16 sps:$4 sm:$0xff]   ;;  %v8176_v21 = vld [vmem:[%s8986_s25 + $0x14e0] ss:$16 sps:$4 sm:$0xff]  }
 0x12e   : > { %5592 = vmatpush1.bf16.msra.mxu0 %v8122_v40  ;;  %v8179_v40 = vld [vmem:[%s8986_s25 + $0x16e0] ss:$16 sps:$4 sm:$0xff]  }
 0x12f   : > { %5633 = vmatpush1.bf16.msra.mxu1 %v8125_v25  ;;  %5593 = vmatprep.subr.bf16.mxu0 %v8130_v27  ;;  %v9464_v25 = vrot.slane %v1254_v11, %v9041_v49  ;;  %v8184_v27 = vld [vmem:[%s8986_s25 + $0x14c4] ss:$16 sps:$4 sm:$0xff]  }
 0x130   : > { %5634 = vmatprep.subr.bf16.mxu1 %v8133_v28  ;;  %v8187_v28 = vld [vmem:[%s8986_s25 + $0x16c4] ss:$16 sps:$4 sm:$0xff]  }
 0x131   : > { %v8214_v11 = vld [vmem:[%s8986_s25 + $0x1424] ss:$16 sps:$4 sm:$0xff]  }
 0x132   : > { %5594 = vmatpush2.bf16.msra.mxu0 %v8128_v29  ;;  %v8182_v29 = vld [vmem:[%s8986_s25 + $0x14c0] ss:$16 sps:$4 sm:$0xff]  }
 0x133   : > { %5635 = vmatpush2.bf16.msra.mxu1 %v8131_v31  ;;  %5595 = vmatprep.subr.bf16.mxu0 %v8136_v33  ;;  %v8185_v31 = vld [vmem:[%s8986_s25 + $0x16c0] ss:$16 sps:$4 sm:$0xff]   ;;  %v9476_v33 = vcombine.high %v9464_v25, %v9464_v25 }
 0x134   : > { %5636 = vmatprep.subr.bf16.mxu1 %v8139_v34 }
 0x136   : > { %5596 = vmatpush2.bf16.msra.mxu0 %v8134_v36 }
 0x137   : > { %5637 = vmatpush2.bf16.msra.mxu1 %v8137_v37  ;;  %5597 = vmatprep.subr.bf16.mxu0 %v8142_v38 }
 0x138   : > { %5638 = vmatprep.subr.bf16.mxu1 %v8145_v39 }
 0x13a   : > { %5598 = vmatpush2.bf16.msra.mxu0 %v8140_v44  ;;  %v8190_v44 = vld [vmem:[%s8986_s25 + $0x14a4] ss:$16 sps:$4 sm:$0xff]  }
 0x13b   : > { %5639 = vmatpush2.bf16.msra.mxu1 %v8143_v32  ;;  %5599 = vmatprep.subr.bf16.mxu0 %v8148_v45  ;;  %v8193_v32 = vld [vmem:[%s8986_s25 + $0x16a4] ss:$16 sps:$4 sm:$0xff]  }
 0x13c   : > { %5640 = vmatprep.subr.bf16.mxu1 %v8151_v47 }
 0x13e   : > { %5600 = vmatpush2.bf16.msra.mxu0 %v8146_v48  ;;  %v8188_v48 = vld [vmem:[%s8986_s25 + $0x14a0] ss:$16 sps:$4 sm:$0xff]  }
 0x13f   : > { %5641 = vmatpush2.bf16.msra.mxu1 %v8149_v51  ;;  %5601 = vmatprep.subr.bf16.mxu0 %v8154_v52  ;;  %v8191_v51 = vld [vmem:[%s8986_s25 + $0x16a0] ss:$16 sps:$4 sm:$0xff]  }
 0x140   : > { %5642 = vmatprep.subr.bf16.mxu1 %v8157_v53 }
 0x142   : > { %5602 = vmatpush2.bf16.msra.mxu0 %v8152_v56 }
 0x143   : > { %5643 = vmatpush2.bf16.msra.mxu1 %v8155_v57  ;;  %5603 = vmatprep.subr.bf16.mxu0 %v8160_v58  ;;  %v8196_v57 = vld [vmem:[%s8986_s25 + $0x1484] ss:$16 sps:$4 sm:$0xff]  }
 0x144   : > { %5644 = vmatprep.subr.bf16.mxu1 %v8163_v61  ;;  %v8199_v58 = vld [vmem:[%s8986_s25 + $0x1684] ss:$16 sps:$4 sm:$0xff]   ;;  %v8194_v61 = vld [vmem:[%s8986_s25 + $0x1480] ss:$16 sps:$4 sm:$0xff]  }
 0x146   : > { %5604 = vmatpush2.bf16.msra.mxu0 %v8158_v63  ;;  %v8202_v63 = vld [vmem:[%s8986_s25 + $0x1464] ss:$16 sps:$4 sm:$0xff]  }
 0x147   : > { %5645 = vmatpush2.bf16.msra.mxu1 %v8161_v2  ;;  %5605 = vmatprep.subr.bf16.mxu0 %v8166_v3  ;;  %v8205_v2 = vld [vmem:[%s8986_s25 + $0x1664] ss:$16 sps:$4 sm:$0xff]   ;;  %v8200_v3 = vld [vmem:[%s8986_s25 + $0x1460] ss:$16 sps:$4 sm:$0xff]  }
 0x148   : > { %5646 = vmatprep.subr.bf16.mxu1 %v8169_v5  ;;  %v8203_v5 = vld [vmem:[%s8986_s25 + $0x1660] ss:$16 sps:$4 sm:$0xff]  }
 0x14a   : > { %5606 = vmatpush2.bf16.msra.mxu0 %v8164_v1  ;;  %v8208_v1 = vld [vmem:[%s8986_s25 + $0x1444] ss:$16 sps:$4 sm:$0xff]  }
 0x14b   : > { %5647 = vmatpush2.bf16.msra.mxu1 %v8167_v8  ;;  %5607 = vmatprep.subr.bf16.mxu0 %v8172_v9  ;;  %v8211_v8 = vld [vmem:[%s8986_s25 + $0x1644] ss:$16 sps:$4 sm:$0xff]   ;;  %v8206_v9 = vld [vmem:[%s8986_s25 + $0x1440] ss:$16 sps:$4 sm:$0xff]  }
 0x14c   : > { %5648 = vmatprep.subr.bf16.mxu1 %v8175_v10  ;;  %v8209_v10 = vld [vmem:[%s8986_s25 + $0x1640] ss:$16 sps:$4 sm:$0xff]  }
 0x14e   : > { %5608 = vmatpush2.bf16.msra.mxu0 %v8170_v14  ;;  %v8217_v14 = vld [vmem:[%s8986_s25 + $0x1624] ss:$16 sps:$4 sm:$0xff]  }
 0x14f   : > { %5649 = vmatpush2.bf16.msra.mxu1 %v8173_v16  ;;  %5659 = vmatprep.subr.bf16.mxu0 %v8178_v19  ;;  %v8212_v16 = vld [vmem:[%s8986_s25 + $0x1420] ss:$16 sps:$4 sm:$0xff]  }
 0x150   : > { %5700 = vmatprep.subr.bf16.mxu1 %v8181_v20  ;;  %v8215_v19 = vld [vmem:[%s8986_s25 + $0x1620] ss:$16 sps:$4 sm:$0xff]   ;;  %v8220_v20 = vld [vmem:[%s8986_s25 + $0x1404] ss:$16 sps:$4 sm:$0xff]  }
 0x151   : > { %v5365_v34 = vpop.f32.mrf.mxu0  ;;  %5610 = vmatmul.mubr.bf16.vlgmr.msra.gmra.mxu0 %v9455_v12 }
 0x152   : > { %v5406_v36 = vpop.f32.mrf.mxu1  ;;  %5651 = vmatmul.mubr.bf16.vlgmr.msra.gmra.mxu1 %v9468_v4  ;;  %v5366_v37 = vadd.f32 %v5365_v34, %v9388_v46  ;;  %5660 = vmatpush1.bf16.msra.mxu0 %v8176_v21  ;;  %v8223_v21 = vld [vmem:[%s8986_s25 + $0x1604] ss:$16 sps:$4 sm:$0xff]   ;;  %v8227_v34 = vld [vmem:[%s8986_s25 + $0x17e0] ss:$16 sps:$4 sm:$0xff]  }
 0x153   : > { %5701 = vmatpush1.bf16.msra.mxu1 %v8179_v40  ;;  %v5367_v38 = vpop.f32.mrf.mxu0  ;;  %5661 = vmatprep.subr.bf16.mxu0 %v8184_v27  ;;  %v8218_v40 = vld [vmem:[%s8986_s25 + $0x1400] ss:$16 sps:$4 sm:$0xff]  }
 0x154   : > { %v5408_v39 = vpop.f32.mrf.mxu1  ;;  %5702 = vmatprep.subr.bf16.mxu1 %v8187_v28  ;;  %v9483_v45 = vadd.f32 %v5406_v36, %v5366_v37  ;;  %v5368_v47 = vadd.f32 %v5367_v38, %v9394_v35  ;;  %5691 = vmatprep.mubr.bf16.mxu0 %v9464_v25  ;;  %v8221_v27 = vld [vmem:[%s8986_s25 + $0x1600] ss:$16 sps:$4 sm:$0xff]   ;;  %v8226_v28 = vld [vmem:[%s8986_s25 + $0x15e4] ss:$16 sps:$4 sm:$0xff]  }
 0x155   : > { %5732 = vmatprep.mubr.bf16.mxu1 %v9476_v33  ;;  %v5369_v46 = vpop.f32.mrf.mxu0  ;;  %v8232_v36 = vld [vmem:[%s8986_s25 + $0x15c4] ss:$16 sps:$4 sm:$0xff]   ;;  %v8230_v38 = vld [vmem:[%s8986_s25 + $0x15c0] ss:$16 sps:$4 sm:$0xff]  }
 0x156   : > { %v5410_v52 = vpop.f32.mrf.mxu1  ;;  %v9490_v53 = vadd.f32 %v5408_v39, %v5368_v47  ;;  %5662 = vmatpush1.bf16.msra.mxu0 %v8182_v29  ;;  %v8229_v29 = vld [vmem:[%s8986_s25 + $0x17e4] ss:$16 sps:$4 sm:$0xff]   ;;  %v8233_v39 = vld [vmem:[%s8986_s25 + $0x17c0] ss:$16 sps:$4 sm:$0xff]  }
 0x157   : > { %5703 = vmatpush1.bf16.msra.mxu1 %v8185_v31  ;;  %v5370_v56 = vpop.f32.mrf.mxu0  ;;  %5663 = vmatprep.subr.bf16.mxu0 %v8190_v44  ;;  %v8224_v31 = vld [vmem:[%s8986_s25 + $0x15e0] ss:$16 sps:$4 sm:$0xff]   ;;  %v8235_v37 = vld [vmem:[%s8986_s25 + $0x17c4] ss:$16 sps:$4 sm:$0xff]  }
 0x158   : > { %v5411_v35 = vpop.f32.mrf.mxu1  ;;  %5704 = vmatprep.subr.bf16.mxu1 %v8193_v32  ;;  %v8238_v44 = vld [vmem:[%s8986_s25 + $0x15a4] ss:$16 sps:$4 sm:$0xff]   ;;  %v8236_v47 = vld [vmem:[%s8986_s25 + $0x15a0] ss:$16 sps:$4 sm:$0xff]  }
 0x159   : > { %v8241_v32 = vld [vmem:[%s8986_s25 + $0x17a4] ss:$16 sps:$4 sm:$0xff]   ;;  %v8242_v52 = vld [vmem:[%s8986_s25 + $0x1580] ss:$16 sps:$4 sm:$0xff]  }
 0x15a   : > { %5664 = vmatpush1.bf16.msra.mxu0 %v8188_v48  ;;  %v8239_v48 = vld [vmem:[%s8986_s25 + $0x17a0] ss:$16 sps:$4 sm:$0xff]   ;;  %v8247_v46 = vld [vmem:[%s8986_s25 + $0x1784] ss:$16 sps:$4 sm:$0xff]  }
 0x15b   : > { %5705 = vmatpush1.bf16.msra.mxu1 %v8191_v51  ;;  %5665 = vmatprep.subr.bf16.mxu0 %v8196_v57  ;;  %v8244_v51 = vld [vmem:[%s8986_s25 + $0x1584] ss:$16 sps:$4 sm:$0xff]   ;;  %v8245_v56 = vld [vmem:[%s8986_s25 + $0x1780] ss:$16 sps:$4 sm:$0xff]  }
 0x15c   : > { %5706 = vmatprep.subr.bf16.mxu1 %v8199_v58  ;;  %v8250_v35 = vld [vmem:[%s8986_s25 + $0x1564] ss:$16 sps:$4 sm:$0xff]   ;;  %v8248_v58 = vld [vmem:[%s8986_s25 + $0x1560] ss:$16 sps:$4 sm:$0xff]  }
 0x15d   : > { %v8253_v57 = vld [vmem:[%s8986_s25 + $0x1764] ss:$16 sps:$4 sm:$0xff]  }
 0x15e   : > { %5666 = vmatpush1.bf16.msra.mxu0 %v8194_v61  ;;  %v8251_v61 = vld [vmem:[%s8986_s25 + $0x1760] ss:$16 sps:$4 sm:$0xff]  }
 0x15f   : > { %5707 = vmatpush1.bf16.msra.mxu1 %v8197_v62  ;;  %5667 = vmatprep.subr.bf16.mxu0 %v8202_v63  ;;  %v8256_v62 = vld [vmem:[%s8986_s25 + $0x1544] ss:$16 sps:$4 sm:$0xff]  }
 0x160   : > { %5708 = vmatprep.subr.bf16.mxu1 %v8205_v2  ;;  %v8259_v63 = vld [vmem:[%s8986_s25 + $0x1744] ss:$16 sps:$4 sm:$0xff]   ;;  %v8254_v2 = vld [vmem:[%s8986_s25 + $0x1540] ss:$16 sps:$4 sm:$0xff]  }
 0x162   : > { %5668 = vmatpush1.bf16.msra.mxu0 %v8200_v3  ;;  %v8257_v3 = vld [vmem:[%s8986_s25 + $0x1740] ss:$16 sps:$4 sm:$0xff]  }
 0x163   : > { %5709 = vmatpush1.bf16.msra.mxu1 %v8203_v5  ;;  %5669 = vmatprep.subr.bf16.mxu0 %v8208_v1  ;;  %v8262_v5 = vld [vmem:[%s8986_s25 + $0x1524] ss:$16 sps:$4 sm:$0xff]  }
 0x164   : > { %5710 = vmatprep.subr.bf16.mxu1 %v8211_v8  ;;  %v8265_v1 = vld [vmem:[%s8986_s25 + $0x1724] ss:$16 sps:$4 sm:$0xff]   ;;  %v8260_v8 = vld [vmem:[%s8986_s25 + $0x1520] ss:$16 sps:$4 sm:$0xff]  }
 0x166   : > { %5670 = vmatpush1.bf16.msra.mxu0 %v8206_v9  ;;  %v8263_v9 = vld [vmem:[%s8986_s25 + $0x1720] ss:$16 sps:$4 sm:$0xff]  }
 0x167   : > { %5711 = vmatpush1.bf16.msra.mxu1 %v8209_v10  ;;  %5671 = vmatprep.subr.bf16.mxu0 %v8214_v11  ;;  %v8268_v10 = vld [vmem:[%s8986_s25 + $0x1504] ss:$16 sps:$4 sm:$0xff]  }
 0x168   : > { %5712 = vmatprep.subr.bf16.mxu1 %v8217_v14  ;;  %v8271_v11 = vld [vmem:[%s8986_s25 + $0x1704] ss:$16 sps:$4 sm:$0xff]   ;;  %v9544_v14 = vrot.slane %v9445_v7, %v9041_v49 }
 0x169   : > { %v8281_v7 = vld [vmem:[%s8986_s25 + $0x1844] ss:$16 sps:$4 sm:$0xff]  }
 0x16a   : > { %5672 = vmatpush1.bf16.msra.mxu0 %v8212_v16  ;;  %v8266_v16 = vld [vmem:[%s8986_s25 + $0x1500] ss:$16 sps:$4 sm:$0xff]  }
 0x16b   : > { %5713 = vmatpush1.bf16.msra.mxu1 %v8215_v19  ;;  %5673 = vmatprep.subr.bf16.mxu0 %v8220_v20  ;;  %v8269_v19 = vld [vmem:[%s8986_s25 + $0x1700] ss:$16 sps:$4 sm:$0xff]   ;;  %v8275_v20 = vld [vmem:[%s8986_s25 + $0x1864] ss:$16 sps:$4 sm:$0xff]  }
 0x16c   : > { %5714 = vmatprep.subr.bf16.mxu1 %v8223_v21  ;;  %v8278_v21 = vld [vmem:[%s8986_s25 + $0xec] ss:$16 sps:$4 sm:$0xff]  }
 0x16e   : > { %5674 = vmatpush1.bf16.msra.mxu0 %v8218_v40  ;;  %v8273_v40 = vld [vmem:[%s8986_s25 + $0x1860] ss:$16 sps:$4 sm:$0xff]  }
 0x16f   : > { %5715 = vmatpush1.bf16.msra.mxu1 %v8221_v27  ;;  %5675 = vmatprep.subr.bf16.mxu0 %v8226_v28  ;;  %v8276_v27 = vld [vmem:[%s8986_s25 + $0xe8] ss:$16 sps:$4 sm:$0xff]   ;;  %v9554_v28 = vcombine.high %v9544_v14, %v9544_v14 }
 0x170   : > { %5716 = vmatprep.subr.bf16.mxu1 %v8229_v29  ;;  %v8284_v29 = vld [vmem:[%s8986_s25 + $0xcc] ss:$16 sps:$4 sm:$0xff]  }
 0x172   : > { %5676 = vmatpush2.bf16.msra.mxu0 %v8224_v31  ;;  %v8279_v31 = vld [vmem:[%s8986_s25 + $0x1840] ss:$16 sps:$4 sm:$0xff]  }
 0x173   : > { %5717 = vmatpush2.bf16.msra.mxu1 %v8227_v34  ;;  %5677 = vmatprep.subr.bf16.mxu0 %v8232_v36  ;;  %v8282_v34 = vld [vmem:[%s8986_s25 + $0xc8] ss:$16 sps:$4 sm:$0xff]  }
 0x174   : > { %5718 = vmatprep.subr.bf16.mxu1 %v8235_v37 }
 0x176   : > { %5678 = vmatpush2.bf16.msra.mxu0 %v8230_v38 }
 0x177   : > { %5719 = vmatpush2.bf16.msra.mxu1 %v8233_v39  ;;  %5679 = vmatprep.subr.bf16.mxu0 %v8238_v44 }
 0x178   : > { %5720 = vmatprep.subr.bf16.mxu1 %v8241_v32  ;;  %v8287_v32 = vld [vmem:[%s8986_s25 + $0x1824] ss:$16 sps:$4 sm:$0xff]  }
 0x17a   : > { %5680 = vmatpush2.bf16.msra.mxu0 %v8236_v47  ;;  %v8290_v47 = vld [vmem:[%s8986_s25 + $0xac] ss:$16 sps:$4 sm:$0xff]  }
 0x17b   : > { %5721 = vmatpush2.bf16.msra.mxu1 %v8239_v48  ;;  %5681 = vmatprep.subr.bf16.mxu0 %v8244_v51 }
 0x17c   : > { %5722 = vmatprep.subr.bf16.mxu1 %v8247_v46  ;;  %v8285_v46 = vld [vmem:[%s8986_s25 + $0x1820] ss:$16 sps:$4 sm:$0xff]  }
 0x17e   : > { %5682 = vmatpush2.bf16.msra.mxu0 %v8242_v52  ;;  %v8288_v52 = vld [vmem:[%s8986_s25 + $0xa8] ss:$16 sps:$4 sm:$0xff]  }
 0x17f   : > { %5723 = vmatpush2.bf16.msra.mxu1 %v8245_v56  ;;  %5683 = vmatprep.subr.bf16.mxu0 %v8250_v35  ;;  %v8931_v56 = vmov 0  }
 0x180   : > { %5724 = vmatprep.subr.bf16.mxu1 %v8253_v57 }
 0x182   : > { %5684 = vmatpush2.bf16.msra.mxu0 %v8248_v58 }
 0x183   : > { %5725 = vmatpush2.bf16.msra.mxu1 %v8251_v61  ;;  %5685 = vmatprep.subr.bf16.mxu0 %v8256_v62  ;;  %v8293_v61 = vld [vmem:[%s8986_s25 + $0x1804] ss:$16 sps:$4 sm:$0xff]   ;;  %v8296_v62 = vld [vmem:[%s8986_s25 + $0x8c] ss:$16 sps:$4 sm:$0xff]  }
 0x184   : > { %5726 = vmatprep.subr.bf16.mxu1 %v8259_v63  ;;  %v8291_v63 = vld [vmem:[%s8986_s25 + $0x1800] ss:$16 sps:$4 sm:$0xff]  }
 0x186   : > { %5686 = vmatpush2.bf16.msra.mxu0 %v8254_v2  ;;  %v8294_v2 = vld [vmem:[%s8986_s25 + $0x88] ss:$16 sps:$4 sm:$0xff]  }
 0x187   : > { %5727 = vmatpush2.bf16.msra.mxu1 %v8257_v3  ;;  %5687 = vmatprep.subr.bf16.mxu0 %v8262_v5  ;;  %v8299_v3 = vld [vmem:[%s8986_s25 + $0x6c] ss:$16 sps:$4 sm:$0xff]  }
 0x188   : > { %5728 = vmatprep.subr.bf16.mxu1 %v8265_v1  ;;  %v8302_v5 = vld [vmem:[%s8986_s25 + $0x2ec] ss:$16 sps:$4 sm:$0xff]   ;;  %v8297_v1 = vld [vmem:[%s8986_s25 + $0x68] ss:$16 sps:$4 sm:$0xff]  }
 0x18a   : > { %5688 = vmatpush2.bf16.msra.mxu0 %v8260_v8  ;;  %v8300_v8 = vld [vmem:[%s8986_s25 + $0x2e8] ss:$16 sps:$4 sm:$0xff]  }
 0x18b   : > { %5729 = vmatpush2.bf16.msra.mxu1 %v8263_v9  ;;  %5689 = vmatprep.subr.bf16.mxu0 %v8268_v10  ;;  %v8305_v10 = vld [vmem:[%s8986_s25 + $0x4c] ss:$16 sps:$4 sm:$0xff]  }
 0x18c   : > { %5730 = vmatprep.subr.bf16.mxu1 %v8271_v11  ;;  %v8308_v11 = vld [vmem:[%s8986_s25 + $0x2cc] ss:$16 sps:$4 sm:$0xff]  }
 0x18e   : > { %5690 = vmatpush2.bf16.msra.mxu0 %v8266_v16  ;;  %v8303_v16 = vld [vmem:[%s8986_s25 + $0x48] ss:$16 sps:$4 sm:$0xff]  }
 0x18f   : > { %5731 = vmatpush2.bf16.msra.mxu1 %v8269_v19  ;;  %5749 = vmatprep.subr.bf16.mxu0 %v8275_v20  ;;  %v8311_v19 = vld [vmem:[%s8986_s25 + $0x2c] ss:$16 sps:$4 sm:$0xff]  }
 0x190   : > { %5782 = vmatprep.subr.bf16.mxu1 %v8278_v21  ;;  %v8314_v20 = vld [vmem:[%s8986_s25 + $0x2ac] ss:$16 sps:$4 sm:$0xff]   ;;  %v8309_v21 = vld [vmem:[%s8986_s25 + $0x28] ss:$16 sps:$4 sm:$0xff]  }
 0x191   : > { %v5447_v36 = vpop.f32.mrf.mxu0  ;;  %5692 = vmatmul.mubr.bf16.vlgmr.msra.gmra.mxu0 %v9544_v14 }
 0x192   : > { %v5488_v37 = vpop.f32.mrf.mxu1  ;;  %5733 = vmatmul.mubr.bf16.vlgmr.msra.gmra.mxu1 %v9554_v28  ;;  %v5448_v38 = vadd.f32 %v5447_v36, %v9483_v45  ;;  %5750 = vmatpush1.bf16.msra.mxu0 %v8273_v40  ;;  %v8312_v40 = vld [vmem:[%s8986_s25 + $0x2a8] ss:$16 sps:$4 sm:$0xff]  }
 0x193   : > { %5783 = vmatpush1.bf16.msra.mxu1 %v8276_v27  ;;  %v5449_v39 = vpop.f32.mrf.mxu0  ;;  %5751 = vmatprep.subr.bf16.mxu0 %v8281_v7  ;;  %v8317_v27 = vld [vmem:[%s8986_s25 + $0xc] ss:$16 sps:$4 sm:$0xff]   ;;  %v8321_v36 = vld [vmem:[%s8986_s25 + $0x1e8] ss:$16 sps:$4 sm:$0xff]  }
 0x194   : > { %v5490_v44 = vpop.f32.mrf.mxu1  ;;  %5784 = vmatprep.subr.bf16.mxu1 %v8284_v29  ;;  %v9565_v48 = vadd.f32 %v5488_v37, %v5448_v38  ;;  %v5450_v51 = vadd.f32 %v5449_v39, %v9490_v53  ;;  %5773 = vmatprep.mubr.bf16.mxu0 %v8931_v56  ;;  %v8320_v7 = vld [vmem:[%s8986_s25 + $0x28c] ss:$16 sps:$4 sm:$0xff]   ;;  %v8315_v29 = vld [vmem:[%s8986_s25 + $0x8] ss:$16 sps:$4 sm:$0xff]  }
 0x195   : > { %5814 = vmatprep.mubr.bf16.mxu1 %v9053_v60  ;;  %v5451_v45 = vpop.f32.mrf.mxu0  ;;  %v6799_v60 = vld.sshfl [vmem:[%s9038_s29 + $0x18] sm:$0x1 pattern:$0x75316420]  ;;  %v8329_v38 = vld [vmem:[%s8986_s25 + $0x1cc] ss:$16 sps:$4 sm:$0xff]  }
 0x196   : > { %v5492_v35 = vpop.f32.mrf.mxu1  ;;  %v9572_v57 = vadd.f32 %v5490_v44, %v5450_v51  ;;  %5752 = vmatpush1.bf16.msra.mxu0 %v8279_v31  ;;  %v9584_v9 = vrot.slane %v6799_v60, %v9041_v49  ;;  %v8306_v49 = vld [vmem:[%s8986_s25 + $0x2c8] ss:$16 sps:$4 sm:$0xff]   ;;  %v8332_v39 = vld [vmem:[%s8986_s25 + $0x24c] ss:$16 sps:$4 sm:$0xff]  }
 0x197   : > { %5785 = vmatpush1.bf16.msra.mxu1 %v8282_v34  ;;  %v5452_v53 = vpop.f32.mrf.mxu0  ;;  %5753 = vmatprep.subr.bf16.mxu0 %v8287_v32  ;;  %v8318_v31 = vld [vmem:[%s8986_s25 + $0x288] ss:$16 sps:$4 sm:$0xff]   ;;  %v8326_v34 = vld [vmem:[%s8986_s25 + $0x26c] ss:$16 sps:$4 sm:$0xff]  }
 0x198   : > { %v5493_v58 = vpop.f32.mrf.mxu1  ;;  %5786 = vmatprep.subr.bf16.mxu1 %v8290_v47  ;;  %v8324_v37 = vld [vmem:[%s8986_s25 + $0x268] ss:$16 sps:$4 sm:$0xff]   ;;  %v8335_v47 = vld [vmem:[%s8986_s25 + $0x1ac] ss:$16 sps:$4 sm:$0xff]  }
 0x199   : > { %v8327_v44 = vld [vmem:[%s8986_s25 + $0x1c8] ss:$16 sps:$4 sm:$0xff]   ;;  %v8338_v51 = vld [vmem:[%s8986_s25 + $0x22c] ss:$16 sps:$4 sm:$0xff]  }
 0x19a   : > { %5754 = vmatpush1.bf16.msra.mxu0 %v8285_v46  ;;  %v8330_v32 = vld [vmem:[%s8986_s25 + $0x248] ss:$16 sps:$4 sm:$0xff]   ;;  %v8341_v45 = vld [vmem:[%s8986_s25 + $0x18c] ss:$16 sps:$4 sm:$0xff]  }
 0x19b   : > { %5787 = vmatpush1.bf16.msra.mxu1 %v8288_v52  ;;  %5755 = vmatprep.subr.bf16.mxu0 %v8293_v61  ;;  %v8333_v46 = vld [vmem:[%s8986_s25 + $0x1a8] ss:$16 sps:$4 sm:$0xff]   ;;  %v8344_v35 = vld [vmem:[%s8986_s25 + $0x20c] ss:$16 sps:$4 sm:$0xff]  }
 0x19c   : > { %5788 = vmatprep.subr.bf16.mxu1 %v8296_v62  ;;  %v8336_v52 = vld [vmem:[%s8986_s25 + $0x228] ss:$16 sps:$4 sm:$0xff]   ;;  %v8347_v61 = vld [vmem:[%s8986_s25 + $0x16c] ss:$16 sps:$4 sm:$0xff]  }
 0x19d   : > { %v8339_v53 = vld [vmem:[%s8986_s25 + $0x188] ss:$16 sps:$4 sm:$0xff]   ;;  %v8350_v62 = vld [vmem:[%s8986_s25 + $0x3ec] ss:$16 sps:$4 sm:$0xff]  }
 0x19e   : > { %5756 = vmatpush1.bf16.msra.mxu0 %v8291_v63  ;;  %v8342_v58 = vld [vmem:[%s8986_s25 + $0x208] ss:$16 sps:$4 sm:$0xff]   ;;  %v8353_v60 = vld [vmem:[%s8986_s25 + $0x14c] ss:$16 sps:$4 sm:$0xff]  }
 0x19f   : > { %5789 = vmatpush1.bf16.msra.mxu1 %v8294_v2  ;;  %5823 = vmatprep.subr.bf16.mxu0 %v8302_v5  ;;  %v8345_v63 = vld [vmem:[%s8986_s25 + $0x168] ss:$16 sps:$4 sm:$0xff]  }
 0x1a0   : > { %5790 = vmatprep.subr.bf16.mxu1 %v8299_v3  ;;  %v8348_v2 = vld [vmem:[%s8986_s25 + $0x3e8] ss:$16 sps:$4 sm:$0xff]   ;;  %v8356_v3 = vld [vmem:[%s8986_s25 + $0x3cc] ss:$16 sps:$4 sm:$0xff]  }
 0x1a1   : > { %7584 = vmatmul.mubr.msk.bf16.vlgmr.msra.gmra.mxu0 %vm5245_vm0, %v9584_v9  ;;  %v8351_v5 = vld [vmem:[%s8986_s25 + $0x148] ss:$16 sps:$4 sm:$0xff]  }
 0x1a2   : > { %5824 = vmatpush1.bf16.msra.mxu0 %v8300_v8  ;;  %5855 = vmatprep.mubr.bf16.mxu0 %v9060_v0  ;;  %v8323_v0 = vld [vmem:[%s8986_s25 + $0x1ec] ss:$16 sps:$4 sm:$0xff]  }
 0x1a3   : > { %5791 = vmatpush1.bf16.msra.mxu1 %v8297_v1  ;;  %5825 = vmatprep.subr.bf16.mxu0 %v8308_v11  ;;  %v8354_v1 = vld [vmem:[%s8986_s25 + $0x3c8] ss:$16 sps:$4 sm:$0xff]   ;;  %v8359_v8 = vld [vmem:[%s8986_s25 + $0x12c] ss:$16 sps:$4 sm:$0xff]  }
 0x1a4   : > { %5792 = vmatprep.subr.bf16.mxu1 %v8305_v10  ;;  %v8362_v10 = vld [vmem:[%s8986_s25 + $0x3ac] ss:$16 sps:$4 sm:$0xff]   ;;  %v8357_v11 = vld [vmem:[%s8986_s25 + $0x128] ss:$16 sps:$4 sm:$0xff]  }
 0x1a6   : > { %5826 = vmatpush1.bf16.msra.mxu0 %v8306_v49  ;;  %v8365_v49 = vld [vmem:[%s8986_s25 + $0x10c] ss:$16 sps:$4 sm:$0xff]  }
 0x1a7   : > { %5793 = vmatpush1.bf16.msra.mxu1 %v8303_v16  ;;  %5827 = vmatprep.subr.bf16.mxu0 %v8314_v20  ;;  %v8360_v16 = vld [vmem:[%s8986_s25 + $0x3a8] ss:$16 sps:$4 sm:$0xff]  }
 0x1a8   : > { %5794 = vmatprep.subr.bf16.mxu1 %v8311_v19  ;;  %v8368_v19 = vld [vmem:[%s8986_s25 + $0x38c] ss:$16 sps:$4 sm:$0xff]   ;;  %v8363_v20 = vld [vmem:[%s8986_s25 + $0x108] ss:$16 sps:$4 sm:$0xff]  }
 0x1aa   : > { %5828 = vmatpush1.bf16.msra.mxu0 %v8312_v40  ;;  %v8371_v40 = vld [vmem:[%s8986_s25 + $0x36c] ss:$16 sps:$4 sm:$0xff]  }
 0x1ab   : > { %5795 = vmatpush1.bf16.msra.mxu1 %v8309_v21  ;;  %5829 = vmatprep.subr.bf16.mxu0 %v8320_v7  ;;  %v8366_v21 = vld [vmem:[%s8986_s25 + $0x388] ss:$16 sps:$4 sm:$0xff]  }
 0x1ac   : > { %5796 = vmatprep.subr.bf16.mxu1 %v8317_v27  ;;  %v8374_v27 = vld [vmem:[%s8986_s25 + $0x4ec] ss:$16 sps:$4 sm:$0xff]   ;;  %v8369_v7 = vld [vmem:[%s8986_s25 + $0x368] ss:$16 sps:$4 sm:$0xff]  }
 0x1ae   : > { %5830 = vmatpush1.bf16.msra.mxu0 %v8318_v31  ;;  %v8377_v31 = vld [vmem:[%s8986_s25 + $0x34c] ss:$16 sps:$4 sm:$0xff]  }
 0x1af   : > { %5797 = vmatpush1.bf16.msra.mxu1 %v8315_v29  ;;  %5831 = vmatprep.subr.bf16.mxu0 %v8326_v34  ;;  %v8372_v29 = vld [vmem:[%s8986_s25 + $0x4e8] ss:$16 sps:$4 sm:$0xff]  }
 0x1b0   : > { %5798 = vmatprep.subr.bf16.mxu1 %v8323_v0  ;;  %v8380_v0 = vld [vmem:[%s8986_s25 + $0x4cc] ss:$16 sps:$4 sm:$0xff]   ;;  %v8375_v34 = vld [vmem:[%s8986_s25 + $0x348] ss:$16 sps:$4 sm:$0xff]  }
 0x1b2   : > { %5832 = vmatpush1.bf16.msra.mxu0 %v8324_v37 }
 0x1b3   : > { %5799 = vmatpush2.bf16.msra.mxu1 %v8321_v36  ;;  %5833 = vmatprep.subr.bf16.mxu0 %v8332_v39  ;;  %v8378_v36 = vld [vmem:[%s8986_s25 + $0x4c8] ss:$16 sps:$4 sm:$0xff]  }
 0x1b4   : > { %5800 = vmatprep.subr.bf16.mxu1 %v8329_v38 }
 0x1b6   : > { %5834 = vmatpush1.bf16.msra.mxu0 %v8330_v32 }
 0x1b7   : > { %5801 = vmatpush2.bf16.msra.mxu1 %v8327_v44  ;;  %5835 = vmatprep.subr.bf16.mxu0 %v8338_v51  ;;  %v8386_v51 = vld [vmem:[%s8986_s25 + $0x4ac] ss:$16 sps:$4 sm:$0xff]  }
 0x1b8   : > { %5802 = vmatprep.subr.bf16.mxu1 %v8335_v47  ;;  %v8383_v47 = vld [vmem:[%s8986_s25 + $0x32c] ss:$16 sps:$4 sm:$0xff]  }
 0x1ba   : > { %5836 = vmatpush1.bf16.msra.mxu0 %v8336_v52 }
 0x1bb   : > { %5803 = vmatpush2.bf16.msra.mxu1 %v8333_v46  ;;  %5837 = vmatprep.subr.bf16.mxu0 %v8344_v35  ;;  %v8384_v35 = vld [vmem:[%s8986_s25 + $0x4a8] ss:$16 sps:$4 sm:$0xff]  }
 0x1bc   : > { %5804 = vmatprep.subr.bf16.mxu1 %v8341_v45  ;;  %v8381_v45 = vld [vmem:[%s8986_s25 + $0x328] ss:$16 sps:$4 sm:$0xff]  }
 0x1be   : > { %5838 = vmatpush1.bf16.msra.mxu0 %v8342_v58 }
 0x1bf   : > { %5805 = vmatpush2.bf16.msra.mxu1 %v8339_v53  ;;  %5839 = vmatprep.subr.bf16.mxu0 %v8350_v62  ;;  %v8392_v62 = vld [vmem:[%s8986_s25 + $0x48c] ss:$16 sps:$4 sm:$0xff]  }
 0x1c0   : > { %5806 = vmatprep.subr.bf16.mxu1 %v8347_v61 }
 0x1c2   : > { %5840 = vmatpush2.bf16.msra.mxu0 %v8348_v2  ;;  %v8395_v2 = vld [vmem:[%s8986_s25 + $0x46c] ss:$16 sps:$4 sm:$0xff]  }
 0x1c3   : > { %5807 = vmatpush2.bf16.msra.mxu1 %v8345_v63  ;;  %5841 = vmatprep.subr.bf16.mxu0 %v8356_v3  ;;  %v8390_v63 = vld [vmem:[%s8986_s25 + $0x488] ss:$16 sps:$4 sm:$0xff]  }
 0x1c4   : > { %5808 = vmatprep.subr.bf16.mxu1 %v8353_v60  ;;  %v8398_v60 = vld [vmem:[%s8986_s25 + $0x6ec] ss:$16 sps:$4 sm:$0xff]   ;;  %v8393_v3 = vld [vmem:[%s8986_s25 + $0x468] ss:$16 sps:$4 sm:$0xff]  }
 0x1c6   : > { %5842 = vmatpush2.bf16.msra.mxu0 %v8354_v1  ;;  %v8401_v1 = vld [vmem:[%s8986_s25 + $0x44c] ss:$16 sps:$4 sm:$0xff]  }
 0x1c7   : > { %5809 = vmatpush2.bf16.msra.mxu1 %v8351_v5  ;;  %5843 = vmatprep.subr.bf16.mxu0 %v8362_v10  ;;  %v8396_v5 = vld [vmem:[%s8986_s25 + $0x6e8] ss:$16 sps:$4 sm:$0xff]  }
 0x1c8   : > { %5810 = vmatprep.subr.bf16.mxu1 %v8359_v8  ;;  %v8404_v8 = vld [vmem:[%s8986_s25 + $0x6cc] ss:$16 sps:$4 sm:$0xff]   ;;  %v8399_v10 = vld [vmem:[%s8986_s25 + $0x448] ss:$16 sps:$4 sm:$0xff]  }
 0x1ca   : > { %5844 = vmatpush2.bf16.msra.mxu0 %v8360_v16  ;;  %v8407_v16 = vld [vmem:[%s8986_s25 + $0x42c] ss:$16 sps:$4 sm:$0xff]  }
 0x1cb   : > { %5811 = vmatpush2.bf16.msra.mxu1 %v8357_v11  ;;  %5845 = vmatprep.subr.bf16.mxu0 %v8368_v19  ;;  %v8402_v11 = vld [vmem:[%s8986_s25 + $0x6c8] ss:$16 sps:$4 sm:$0xff]  }
 0x1cc   : > { %5812 = vmatprep.subr.bf16.mxu1 %v8365_v49  ;;  %v8410_v49 = vld [vmem:[%s8986_s25 + $0x6ac] ss:$16 sps:$4 sm:$0xff]   ;;  %v8405_v19 = vld [vmem:[%s8986_s25 + $0x428] ss:$16 sps:$4 sm:$0xff]  }
 0x1ce   : > { %5846 = vmatpush2.bf16.msra.mxu0 %v8366_v21  ;;  %v8416_v21 = vld [vmem:[%s8986_s25 + $0x68c] ss:$16 sps:$4 sm:$0xff]  }
 0x1cf   : > { %5813 = vmatpush2.bf16.msra.mxu1 %v8363_v20  ;;  %5847 = vmatprep.subr.bf16.mxu0 %v8371_v40  ;;  %v8413_v20 = vld [vmem:[%s8986_s25 + $0x40c] ss:$16 sps:$4 sm:$0xff]   ;;  %v8411_v40 = vld [vmem:[%s8986_s25 + $0x408] ss:$16 sps:$4 sm:$0xff]  }
 0x1d0   : > { %5864 = vmatprep.subr.bf16.mxu1 %v8374_v27  ;;  %v8414_v27 = vld [vmem:[%s8986_s25 + $0x688] ss:$16 sps:$4 sm:$0xff]  }
 0x1d1   : > { %v5529_v37 = vpop.f32.mrf.mxu0 }
 0x1d2   : > { %v5570_v38 = vpop.f32.mrf.mxu1  ;;  %5815 = vmatmul.mubr.bf16.vlgmr.msra.gmra.mxu1 %v9079_v13  ;;  %v5530_v39 = vadd.f32 %v5529_v37, %v9565_v48  ;;  %5848 = vmatpush2.bf16.msra.mxu0 %v8369_v7  ;;  %v8422_v7 = vld [vmem:[%s8986_s25 + $0x66c] ss:$16 sps:$4 sm:$0xff]   ;;  %v8426_v37 = vld [vmem:[%s8986_s25 + $0x648] ss:$16 sps:$4 sm:$0xff]  }
 0x1d3   : > { %5865 = vmatpush1.bf16.msra.mxu1 %v8372_v29  ;;  %v5531_v44 = vpop.f32.mrf.mxu0  ;;  %5849 = vmatprep.subr.bf16.mxu0 %v8377_v31  ;;  %v8417_v29 = vld [vmem:[%s8986_s25 + $0x5e8] ss:$16 sps:$4 sm:$0xff]  }
 0x1d4   : > { %v5572_v32 = vpop.f32.mrf.mxu1  ;;  %5866 = vmatprep.subr.bf16.mxu1 %v8380_v0  ;;  %v9645_v46 = vadd.f32 %v5570_v38, %v5530_v39  ;;  %v5532_v52 = vadd.f32 %v5531_v44, %v9572_v57  ;;  %5896 = vmatprep.mubr.bf16.mxu1 %v9085_v17  ;;  %v8389_v57 = vld [vmem:[%s8986_s25 + $0x30c] ss:$16 sps:$4 sm:$0xff]   ;;  %v8387_v17 = vld [vmem:[%s8986_s25 + $0x308] ss:$16 sps:$4 sm:$0xff]  }
 0x1d5   : > { %v5533_v13 = vpop.f32.mrf.mxu0  ;;  %v8420_v31 = vld [vmem:[%s8986_s25 + $0x668] ss:$16 sps:$4 sm:$0xff]   ;;  %v8425_v0 = vld [vmem:[%s8986_s25 + $0x5cc] ss:$16 sps:$4 sm:$0xff]  }
 0x1d6   : > { %v5574_v48 = vpop.f32.mrf.mxu1  ;;  %v9651_v53 = vadd.f32 %v5572_v32, %v5532_v52  ;;  %5850 = vmatpush2.bf16.msra.mxu0 %v8375_v34  ;;  %v8428_v34 = vld [vmem:[%s8986_s25 + $0x64c] ss:$16 sps:$4 sm:$0xff]   ;;  %v8429_v44 = vld [vmem:[%s8986_s25 + $0x5a8] ss:$16 sps:$4 sm:$0xff]  }
 0x1d7   : > { %5867 = vmatpush1.bf16.msra.mxu1 %v8378_v36  ;;  %v5534_v58 = vpop.f32.mrf.mxu0  ;;  %5851 = vmatprep.subr.bf16.mxu0 %v8383_v47  ;;  %v8423_v36 = vld [vmem:[%s8986_s25 + $0x5c8] ss:$16 sps:$4 sm:$0xff]   ;;  %v8431_v38 = vld [vmem:[%s8986_s25 + $0x5ac] ss:$16 sps:$4 sm:$0xff]  }
 0x1d8   : > { %v5575_v61 = vpop.f32.mrf.mxu1  ;;  %5868 = vmatprep.subr.bf16.mxu1 %v8386_v51  ;;  %v8434_v39 = vld [vmem:[%s8986_s25 + $0x62c] ss:$16 sps:$4 sm:$0xff]   ;;  %v8432_v32 = vld [vmem:[%s8986_s25 + $0x628] ss:$16 sps:$4 sm:$0xff]  }
 0x1d9   : > { %v8437_v47 = vld [vmem:[%s8986_s25 + $0x58c] ss:$16 sps:$4 sm:$0xff]   ;;  %v8435_v52 = vld [vmem:[%s8986_s25 + $0x588] ss:$16 sps:$4 sm:$0xff]  }
 0x1da   : > { %5852 = vmatpush2.bf16.msra.mxu0 %v8381_v45  ;;  %v8440_v51 = vld [vmem:[%s8986_s25 + $0x60c] ss:$16 sps:$4 sm:$0xff]   ;;  %v8438_v45 = vld [vmem:[%s8986_s25 + $0x608] ss:$16 sps:$4 sm:$0xff]  }
 0x1db   : > { %5869 = vmatpush1.bf16.msra.mxu1 %v8384_v35  ;;  %5853 = vmatprep.subr.bf16.mxu0 %v8389_v57  ;;  %v8443_v35 = vld [vmem:[%s8986_s25 + $0x56c] ss:$16 sps:$4 sm:$0xff]   ;;  %v8441_v48 = vld [vmem:[%s8986_s25 + $0x568] ss:$16 sps:$4 sm:$0xff]  }
 0x1dc   : > { %5870 = vmatprep.subr.bf16.mxu1 %v8392_v62  ;;  %v8446_v13 = vld [vmem:[%s8986_s25 + $0x7ec] ss:$16 sps:$4 sm:$0xff]   ;;  %v8444_v58 = vld [vmem:[%s8986_s25 + $0x7e8] ss:$16 sps:$4 sm:$0xff]  }
 0x1dd   : > { %v8449_v61 = vld [vmem:[%s8986_s25 + $0x54c] ss:$16 sps:$4 sm:$0xff]   ;;  %v8447_v62 = vld [vmem:[%s8986_s25 + $0x548] ss:$16 sps:$4 sm:$0xff]  }
 0x1de   : > { %5854 = vmatpush2.bf16.msra.mxu0 %v8387_v17  ;;  %v8452_v57 = vld [vmem:[%s8986_s25 + $0x7cc] ss:$16 sps:$4 sm:$0xff]   ;;  %v8450_v17 = vld [vmem:[%s8986_s25 + $0x7c8] ss:$16 sps:$4 sm:$0xff]  }
 0x1df   : > { %5871 = vmatpush1.bf16.msra.mxu1 %v8390_v63  ;;  %5905 = vmatprep.subr.bf16.mxu0 %v8398_v60  ;;  %v8455_v63 = vld [vmem:[%s8986_s25 + $0x52c] ss:$16 sps:$4 sm:$0xff]   ;;  %v8453_v60 = vld [vmem:[%s8986_s25 + $0x528] ss:$16 sps:$4 sm:$0xff]  }
 0x1e0   : > { %5872 = vmatprep.subr.bf16.mxu1 %v8395_v2  ;;  %v8458_v2 = vld [vmem:[%s8986_s25 + $0x7ac] ss:$16 sps:$4 sm:$0xff]  }
 0x1e1   : > { %5856 = vmatmul.mubr.bf16.vlgmr.msra.gmra.mxu0 %v9089_v18  ;;  %v8408_v18 = vld [vmem:[%s8986_s25 + $0x6a8] ss:$16 sps:$4 sm:$0xff]  }
 0x1e2   : > { %5906 = vmatpush1.bf16.msra.mxu0 %v8396_v5  ;;  %5937 = vmatprep.mubr.bf16.mxu0 %v9097_v23  ;;  %v8419_v23 = vld [vmem:[%s8986_s25 + $0x5ec] ss:$16 sps:$4 sm:$0xff]  }
 0x1e3   : > { %5873 = vmatpush1.bf16.msra.mxu1 %v8393_v3  ;;  %5907 = vmatprep.subr.bf16.mxu0 %v8404_v8  ;;  %v8456_v3 = vld [vmem:[%s8986_s25 + $0x7a8] ss:$16 sps:$4 sm:$0xff]   ;;  %v8461_v5 = vld [vmem:[%s8986_s25 + $0x50c] ss:$16 sps:$4 sm:$0xff]  }
 0x1e4   : > { %5874 = vmatprep.subr.bf16.mxu1 %v8401_v1  ;;  %v8464_v1 = vld [vmem:[%s8986_s25 + $0x78c] ss:$16 sps:$4 sm:$0xff]   ;;  %v8459_v8 = vld [vmem:[%s8986_s25 + $0x508] ss:$16 sps:$4 sm:$0xff]  }
 0x1e6   : > { %5908 = vmatpush1.bf16.msra.mxu0 %v8402_v11  ;;  %v8467_v11 = vld [vmem:[%s8986_s25 + $0x76c] ss:$16 sps:$4 sm:$0xff]  }
 0x1e7   : > { %5875 = vmatpush1.bf16.msra.mxu1 %v8399_v10  ;;  %5909 = vmatprep.subr.bf16.mxu0 %v8410_v49  ;;  %v8462_v10 = vld [vmem:[%s8986_s25 + $0x788] ss:$16 sps:$4 sm:$0xff]  }
 0x1e8   : > { %5876 = vmatprep.subr.bf16.mxu1 %v8407_v16  ;;  %v8470_v16 = vld [vmem:[%s8986_s25 + $0x8ec] ss:$16 sps:$4 sm:$0xff]   ;;  %v8465_v49 = vld [vmem:[%s8986_s25 + $0x768] ss:$16 sps:$4 sm:$0xff]  }
 0x1ea   : > { %5910 = vmatpush1.bf16.msra.mxu0 %v8408_v18  ;;  %v8473_v18 = vld [vmem:[%s8986_s25 + $0x74c] ss:$16 sps:$4 sm:$0xff]  }
 0x1eb   : > { %5877 = vmatpush1.bf16.msra.mxu1 %v8405_v19  ;;  %5911 = vmatprep.subr.bf16.mxu0 %v8416_v21  ;;  %v8468_v19 = vld [vmem:[%s8986_s25 + $0x8e8] ss:$16 sps:$4 sm:$0xff]  }
 0x1ec   : > { %5878 = vmatprep.subr.bf16.mxu1 %v8413_v20  ;;  %v8476_v20 = vld [vmem:[%s8986_s25 + $0x8cc] ss:$16 sps:$4 sm:$0xff]  }
 0x1ee   : > { %5912 = vmatpush1.bf16.msra.mxu0 %v8414_v27 }
 0x1ef   : > { %5879 = vmatpush1.bf16.msra.mxu1 %v8411_v40  ;;  %5913 = vmatprep.subr.bf16.mxu0 %v8422_v7  ;;  %v8474_v7 = vld [vmem:[%s8986_s25 + $0x8c8] ss:$16 sps:$4 sm:$0xff]  }
 0x1f0   : > { %5880 = vmatprep.subr.bf16.mxu1 %v8419_v23  ;;  %v8471_v23 = vld [vmem:[%s8986_s25 + $0x748] ss:$16 sps:$4 sm:$0xff]  }
 0x1f2   : > { %5914 = vmatpush1.bf16.msra.mxu0 %v8420_v31 }
 0x1f3   : > { %5881 = vmatpush2.bf16.msra.mxu1 %v8417_v29  ;;  %5915 = vmatprep.subr.bf16.mxu0 %v8428_v34  ;;  %v8482_v34 = vld [vmem:[%s8986_s25 + $0x8ac] ss:$16 sps:$4 sm:$0xff]  }
 0x1f4   : > { %5882 = vmatprep.subr.bf16.mxu1 %v8425_v0  ;;  %v8479_v0 = vld [vmem:[%s8986_s25 + $0x72c] ss:$16 sps:$4 sm:$0xff]  }
 0x1f6   : > { %5916 = vmatpush1.bf16.msra.mxu0 %v8426_v37 }
 0x1f7   : > { %5883 = vmatpush2.bf16.msra.mxu1 %v8423_v36  ;;  %5917 = vmatprep.subr.bf16.mxu0 %v8434_v39  ;;  %v8477_v39 = vld [vmem:[%s8986_s25 + $0x728] ss:$16 sps:$4 sm:$0xff]  }
 0x1f8   : > { %5884 = vmatprep.subr.bf16.mxu1 %v8431_v38 }
 0x1fa   : > { %5918 = vmatpush1.bf16.msra.mxu0 %v8432_v32 }
 0x1fb   : > { %5885 = vmatpush2.bf16.msra.mxu1 %v8429_v44  ;;  %5919 = vmatprep.subr.bf16.mxu0 %v8440_v51  ;;  %v8480_v44 = vld [vmem:[%s8986_s25 + $0x8a8] ss:$16 sps:$4 sm:$0xff]  }
 0x1fc   : > { %5886 = vmatprep.subr.bf16.mxu1 %v8437_v47  ;;  %v8483_v51 = vld [vmem:[%s8986_s25 + $0x708] ss:$16 sps:$4 sm:$0xff]  }
 0x1fe   : > { %5920 = vmatpush1.bf16.msra.mxu0 %v8438_v45  ;;  %v8491_v45 = vld [vmem:[%s8986_s25 + $0x86c] ss:$16 sps:$4 sm:$0xff]  }
 0x1ff   : > { %5887 = vmatpush2.bf16.msra.mxu1 %v8435_v52  ;;  %5921 = vmatprep.subr.bf16.mxu0 %v8446_v13  ;;  %v8486_v52 = vld [vmem:[%s8986_s25 + $0x888] ss:$16 sps:$4 sm:$0xff]  }
 0x200   : > { %5888 = vmatprep.subr.bf16.mxu1 %v8443_v35  ;;  %v8494_v35 = vld [vmem:[%s8986_s25 + $0xaec] ss:$16 sps:$4 sm:$0xff]   ;;  %v8489_v13 = vld [vmem:[%s8986_s25 + $0x868] ss:$16 sps:$4 sm:$0xff]  }
 0x202   : > { %5922 = vmatpush2.bf16.msra.mxu0 %v8444_v58  ;;  %v8497_v58 = vld [vmem:[%s8986_s25 + $0x84c] ss:$16 sps:$4 sm:$0xff]  }
 0x203   : > { %5889 = vmatpush2.bf16.msra.mxu1 %v8441_v48  ;;  %5923 = vmatprep.subr.bf16.mxu0 %v8452_v57  ;;  %v8492_v48 = vld [vmem:[%s8986_s25 + $0xae8] ss:$16 sps:$4 sm:$0xff]  }
 0x204   : > { %5890 = vmatprep.subr.bf16.mxu1 %v8449_v61  ;;  %v8500_v61 = vld [vmem:[%s8986_s25 + $0xacc] ss:$16 sps:$4 sm:$0xff]   ;;  %v8495_v57 = vld [vmem:[%s8986_s25 + $0x848] ss:$16 sps:$4 sm:$0xff]  }
 0x206   : > { %5924 = vmatpush2.bf16.msra.mxu0 %v8450_v17  ;;  %v8503_v17 = vld [vmem:[%s8986_s25 + $0x82c] ss:$16 sps:$4 sm:$0xff]  }
 0x207   : > { %5891 = vmatpush2.bf16.msra.mxu1 %v8447_v62  ;;  %5925 = vmatprep.subr.bf16.mxu0 %v8458_v2  ;;  %v8498_v62 = vld [vmem:[%s8986_s25 + $0xac8] ss:$16 sps:$4 sm:$0xff]  }
 0x208   : > { %5892 = vmatprep.subr.bf16.mxu1 %v8455_v63  ;;  %v8506_v63 = vld [vmem:[%s8986_s25 + $0xaac] ss:$16 sps:$4 sm:$0xff]   ;;  %v8501_v2 = vld [vmem:[%s8986_s25 + $0x828] ss:$16 sps:$4 sm:$0xff]  }
 0x20a   : > { %5926 = vmatpush2.bf16.msra.mxu0 %v8456_v3  ;;  %v8512_v3 = vld [vmem:[%s8986_s25 + $0xa8c] ss:$16 sps:$4 sm:$0xff]  }
 0x20b   : > { %5893 = vmatpush2.bf16.msra.mxu1 %v8453_v60  ;;  %5927 = vmatprep.subr.bf16.mxu0 %v8464_v1  ;;  %v8509_v60 = vld [vmem:[%s8986_s25 + $0x80c] ss:$16 sps:$4 sm:$0xff]   ;;  %v8510_v1 = vld [vmem:[%s8986_s25 + $0xa88] ss:$16 sps:$4 sm:$0xff]  }
 0x20c   : > { %5894 = vmatprep.subr.bf16.mxu1 %v8461_v5  ;;  %v8507_v5 = vld [vmem:[%s8986_s25 + $0x808] ss:$16 sps:$4 sm:$0xff]  }
 0x20e   : > { %5928 = vmatpush2.bf16.msra.mxu0 %v8462_v10  ;;  %v8513_v10 = vld [vmem:[%s8986_s25 + $0x9e8] ss:$16 sps:$4 sm:$0xff]  }
 0x20f   : > { %5895 = vmatpush2.bf16.msra.mxu1 %v8459_v8  ;;  %5929 = vmatprep.subr.bf16.mxu0 %v8467_v11  ;;  %v8518_v8 = vld [vmem:[%s8986_s25 + $0xa6c] ss:$16 sps:$4 sm:$0xff]   ;;  %v8516_v11 = vld [vmem:[%s8986_s25 + $0xa68] ss:$16 sps:$4 sm:$0xff]  }
 0x210   : > { %5946 = vmatprep.subr.bf16.mxu1 %v8470_v16  ;;  %v8521_v16 = vld [vmem:[%s8986_s25 + $0x9cc] ss:$16 sps:$4 sm:$0xff]  }
 0x211   : > { %v5611_v21 = vpop.f32.mrf.mxu0 }
 0x212   : > { %v5652_v40 = vpop.f32.mrf.mxu1  ;;  %5897 = vmatmul.mubr.bf16.vlgmr.msra.gmra.mxu1 %v9162_v26  ;;  %v5612_v27 = vadd.f32 %v5611_v21, %v9645_v46  ;;  %5930 = vmatpush2.bf16.msra.mxu0 %v8465_v49  ;;  %v8524_v49 = vld [vmem:[%s8986_s25 + $0xa4c] ss:$16 sps:$4 sm:$0xff]  }
 0x213   : > { %5947 = vmatpush1.bf16.msra.mxu1 %v8468_v19  ;;  %v5613_v29 = vpop.f32.mrf.mxu0  ;;  %5931 = vmatprep.subr.bf16.mxu0 %v8473_v18  ;;  %v8519_v19 = vld [vmem:[%s8986_s25 + $0x9c8] ss:$16 sps:$4 sm:$0xff]   ;;  %v8530_v21 = vld [vmem:[%s8986_s25 + $0xa2c] ss:$16 sps:$4 sm:$0xff]  }
 0x214   : > { %v5654_v31 = vpop.f32.mrf.mxu1  ;;  %5948 = vmatprep.subr.bf16.mxu1 %v8476_v20  ;;  %v9719_v36 = vadd.f32 %v5652_v40, %v5612_v27  ;;  %v5614_v26 = vadd.f32 %v5613_v29, %v9651_v53  ;;  %5978 = vmatprep.mubr.bf16.mxu1 %v9191_v41  ;;  %v8485_v53 = vld [vmem:[%s8986_s25 + $0x70c] ss:$16 sps:$4 sm:$0xff]   ;;  %v8522_v18 = vld [vmem:[%s8986_s25 + $0xa48] ss:$16 sps:$4 sm:$0xff]  }
 0x215   : > { %v5615_v46 = vpop.f32.mrf.mxu0  ;;  %v8488_v41 = vld [vmem:[%s8986_s25 + $0x88c] ss:$16 sps:$4 sm:$0xff]   ;;  %v8525_v40 = vld [vmem:[%s8986_s25 + $0x9a8] ss:$16 sps:$4 sm:$0xff]  }
 0x216   : > { %v5656_v37 = vpop.f32.mrf.mxu1  ;;  %v9723_v38 = vadd.f32 %v5654_v31, %v5614_v26  ;;  %5932 = vmatpush2.bf16.msra.mxu0 %v8471_v23  ;;  %v8527_v20 = vld [vmem:[%s8986_s25 + $0x9ac] ss:$16 sps:$4 sm:$0xff]   ;;  %v8528_v27 = vld [vmem:[%s8986_s25 + $0xa28] ss:$16 sps:$4 sm:$0xff]  }
 0x217   : > { %5949 = vmatpush1.bf16.msra.mxu1 %v8474_v7  ;;  %v5616_v32 = vpop.f32.mrf.mxu0  ;;  %5933 = vmatprep.subr.bf16.mxu0 %v8479_v0  ;;  %v8533_v23 = vld [vmem:[%s8986_s25 + $0x98c] ss:$16 sps:$4 sm:$0xff]   ;;  %v8531_v29 = vld [vmem:[%s8986_s25 + $0x988] ss:$16 sps:$4 sm:$0xff]  }
 0x218   : > { %v5657_v47 = vpop.f32.mrf.mxu1  ;;  %5950 = vmatprep.subr.bf16.mxu1 %v8482_v34  ;;  %v8536_v7 = vld [vmem:[%s8986_s25 + $0xa0c] ss:$16 sps:$4 sm:$0xff]   ;;  %v8534_v31 = vld [vmem:[%s8986_s25 + $0xa08] ss:$16 sps:$4 sm:$0xff]  }
 0x219   : > { %v8539_v0 = vld [vmem:[%s8986_s25 + $0x96c] ss:$16 sps:$4 sm:$0xff]   ;;  %v8537_v26 = vld [vmem:[%s8986_s25 + $0x968] ss:$16 sps:$4 sm:$0xff]  }
 0x21a   : > { %5934 = vmatpush2.bf16.msra.mxu0 %v8477_v39  ;;  %v8542_v34 = vld [vmem:[%s8986_s25 + $0xbec] ss:$16 sps:$4 sm:$0xff]   ;;  %v8540_v46 = vld [vmem:[%s8986_s25 + $0xbe8] ss:$16 sps:$4 sm:$0xff]  }
 0x21b   : > { %5951 = vmatpush1.bf16.msra.mxu1 %v8480_v44  ;;  %5935 = vmatprep.subr.bf16.mxu0 %v8485_v53  ;;  %v8545_v37 = vld [vmem:[%s8986_s25 + $0x94c] ss:$16 sps:$4 sm:$0xff]   ;;  %v8543_v44 = vld [vmem:[%s8986_s25 + $0x948] ss:$16 sps:$4 sm:$0xff]  }
 0x21c   : > { %5952 = vmatprep.subr.bf16.mxu1 %v8488_v41  ;;  %v8548_v39 = vld [vmem:[%s8986_s25 + $0xbcc] ss:$16 sps:$4 sm:$0xff]   ;;  %v8546_v32 = vld [vmem:[%s8986_s25 + $0xbc8] ss:$16 sps:$4 sm:$0xff]  }
 0x21d   : > { %v8551_v47 = vld [vmem:[%s8986_s25 + $0x92c] ss:$16 sps:$4 sm:$0xff]   ;;  %v8549_v41 = vld [vmem:[%s8986_s25 + $0x928] ss:$16 sps:$4 sm:$0xff]  }
 0x21e   : > { %5936 = vmatpush2.bf16.msra.mxu0 %v8483_v51  ;;  %v8554_v53 = vld [vmem:[%s8986_s25 + $0xbac] ss:$16 sps:$4 sm:$0xff]   ;;  %v8552_v51 = vld [vmem:[%s8986_s25 + $0xba8] ss:$16 sps:$4 sm:$0xff]  }
 0x21f   : > { %5953 = vmatpush1.bf16.msra.mxu1 %v8486_v52  ;;  %5987 = vmatprep.subr.bf16.mxu0 %v8494_v35  ;;  %v8557_v52 = vld [vmem:[%s8986_s25 + $0x90c] ss:$16 sps:$4 sm:$0xff]   ;;  %v8555_v35 = vld [vmem:[%s8986_s25 + $0x908] ss:$16 sps:$4 sm:$0xff]  }
 0x220   : > { %5954 = vmatprep.subr.bf16.mxu1 %v8491_v45  ;;  %v8560_v45 = vld [vmem:[%s8986_s25 + $0xb8c] ss:$16 sps:$4 sm:$0xff]  }
 0x221   : > { %5938 = vmatmul.mubr.bf16.vlgmr.msra.gmra.mxu0 %v9169_v30  ;;  %v8504_v30 = vld [vmem:[%s8986_s25 + $0xaa8] ss:$16 sps:$4 sm:$0xff]  }
 0x222   : > { %5988 = vmatpush1.bf16.msra.mxu0 %v8492_v48  ;;  %6019 = vmatprep.mubr.bf16.mxu0 %v9196_v43  ;;  %v8515_v43 = vld [vmem:[%s8986_s25 + $0x9ec] ss:$16 sps:$4 sm:$0xff]  }
 0x223   : > { %5955 = vmatpush1.bf16.msra.mxu1 %v8489_v13  ;;  %5989 = vmatprep.subr.bf16.mxu0 %v8500_v61  ;;  %v8558_v13 = vld [vmem:[%s8986_s25 + $0xb88] ss:$16 sps:$4 sm:$0xff]   ;;  %v8563_v48 = vld [vmem:[%s8986_s25 + $0xb6c] ss:$16 sps:$4 sm:$0xff]  }
 0x224   : > { %5956 = vmatprep.subr.bf16.mxu1 %v8497_v58  ;;  %v8566_v58 = vld [vmem:[%s8986_s25 + $0xcec] ss:$16 sps:$4 sm:$0xff]   ;;  %v8561_v61 = vld [vmem:[%s8986_s25 + $0xb68] ss:$16 sps:$4 sm:$0xff]  }
 0x226   : > { %5990 = vmatpush1.bf16.msra.mxu0 %v8498_v62  ;;  %v8569_v62 = vld [vmem:[%s8986_s25 + $0xb4c] ss:$16 sps:$4 sm:$0xff]  }
 0x227   : > { %5957 = vmatpush1.bf16.msra.mxu1 %v8495_v57  ;;  %5991 = vmatprep.subr.bf16.mxu0 %v8506_v63  ;;  %v8564_v57 = vld [vmem:[%s8986_s25 + $0xce8] ss:$16 sps:$4 sm:$0xff]  }
 0x228   : > { %5958 = vmatprep.subr.bf16.mxu1 %v8503_v17  ;;  %v8572_v17 = vld [vmem:[%s8986_s25 + $0xccc] ss:$16 sps:$4 sm:$0xff]  }
 0x22a   : > { %5992 = vmatpush1.bf16.msra.mxu0 %v8504_v30 }
 0x22b   : > { %5959 = vmatpush1.bf16.msra.mxu1 %v8501_v2  ;;  %5993 = vmatprep.subr.bf16.mxu0 %v8512_v3  ;;  %v8570_v3 = vld [vmem:[%s8986_s25 + $0xcc8] ss:$16 sps:$4 sm:$0xff]  }
 0x22c   : > { %5960 = vmatprep.subr.bf16.mxu1 %v8509_v60  ;;  %v8567_v60 = vld [vmem:[%s8986_s25 + $0xb48] ss:$16 sps:$4 sm:$0xff]  }
 0x22e   : > { %5994 = vmatpush1.bf16.msra.mxu0 %v8510_v1 }
 0x22f   : > { %5961 = vmatpush1.bf16.msra.mxu1 %v8507_v5  ;;  %5995 = vmatprep.subr.bf16.mxu0 %v8518_v8  ;;  %v8578_v8 = vld [vmem:[%s8986_s25 + $0xcac] ss:$16 sps:$4 sm:$0xff]  }
 0x230   : > { %5962 = vmatprep.subr.bf16.mxu1 %v8515_v43  ;;  %v8575_v43 = vld [vmem:[%s8986_s25 + $0xb2c] ss:$16 sps:$4 sm:$0xff]  }
 0x232   : > { %5996 = vmatpush1.bf16.msra.mxu0 %v8516_v11 }
 0x233   : > { %5963 = vmatpush2.bf16.msra.mxu1 %v8513_v10  ;;  %5997 = vmatprep.subr.bf16.mxu0 %v8524_v49  ;;  %v8573_v49 = vld [vmem:[%s8986_s25 + $0xb28] ss:$16 sps:$4 sm:$0xff]  }
 0x234   : > { %5964 = vmatprep.subr.bf16.mxu1 %v8521_v16 }
 0x236   : > { %5998 = vmatpush1.bf16.msra.mxu0 %v8522_v18 }
 0x237   : > { %5965 = vmatpush2.bf16.msra.mxu1 %v8519_v19  ;;  %5999 = vmatprep.subr.bf16.mxu0 %v8530_v21  ;;  %v8576_v19 = vld [vmem:[%s8986_s25 + $0xca8] ss:$16 sps:$4 sm:$0xff]  }
 0x238   : > { %5966 = vmatprep.subr.bf16.mxu1 %v8527_v20  ;;  %v8579_v21 = vld [vmem:[%s8986_s25 + $0xb08] ss:$16 sps:$4 sm:$0xff]  }
 0x23a   : > { %6000 = vmatpush1.bf16.msra.mxu0 %v8528_v27  ;;  %v8587_v27 = vld [vmem:[%s8986_s25 + $0xc6c] ss:$16 sps:$4 sm:$0xff]  }
 0x23b   : > { %5967 = vmatpush2.bf16.msra.mxu1 %v8525_v40  ;;  %6001 = vmatprep.subr.bf16.mxu0 %v8536_v7  ;;  %v8582_v40 = vld [vmem:[%s8986_s25 + $0xc88] ss:$16 sps:$4 sm:$0xff]  }
 0x23c   : > { %5968 = vmatprep.subr.bf16.mxu1 %v8533_v23  ;;  %v8590_v23 = vld [vmem:[%s8986_s25 + $0xeec] ss:$16 sps:$4 sm:$0xff]   ;;  %v8585_v7 = vld [vmem:[%s8986_s25 + $0xc68] ss:$16 sps:$4 sm:$0xff]  }
 0x23e   : > { %6002 = vmatpush1.bf16.msra.mxu0 %v8534_v31  ;;  %v8593_v31 = vld [vmem:[%s8986_s25 + $0xc4c] ss:$16 sps:$4 sm:$0xff]  }
 0x23f   : > { %5969 = vmatpush2.bf16.msra.mxu1 %v8531_v29  ;;  %6003 = vmatprep.subr.bf16.mxu0 %v8542_v34  ;;  %v8588_v29 = vld [vmem:[%s8986_s25 + $0xee8] ss:$16 sps:$4 sm:$0xff]  }
 0x240   : > { %5970 = vmatprep.subr.bf16.mxu1 %v8539_v0  ;;  %v8596_v0 = vld [vmem:[%s8986_s25 + $0xecc] ss:$16 sps:$4 sm:$0xff]  }
 0x242   : > { %6004 = vmatpush2.bf16.msra.mxu0 %v8540_v46  ;;  %v8591_v46 = vld [vmem:[%s8986_s25 + $0xc48] ss:$16 sps:$4 sm:$0xff]  }
 0x243   : > { %5971 = vmatpush2.bf16.msra.mxu1 %v8537_v26  ;;  %6005 = vmatprep.subr.bf16.mxu0 %v8548_v39 }
 0x244   : > { %5972 = vmatprep.subr.bf16.mxu1 %v8545_v37  ;;  %v8594_v37 = vld [vmem:[%s8986_s25 + $0xec8] ss:$16 sps:$4 sm:$0xff]  }
 0x246   : > { %6006 = vmatpush2.bf16.msra.mxu0 %v8546_v32  ;;  %v8602_v32 = vld [vmem:[%s8986_s25 + $0xeac] ss:$16 sps:$4 sm:$0xff]  }
 0x247   : > { %5973 = vmatpush2.bf16.msra.mxu1 %v8543_v44  ;;  %6007 = vmatprep.subr.bf16.mxu0 %v8554_v53  ;;  %v8599_v44 = vld [vmem:[%s8986_s25 + $0xc2c] ss:$16 sps:$4 sm:$0xff]   ;;  %v8597_v53 = vld [vmem:[%s8986_s25 + $0xc28] ss:$16 sps:$4 sm:$0xff]  }
 0x248   : > { %5974 = vmatprep.subr.bf16.mxu1 %v8551_v47 }
 0x24a   : > { %6008 = vmatpush2.bf16.msra.mxu0 %v8552_v51 }
 0x24b   : > { %5975 = vmatpush2.bf16.msra.mxu1 %v8549_v41  ;;  %6009 = vmatprep.subr.bf16.mxu0 %v8560_v45  ;;  %v8600_v41 = vld [vmem:[%s8986_s25 + $0xea8] ss:$16 sps:$4 sm:$0xff]   ;;  %v8608_v45 = vld [vmem:[%s8986_s25 + $0xe8c] ss:$16 sps:$4 sm:$0xff]  }
 0x24c   : > { %5976 = vmatprep.subr.bf16.mxu1 %v8557_v52  ;;  %v8605_v52 = vld [vmem:[%s8986_s25 + $0xc0c] ss:$16 sps:$4 sm:$0xff]  }
 0x24e   : > { %6010 = vmatpush2.bf16.msra.mxu0 %v8558_v13  ;;  %v8611_v13 = vld [vmem:[%s8986_s25 + $0xdec] ss:$16 sps:$4 sm:$0xff]  }
 0x24f   : > { %5977 = vmatpush2.bf16.msra.mxu1 %v8555_v35  ;;  %6011 = vmatprep.subr.bf16.mxu0 %v8563_v48  ;;  %v8603_v35 = vld [vmem:[%s8986_s25 + $0xc08] ss:$16 sps:$4 sm:$0xff]   ;;  %v8614_v48 = vld [vmem:[%s8986_s25 + $0xe6c] ss:$16 sps:$4 sm:$0xff]  }
 0x250   : > { %6028 = vmatprep.subr.bf16.mxu1 %v8566_v58  ;;  %v8609_v58 = vld [vmem:[%s8986_s25 + $0xde8] ss:$16 sps:$4 sm:$0xff]  }
 0x251   : > { %v5693_v63 = vpop.f32.mrf.mxu0 }
 0x252   : > { %v5734_v2 = vpop.f32.mrf.mxu1  ;;  %5979 = vmatmul.mubr.bf16.vlgmr.msra.gmra.mxu1 %v9261_v50  ;;  %v5694_v30 = vadd.f32 %v5693_v63, %v9719_v36  ;;  %6012 = vmatpush2.bf16.msra.mxu0 %v8561_v61  ;;  %v8612_v61 = vld [vmem:[%s8986_s25 + $0xe68] ss:$16 sps:$4 sm:$0xff]  }
 0x253   : > { %6029 = vmatpush1.bf16.msra.mxu1 %v8564_v57  ;;  %v5695_v5 = vpop.f32.mrf.mxu0  ;;  %6013 = vmatprep.subr.bf16.mxu0 %v8569_v62  ;;  %v8617_v57 = vld [vmem:[%s8986_s25 + $0xdcc] ss:$16 sps:$4 sm:$0xff]   ;;  %v8618_v63 = vld [vmem:[%s8986_s25 + $0xe48] ss:$16 sps:$4 sm:$0xff]  }
 0x254   : > { %v5736_v1 = vpop.f32.mrf.mxu1  ;;  %6030 = vmatprep.subr.bf16.mxu1 %v8572_v17  ;;  %v5735_v10 = vadd.f32 %v5734_v2, %v5694_v30  ;;  %v5696_v11 = vadd.f32 %v5695_v5, %v9723_v38  ;;  %6060 = vmatprep.mubr.bf16.mxu1 %v9267_v54  ;;  %v8581_v38 = vld [vmem:[%s8986_s25 + $0xb0c] ss:$16 sps:$4 sm:$0xff]   ;;  %v8615_v17 = vld [vmem:[%s8986_s25 + $0xdc8] ss:$16 sps:$4 sm:$0xff]  }
 0x255   : > { %v5697_v50 = vpop.f32.mrf.mxu0  ;;  %v8584_v54 = vld [vmem:[%s8986_s25 + $0xc8c] ss:$16 sps:$4 sm:$0xff]  }
 0x256   : > { %v5738_v36 = vpop.f32.mrf.mxu1  ;;  %v5737_v16 = vadd.f32 %v5736_v1, %v5696_v11  ;;  %6014 = vmatpush2.bf16.msra.mxu0 %v8567_v60  ;;  %v8620_v62 = vld [vmem:[%s8986_s25 + $0xe4c] ss:$16 sps:$4 sm:$0xff]   ;;  %v8621_v60 = vld [vmem:[%s8986_s25 + $0xda8] ss:$16 sps:$4 sm:$0xff]  }
 0x257   : > { %6031 = vmatpush1.bf16.msra.mxu1 %v8570_v3  ;;  %v5698_v18 = vpop.f32.mrf.mxu0  ;;  %6015 = vmatprep.subr.bf16.mxu0 %v8575_v43  ;;  %v8623_v2 = vld [vmem:[%s8986_s25 + $0xdac] ss:$16 sps:$4 sm:$0xff]   ;;  %v8624_v3 = vld [vmem:[%s8986_s25 + $0xe28] ss:$16 sps:$4 sm:$0xff]  }
 0x258   : > { %v5739_v20 = vpop.f32.mrf.mxu1  ;;  %6032 = vmatprep.subr.bf16.mxu1 %v8578_v8  ;;  %v8626_v30 = vld [vmem:[%s8986_s25 + $0xe2c] ss:$16 sps:$4 sm:$0xff]   ;;  %v8627_v43 = vld [vmem:[%s8986_s25 + $0xd88] ss:$16 sps:$4 sm:$0xff]  }
 0x259   : > { %v8629_v5 = vld [vmem:[%s8986_s25 + $0xd8c] ss:$16 sps:$4 sm:$0xff]   ;;  %v8630_v8 = vld [vmem:[%s8986_s25 + $0xe08] ss:$16 sps:$4 sm:$0xff]  }
 0x25a   : > { %6016 = vmatpush2.bf16.msra.mxu0 %v8573_v49  ;;  %v8632_v1 = vld [vmem:[%s8986_s25 + $0xe0c] ss:$16 sps:$4 sm:$0xff]   ;;  %v8633_v50 = vld [vmem:[%s8986_s25 + $0xd68] ss:$16 sps:$4 sm:$0xff]  }
 0x25b   : > { %6033 = vmatpush1.bf16.msra.mxu1 %v8576_v19  ;;  %6017 = vmatprep.subr.bf16.mxu0 %v8581_v38  ;;  %v8638_v11 = vld [vmem:[%s8986_s25 + $0xfec] ss:$16 sps:$4 sm:$0xff]   ;;  %v8636_v36 = vld [vmem:[%s8986_s25 + $0xfe8] ss:$16 sps:$4 sm:$0xff]  }
 0x25c   : > { %6034 = vmatprep.subr.bf16.mxu1 %v8584_v54  ;;  %v8644_v49 = vld [vmem:[%s8986_s25 + $0xfcc] ss:$16 sps:$4 sm:$0xff]   ;;  %v8639_v19 = vld [vmem:[%s8986_s25 + $0xd48] ss:$16 sps:$4 sm:$0xff]  }
 0x25d   : > { %v8642_v18 = vld [vmem:[%s8986_s25 + $0xfc8] ss:$16 sps:$4 sm:$0xff]   ;;  %v8647_v20 = vld [vmem:[%s8986_s25 + $0xd2c] ss:$16 sps:$4 sm:$0xff]  }
 0x25e   : > { %6018 = vmatpush2.bf16.msra.mxu0 %v8579_v21  ;;  %v8650_v38 = vld [vmem:[%s8986_s25 + $0xfac] ss:$16 sps:$4 sm:$0xff]   ;;  %v8645_v54 = vld [vmem:[%s8986_s25 + $0xd28] ss:$16 sps:$4 sm:$0xff]  }
 0x25f   : > { %6035 = vmatpush1.bf16.msra.mxu1 %v8582_v40  ;;  %6069 = vmatprep.subr.bf16.mxu0 %v8590_v23  ;;  %v8648_v21 = vld [vmem:[%s8986_s25 + $0xfa8] ss:$16 sps:$4 sm:$0xff]   ;;  %v8653_v40 = vld [vmem:[%s8986_s25 + $0xd0c] ss:$16 sps:$4 sm:$0xff]  }
 0x260   : > { %6036 = vmatprep.subr.bf16.mxu1 %v8587_v27  ;;  %v8656_v27 = vld [vmem:[%s8986_s25 + $0xf8c] ss:$16 sps:$4 sm:$0xff]   ;;  %v8651_v23 = vld [vmem:[%s8986_s25 + $0xd08] ss:$16 sps:$4 sm:$0xff]  }
 0x261   : > { %v5775_v34 = vpop.f32.mrf.mxu0  ;;  %6020 = vmatmul.mubr.bf16.vlgmr.msra.gmra.mxu0 %v9271_v55 }
 0x262   : > { %v9808_v26 = vadd.f32 %v5775_v34, %v5735_v10  ;;  %6070 = vmatpush1.bf16.msra.mxu0 %v8588_v29  ;;  %6101 = vmatprep.mubr.bf16.mxu0 %v9279_v59  ;;  %v8606_v59 = vld [vmem:[%s8986_s25 + $0xe88] ss:$16 sps:$4 sm:$0xff]   ;;  %v8635_v10 = vld [vmem:[%s8986_s25 + $0xd6c] ss:$16 sps:$4 sm:$0xff]  }
 0x263   : > { %6037 = vmatpush1.bf16.msra.mxu1 %v8585_v7  ;;  %v5777_v39 = vpop.f32.mrf.mxu0  ;;  %6071 = vmatprep.subr.bf16.mxu0 %v8596_v0  ;;  %v8654_v7 = vld [vmem:[%s8986_s25 + $0xf88] ss:$16 sps:$4 sm:$0xff]   ;;  %v8659_v29 = vld [vmem:[%s8986_s25 + $0xf6c] ss:$16 sps:$4 sm:$0xff]  }
 0x264   : > { %6038 = vmatprep.subr.bf16.mxu1 %v8593_v31  ;;  %v9814_v47 = vadd.f32 %v5777_v39, %v5737_v16  ;;  %v8641_v16 = vld [vmem:[%s8986_s25 + $0xd4c] ss:$16 sps:$4 sm:$0xff]   ;;  %v8657_v0 = vld [vmem:[%s8986_s25 + $0xf68] ss:$16 sps:$4 sm:$0xff]  }
 0x265   : > { %v5779_v55 = vpop.f32.mrf.mxu0  ;;  %v8662_v31 = vld [vmem:[%s8986_s25 + $0x10ec] ss:$16 sps:$4 sm:$0xff]   ;;  %v8660_v34 = vld [vmem:[%s8986_s25 + $0x10e8] ss:$16 sps:$4 sm:$0xff]  }
 0x266   : > { %6072 = vmatpush1.bf16.msra.mxu0 %v8594_v37  ;;  %v8668_v37 = vld [vmem:[%s8986_s25 + $0x10cc] ss:$16 sps:$4 sm:$0xff]  }
 0x267   : > { %6039 = vmatpush1.bf16.msra.mxu1 %v8591_v46  ;;  %v5780_v51 = vpop.f32.mrf.mxu0  ;;  %6073 = vmatprep.subr.bf16.mxu0 %v8602_v32  ;;  %v8665_v46 = vld [vmem:[%s8986_s25 + $0xf4c] ss:$16 sps:$4 sm:$0xff]   ;;  %v8666_v32 = vld [vmem:[%s8986_s25 + $0x10c8] ss:$16 sps:$4 sm:$0xff]  }
 0x268   : > { %6040 = vmatprep.subr.bf16.mxu1 %v8599_v44  ;;  %v8663_v44 = vld [vmem:[%s8986_s25 + $0xf48] ss:$16 sps:$4 sm:$0xff]  }
 0x26a   : > { %6074 = vmatpush1.bf16.msra.mxu0 %v8600_v41  ;;  %v8674_v41 = vld [vmem:[%s8986_s25 + $0x10ac] ss:$16 sps:$4 sm:$0xff]  }
 0x26b   : > { %6041 = vmatpush1.bf16.msra.mxu1 %v8597_v53  ;;  %6075 = vmatprep.subr.bf16.mxu0 %v8608_v45  ;;  %v8671_v53 = vld [vmem:[%s8986_s25 + $0xf2c] ss:$16 sps:$4 sm:$0xff]  }
 0x26c   : > { %6042 = vmatprep.subr.bf16.mxu1 %v8605_v52  ;;  %v8672_v52 = vld [vmem:[%s8986_s25 + $0x10a8] ss:$16 sps:$4 sm:$0xff]  }
 0x26e   : > { %6076 = vmatpush1.bf16.msra.mxu0 %v8606_v59  ;;  %v8680_v59 = vld [vmem:[%s8986_s25 + $0x108c] ss:$16 sps:$4 sm:$0xff]  }
 0x26f   : > { %6043 = vmatpush1.bf16.msra.mxu1 %v8603_v35  ;;  %6077 = vmatprep.subr.bf16.mxu0 %v8614_v48  ;;  %v8677_v35 = vld [vmem:[%s8986_s25 + $0xf0c] ss:$16 sps:$4 sm:$0xff]   ;;  %v8675_v48 = vld [vmem:[%s8986_s25 + $0xf08] ss:$16 sps:$4 sm:$0xff]  }
 0x270   : > { %6044 = vmatprep.subr.bf16.mxu1 %v8611_v13  ;;  %v1126_v13 = vsub.s32 2, %v9028_v42 }
 0x272   : > { %6078 = vmatpush1.bf16.msra.mxu0 %v8612_v61  ;;  %v8683_v61 = vld [vmem:[%s8986_s25 + $0x106c] ss:$16 sps:$4 sm:$0xff]  }
 0x273   : > { %6045 = vmatpush2.bf16.msra.mxu1 %v8609_v58  ;;  %6079 = vmatprep.subr.bf16.mxu0 %v8620_v62  ;;  %v8678_v58 = vld [vmem:[%s8986_s25 + $0x1088] ss:$16 sps:$4 sm:$0xff]   ;;  %v8905_v62 = vld [vmem:[%s9351_s8] sm:$0xf] }
 0x274   : > { %6046 = vmatprep.subr.bf16.mxu1 %v8617_v57  ;;  %v8686_v57 = vld [vmem:[%s8986_s25 + $0x12ec] ss:$16 sps:$4 sm:$0xff]  }
 0x276   : > { %6080 = vmatpush1.bf16.msra.mxu0 %v8618_v63 }
 0x277   : > { %6047 = vmatpush2.bf16.msra.mxu1 %v8615_v17  ;;  %6081 = vmatprep.subr.bf16.mxu0 %v8626_v30  ;;  %v1127_v17 = vrot.slane %v8905_v62, %v1126_v13  ;;  %v8689_v30 = vld [vmem:[%s8986_s25 + $0x104c] ss:$16 sps:$4 sm:$0xff]   ;;  %v8738_v13 = vld [vmem:[%s8986_s25 + $0x13c8] ss:$16 sps:$4 sm:$0xff]  }
 0x278   : > { %6048 = vmatprep.subr.bf16.mxu1 %v8623_v2  ;;  %v8684_v2 = vld [vmem:[%s8986_s25 + $0x12e8] ss:$16 sps:$4 sm:$0xff]  }
 0x27a   : > { %6082 = vmatpush1.bf16.msra.mxu0 %v8624_v3 }
 0x27b   : > { %6049 = vmatpush2.bf16.msra.mxu1 %v8621_v60  ;;  %6083 = vmatprep.subr.bf16.mxu0 %v8632_v1  ;;  %v8692_v60 = vld [vmem:[%s8986_s25 + $0x12cc] ss:$16 sps:$4 sm:$0xff]   ;;  %v8690_v1 = vld [vmem:[%s8986_s25 + $0x12c8] ss:$16 sps:$4 sm:$0xff]  }
 0x27c   : > { %6050 = vmatprep.subr.bf16.mxu1 %v8629_v5  ;;  %v8687_v5 = vld [vmem:[%s8986_s25 + $0x1048] ss:$16 sps:$4 sm:$0xff]  }
 0x27e   : > { %6084 = vmatpush1.bf16.msra.mxu0 %v8630_v8  ;;  %v8695_v8 = vld [vmem:[%s8986_s25 + $0x102c] ss:$16 sps:$4 sm:$0xff]  }
 0x27f   : > { %6051 = vmatpush2.bf16.msra.mxu1 %v8627_v43  ;;  %6085 = vmatprep.subr.bf16.mxu0 %v8638_v11 }
 0x280   : > { %6052 = vmatprep.subr.bf16.mxu1 %v8635_v10 }
 0x282   : > { %6086 = vmatpush2.bf16.msra.mxu0 %v8636_v36  ;;  %v8698_v36 = vld [vmem:[%s8986_s25 + $0x12ac] ss:$16 sps:$4 sm:$0xff]  }
 0x283   : > { %6053 = vmatpush2.bf16.msra.mxu1 %v8633_v50  ;;  %6087 = vmatprep.subr.bf16.mxu0 %v8644_v49  ;;  %v8693_v49 = vld [vmem:[%s8986_s25 + $0x1028] ss:$16 sps:$4 sm:$0xff]  }
 0x284   : > { %6054 = vmatprep.subr.bf16.mxu1 %v8641_v16 }
 0x286   : > { %6088 = vmatpush2.bf16.msra.mxu0 %v8642_v18 }
 0x287   : > { %6055 = vmatpush2.bf16.msra.mxu1 %v8639_v19  ;;  %6089 = vmatprep.subr.bf16.mxu0 %v8650_v38  ;;  %v8696_v19 = vld [vmem:[%s8986_s25 + $0x12a8] ss:$16 sps:$4 sm:$0xff]   ;;  %v8704_v38 = vld [vmem:[%s8986_s25 + $0x128c] ss:$16 sps:$4 sm:$0xff]  }
 0x288   : > { %6056 = vmatprep.subr.bf16.mxu1 %v8647_v20  ;;  %v8701_v20 = vld [vmem:[%s8986_s25 + $0x100c] ss:$16 sps:$4 sm:$0xff]  }
 0x28a   : > { %6090 = vmatpush2.bf16.msra.mxu0 %v8648_v21  ;;  %v8702_v21 = vld [vmem:[%s8986_s25 + $0x1288] ss:$16 sps:$4 sm:$0xff]  }
 0x28b   : > { %6057 = vmatpush2.bf16.msra.mxu1 %v8645_v54  ;;  %6091 = vmatprep.subr.bf16.mxu0 %v8656_v27  ;;  %v8699_v54 = vld [vmem:[%s8986_s25 + $0x1008] ss:$16 sps:$4 sm:$0xff]  }
 0x28c   : > { %6058 = vmatprep.subr.bf16.mxu1 %v8653_v40  ;;  %v8710_v40 = vld [vmem:[%s8986_s25 + $0x126c] ss:$16 sps:$4 sm:$0xff]   ;;  %v8705_v27 = vld [vmem:[%s8986_s25 + $0x11e8] ss:$16 sps:$4 sm:$0xff]  }
 0x28e   : > { %6092 = vmatpush2.bf16.msra.mxu0 %v8654_v7  ;;  %v8713_v7 = vld [vmem:[%s8986_s25 + $0x11cc] ss:$16 sps:$4 sm:$0xff]  }
 0x28f   : > { %6059 = vmatpush2.bf16.msra.mxu1 %v8651_v23  ;;  %6093 = vmatprep.subr.bf16.mxu0 %v8659_v29  ;;  %v8708_v23 = vld [vmem:[%s8986_s25 + $0x1268] ss:$16 sps:$4 sm:$0xff]   ;;  %v8716_v29 = vld [vmem:[%s8986_s25 + $0x124c] ss:$16 sps:$4 sm:$0xff]  }
 0x290   : > { %6110 = vmatprep.subr.bf16.mxu1 %v8662_v31  ;;  %v8711_v31 = vld [vmem:[%s8986_s25 + $0x11c8] ss:$16 sps:$4 sm:$0xff]  }
 0x292   : > { %v5816_v39 = vpop.f32.mrf.mxu1  ;;  %6061 = vmatmul.mubr.bf16.vlgmr.msra.gmra.mxu1 %v9361_v15  ;;  %6094 = vmatpush2.bf16.msra.mxu0 %v8657_v0  ;;  %v8669_v15 = vld [vmem:[%s8986_s25 + $0xf28] ss:$16 sps:$4 sm:$0xff]  }
 0x293   : > { %6111 = vmatpush1.bf16.msra.mxu1 %v8660_v34  ;;  %6095 = vmatprep.subr.bf16.mxu0 %v8665_v46  ;;  %v5817_v3 = vadd.f32 %v5816_v39, %v1127_v17  ;;  %v8714_v0 = vld [vmem:[%s8986_s25 + $0x1248] ss:$16 sps:$4 sm:$0xff]   ;;  %v8719_v34 = vld [vmem:[%s8986_s25 + $0x11ac] ss:$16 sps:$4 sm:$0xff]  }
 0x294   : > { %v5818_v55 = vpop.f32.mrf.mxu1  ;;  %6112 = vmatprep.subr.bf16.mxu1 %v8668_v37  ;;  %6142 = vmatprep.mubr.bf16.mxu1 %v9368_v22  ;;  %v1130_v22 = vsub.s32 3, %v9028_v42  ;;  %v8681_v42 = vld [vmem:[%s8986_s25 + $0x1068] ss:$16 sps:$4 sm:$0xff]   ;;  %v8722_v46 = vld [vmem:[%s8986_s25 + $0x122c] ss:$16 sps:$4 sm:$0xff]  }
 0x295   : > { %v8717_v37 = vld [vmem:[%s8986_s25 + $0x11a8] ss:$16 sps:$4 sm:$0xff]  }
 0x296   : > { %v5820_v51 = vpop.f32.mrf.mxu1  ;;  %6096 = vmatpush2.bf16.msra.mxu0 %v8663_v44  ;;  %v1131_v63 = vrot.slane %v8905_v62, %v1130_v22  ;;  %v8720_v39 = vld [vmem:[%s8986_s25 + $0x1228] ss:$16 sps:$4 sm:$0xff]   ;;  %v8725_v44 = vld [vmem:[%s8986_s25 + $0x118c] ss:$16 sps:$4 sm:$0xff]  }
 0x297   : > { %6113 = vmatpush1.bf16.msra.mxu1 %v8666_v32  ;;  %6097 = vmatprep.subr.bf16.mxu0 %v8671_v53  ;;  %v8728_v32 = vld [vmem:[%s8986_s25 + $0x120c] ss:$16 sps:$4 sm:$0xff]   ;;  %v8726_v53 = vld [vmem:[%s8986_s25 + $0x1208] ss:$16 sps:$4 sm:$0xff]  }
 0x298   : > { %v5821_v45 = vpop.f32.mrf.mxu1  ;;  %6114 = vmatprep.subr.bf16.mxu1 %v8674_v41  ;;  %v5819_v10 = vadd.f32 %v5818_v55, %v1131_v63  ;;  %v8723_v55 = vld [vmem:[%s8986_s25 + $0x1188] ss:$16 sps:$4 sm:$0xff]   ;;  %v8731_v41 = vld [vmem:[%s8986_s25 + $0x116c] ss:$16 sps:$4 sm:$0xff]  }
 0x299   : > { %v8734_v51 = vld [vmem:[%s8986_s25 + $0x13ec] ss:$16 sps:$4 sm:$0xff]   ;;  %v8747_v17 = vld [vmem:[%s8986_s25 + $0x1108] ss:$16 sps:$4 sm:$0xff]  }
 0x29a   : > { %6098 = vmatpush2.bf16.msra.mxu0 %v8669_v15  ;;  %v8729_v15 = vld [vmem:[%s8986_s25 + $0x1168] ss:$16 sps:$4 sm:$0xff]   ;;  %v8737_v45 = vld [vmem:[%s8986_s25 + $0x114c] ss:$16 sps:$4 sm:$0xff]  }
 0x29b   : > { %6115 = vmatpush1.bf16.msra.mxu1 %v8672_v52  ;;  %6099 = vmatprep.subr.bf16.mxu0 %v8677_v35  ;;  %v8732_v52 = vld [vmem:[%s8986_s25 + $0x13e8] ss:$16 sps:$4 sm:$0xff]   ;;  %v8740_v35 = vld [vmem:[%s8986_s25 + $0x13cc] ss:$16 sps:$4 sm:$0xff]  }
 0x29c   : > { %6116 = vmatprep.subr.bf16.mxu1 %v8680_v59  ;;  %v8735_v59 = vld [vmem:[%s8986_s25 + $0x1148] ss:$16 sps:$4 sm:$0xff]   ;;  %v8743_v22 = vld [vmem:[%s8986_s25 + $0x112c] ss:$16 sps:$4 sm:$0xff]  }
 0x29d   : > { %v8752_v62 = vld [vmem:[%s8986_s25 + $0x138c] ss:$16 sps:$4 sm:$0xff]   ;;  %v8750_v63 = vld [vmem:[%s8986_s25 + $0x1388] ss:$16 sps:$4 sm:$0xff]  }
 0x29e   : > { %6100 = vmatpush2.bf16.msra.mxu0 %v8675_v48  ;;  %v8746_v48 = vld [vmem:[%s8986_s25 + $0x13ac] ss:$16 sps:$4 sm:$0xff]  }
 0x29f   : > { %6117 = vmatpush1.bf16.msra.mxu1 %v8678_v58  ;;  %6151 = vmatprep.subr.bf16.mxu0 %v8686_v57  ;;  %v8741_v58 = vld [vmem:[%s8986_s25 + $0x1128] ss:$16 sps:$4 sm:$0xff]   ;;  %v8749_v57 = vld [vmem:[%s8986_s25 + $0x110c] ss:$16 sps:$4 sm:$0xff]  }
 0x2a0   : > { %6118 = vmatprep.subr.bf16.mxu1 %v8683_v61  ;;  %v8744_v61 = vld [vmem:[%s8986_s25 + $0x13a8] ss:$16 sps:$4 sm:$0xff]  }
 0x2a1   : > { %v5857_v43 = vpop.f32.mrf.mxu0  ;;  %6102 = vmatmul.mubr.bf16.vlgmr.msra.gmra.mxu0 %v9372_v24 }
 0x2a2   : > { %v9892_v11 = vadd.f32 %v5857_v43, %v5817_v3  ;;  %6152 = vmatpush1.bf16.msra.mxu0 %v8684_v2  ;;  %6183 = vmatprep.mubr.bf16.mxu0 %v9380_v6  ;;  %v8707_v6 = vld [vmem:[%s8986_s25 + $0x11ec] ss:$16 sps:$4 sm:$0xff]  }
 0x2a3   : > { %6119 = vmatpush1.bf16.msra.mxu1 %v8681_v42  ;;  %v5859_v50 = vpop.f32.mrf.mxu0  ;;  %6153 = vmatprep.subr.bf16.mxu0 %v8692_v60  ;;  %v8755_v42 = vld [vmem:[%s8986_s25 + $0x136c] ss:$16 sps:$4 sm:$0xff]   ;;  %v8756_v60 = vld [vmem:[%s8986_s25 + $0x14e8] ss:$16 sps:$4 sm:$0xff]  }
 0x2a4   : > { %6120 = vmatprep.subr.bf16.mxu1 %v8689_v30  ;;  %v9895_v16 = vadd.f32 %v5859_v50, %v5819_v10  ;;  %v8758_v2 = vld [vmem:[%s8986_s25 + $0x14ec] ss:$16 sps:$4 sm:$0xff]   ;;  %v8753_v30 = vld [vmem:[%s8986_s25 + $0x1368] ss:$16 sps:$4 sm:$0xff]  }
 0x2a5   : > { %v5861_v24 = vpop.f32.mrf.mxu0  ;;  %v8761_v3 = vld [vmem:[%s8986_s25 + $0x134c] ss:$16 sps:$4 sm:$0xff]   ;;  %v8762_v10 = vld [vmem:[%s8986_s25 + $0x14c8] ss:$16 sps:$4 sm:$0xff]  }
 0x2a6   : > { %6154 = vmatpush1.bf16.msra.mxu0 %v8690_v1  ;;  %v8768_v24 = vld [vmem:[%s8986_s25 + $0x14a8] ss:$16 sps:$4 sm:$0xff]  }
 0x2a7   : > { %6121 = vmatpush1.bf16.msra.mxu1 %v8687_v5  ;;  %v5862_v18 = vpop.f32.mrf.mxu0  ;;  %6155 = vmatprep.subr.bf16.mxu0 %v8698_v36  ;;  %v8764_v5 = vld [vmem:[%s8986_s25 + $0x14cc] ss:$16 sps:$4 sm:$0xff]  }
 0x2a8   : > { %6122 = vmatprep.subr.bf16.mxu1 %v8695_v8  ;;  %v8759_v8 = vld [vmem:[%s8986_s25 + $0x1348] ss:$16 sps:$4 sm:$0xff]   ;;  %v8767_v36 = vld [vmem:[%s8986_s25 + $0x132c] ss:$16 sps:$4 sm:$0xff]  }
 0x2aa   : > { %6156 = vmatpush1.bf16.msra.mxu0 %v8696_v19 }
 0x2ab   : > { %6123 = vmatpush1.bf16.msra.mxu1 %v8693_v49  ;;  %6157 = vmatprep.subr.bf16.mxu0 %v8704_v38  ;;  %v8770_v49 = vld [vmem:[%s8986_s25 + $0x14ac] ss:$16 sps:$4 sm:$0xff]  }
 0x2ac   : > { %6124 = vmatprep.subr.bf16.mxu1 %v8701_v20  ;;  %v8773_v20 = vld [vmem:[%s8986_s25 + $0x130c] ss:$16 sps:$4 sm:$0xff]  }
 0x2ad   : > { %v8776_v38 = vld [vmem:[%s8986_s25 + $0x148c] ss:$16 sps:$4 sm:$0xff]  }
 0x2ae   : > { %6158 = vmatpush1.bf16.msra.mxu0 %v8702_v21  ;;  %v8782_v21 = vld [vmem:[%s8986_s25 + $0x16ec] ss:$16 sps:$4 sm:$0xff]  }
 0x2af   : > { %6125 = vmatpush1.bf16.msra.mxu1 %v8699_v54  ;;  %6159 = vmatprep.subr.bf16.mxu0 %v8710_v40  ;;  %v8779_v54 = vld [vmem:[%s8986_s25 + $0x146c] ss:$16 sps:$4 sm:$0xff]   ;;  %v8780_v40 = vld [vmem:[%s8986_s25 + $0x16e8] ss:$16 sps:$4 sm:$0xff]  }
 0x2b0   : > { %6126 = vmatprep.subr.bf16.mxu1 %v8707_v6  ;;  %v8777_v6 = vld [vmem:[%s8986_s25 + $0x1468] ss:$16 sps:$4 sm:$0xff]  }
 0x2b2   : > { %6160 = vmatpush1.bf16.msra.mxu0 %v8708_v23  ;;  %v8788_v23 = vld [vmem:[%s8986_s25 + $0x16cc] ss:$16 sps:$4 sm:$0xff]  }
 0x2b3   : > { %6127 = vmatpush2.bf16.msra.mxu1 %v8705_v27  ;;  %6161 = vmatprep.subr.bf16.mxu0 %v8716_v29  ;;  %v8785_v27 = vld [vmem:[%s8986_s25 + $0x144c] ss:$16 sps:$4 sm:$0xff]  }
 0x2b4   : > { %6128 = vmatprep.subr.bf16.mxu1 %v8713_v7 }
 0x2b6   : > { %6162 = vmatpush1.bf16.msra.mxu0 %v8714_v0  ;;  %v8786_v0 = vld [vmem:[%s8986_s25 + $0x16c8] ss:$16 sps:$4 sm:$0xff]  }
 0x2b7   : > { %6129 = vmatpush2.bf16.msra.mxu1 %v8711_v31  ;;  %6163 = vmatprep.subr.bf16.mxu0 %v8722_v46  ;;  %v8783_v31 = vld [vmem:[%s8986_s25 + $0x1448] ss:$16 sps:$4 sm:$0xff]   ;;  %v8791_v46 = vld [vmem:[%s8986_s25 + $0x142c] ss:$16 sps:$4 sm:$0xff]  }
 0x2b8   : > { %6130 = vmatprep.subr.bf16.mxu1 %v8719_v34 }
 0x2ba   : > { %6164 = vmatpush1.bf16.msra.mxu0 %v8720_v39 }
 0x2bb   : > { %6131 = vmatpush2.bf16.msra.mxu1 %v8717_v37  ;;  %6165 = vmatprep.subr.bf16.mxu0 %v8728_v32  ;;  %v8794_v37 = vld [vmem:[%s8986_s25 + $0x16ac] ss:$16 sps:$4 sm:$0xff]   ;;  %v8792_v32 = vld [vmem:[%s8986_s25 + $0x16a8] ss:$16 sps:$4 sm:$0xff]  }
 0x2bc   : > { %6132 = vmatprep.subr.bf16.mxu1 %v8725_v44  ;;  %v8789_v44 = vld [vmem:[%s8986_s25 + $0x1428] ss:$16 sps:$4 sm:$0xff]  }
 0x2be   : > { %6166 = vmatpush1.bf16.msra.mxu0 %v8726_v53  ;;  %v8797_v53 = vld [vmem:[%s8986_s25 + $0x140c] ss:$16 sps:$4 sm:$0xff]  }
 0x2bf   : > { %6133 = vmatpush2.bf16.msra.mxu1 %v8723_v55  ;;  %6167 = vmatprep.subr.bf16.mxu0 %v8734_v51  ;;  %v8795_v51 = vld [vmem:[%s8986_s25 + $0x1408] ss:$16 sps:$4 sm:$0xff]  }
 0x2c0   : > { %6134 = vmatprep.subr.bf16.mxu1 %v8731_v41  ;;  %v8800_v41 = vld [vmem:[%s8986_s25 + $0x168c] ss:$16 sps:$4 sm:$0xff]  }
 0x2c2   : > { %6168 = vmatpush2.bf16.msra.mxu0 %v8732_v52  ;;  %v8806_v52 = vld [vmem:[%s8986_s25 + $0x166c] ss:$16 sps:$4 sm:$0xff]  }
 0x2c3   : > { %6135 = vmatpush2.bf16.msra.mxu1 %v8729_v15  ;;  %6169 = vmatprep.subr.bf16.mxu0 %v8740_v35  ;;  %v8803_v15 = vld [vmem:[%s8986_s25 + $0x15ec] ss:$16 sps:$4 sm:$0xff]   ;;  %v8804_v35 = vld [vmem:[%s8986_s25 + $0x1668] ss:$16 sps:$4 sm:$0xff]  }
 0x2c4   : > { %6136 = vmatprep.subr.bf16.mxu1 %v8737_v45  ;;  %v8801_v45 = vld [vmem:[%s8986_s25 + $0x15e8] ss:$16 sps:$4 sm:$0xff]  }
 0x2c6   : > { %6170 = vmatpush2.bf16.msra.mxu0 %v8738_v13  ;;  %v8812_v13 = vld [vmem:[%s8986_s25 + $0x164c] ss:$16 sps:$4 sm:$0xff]  }
 0x2c7   : > { %6137 = vmatpush2.bf16.msra.mxu1 %v8735_v59  ;;  %6171 = vmatprep.subr.bf16.mxu0 %v8746_v48  ;;  %v8809_v59 = vld [vmem:[%s8986_s25 + $0x15cc] ss:$16 sps:$4 sm:$0xff]   ;;  %v8810_v48 = vld [vmem:[%s8986_s25 + $0x1648] ss:$16 sps:$4 sm:$0xff]  }
 0x2c8   : > { %6138 = vmatprep.subr.bf16.mxu1 %v8743_v22  ;;  %v8807_v22 = vld [vmem:[%s8986_s25 + $0x15c8] ss:$16 sps:$4 sm:$0xff]  }
 0x2ca   : > { %6172 = vmatpush2.bf16.msra.mxu0 %v8744_v61  ;;  %v8818_v61 = vld [vmem:[%s8986_s25 + $0x162c] ss:$16 sps:$4 sm:$0xff]  }
 0x2cb   : > { %6139 = vmatpush2.bf16.msra.mxu1 %v8741_v58  ;;  %6173 = vmatprep.subr.bf16.mxu0 %v8752_v62  ;;  %v8815_v58 = vld [vmem:[%s8986_s25 + $0x15ac] ss:$16 sps:$4 sm:$0xff]   ;;  %v8816_v62 = vld [vmem:[%s8986_s25 + $0x1628] ss:$16 sps:$4 sm:$0xff]  }
 0x2cc   : > { %6140 = vmatprep.subr.bf16.mxu1 %v8749_v57  ;;  %v8813_v57 = vld [vmem:[%s8986_s25 + $0x15a8] ss:$16 sps:$4 sm:$0xff]  }
 0x2ce   : > { %6174 = vmatpush2.bf16.msra.mxu0 %v8750_v63  ;;  %v8824_v63 = vld [vmem:[%s8986_s25 + $0x160c] ss:$16 sps:$4 sm:$0xff]  }
 0x2cf   : > { %6141 = vmatpush2.bf16.msra.mxu1 %v8747_v17  ;;  %6175 = vmatprep.subr.bf16.mxu0 %v8755_v42  ;;  %v8821_v17 = vld [vmem:[%s8986_s25 + $0x158c] ss:$16 sps:$4 sm:$0xff]   ;;  %v8819_v42 = vld [vmem:[%s8986_s25 + $0x1588] ss:$16 sps:$4 sm:$0xff]  }
 0x2d0   : > { %6192 = vmatprep.subr.bf16.mxu1 %v8758_v2  ;;  %v8822_v2 = vld [vmem:[%s8986_s25 + $0x1608] ss:$16 sps:$4 sm:$0xff]  }
 0x2d2   : > { %v5898_v1 = vpop.f32.mrf.mxu1  ;;  %6143 = vmatmul.mubr.bf16.vlgmr.msra.gmra.mxu1 %v9455_v12  ;;  %6176 = vmatpush2.bf16.msra.mxu0 %v8753_v30  ;;  %v8827_v30 = vld [vmem:[%s8986_s25 + $0x156c] ss:$16 sps:$4 sm:$0xff]  }
 0x2d3   : > { %v5899_v43 = vadd.f32 %v5898_v1, %v9892_v11  ;;  %6193 = vmatpush1.bf16.msra.mxu1 %v8756_v60  ;;  %6177 = vmatprep.subr.bf16.mxu0 %v8761_v3  ;;  %v8765_v11 = vld [vmem:[%s8986_s25 + $0x1328] ss:$16 sps:$4 sm:$0xff]   ;;  %v8830_v60 = vld [vmem:[%s8986_s25 + $0x17ec] ss:$16 sps:$4 sm:$0xff]  }
 0x2d4   : > { %v5900_v50 = vpop.f32.mrf.mxu1  ;;  %6194 = vmatprep.subr.bf16.mxu1 %v8764_v5  ;;  %6224 = vmatprep.mubr.bf16.mxu1 %v9464_v25  ;;  %v8774_v25 = vld [vmem:[%s8986_s25 + $0x1488] ss:$16 sps:$4 sm:$0xff]   ;;  %v8833_v1 = vld [vmem:[%s8986_s25 + $0x154c] ss:$16 sps:$4 sm:$0xff]  }
 0x2d5   : > { %v5901_v19 = vadd.f32 %v5900_v50, %v9895_v16  ;;  %v8771_v16 = vld [vmem:[%s8986_s25 + $0x1308] ss:$16 sps:$4 sm:$0xff]   ;;  %v8839_v50 = vld [vmem:[%s8986_s25 + $0x152c] ss:$16 sps:$4 sm:$0xff]  }
 0x2d6   : > { %v5902_v12 = vpop.f32.mrf.mxu1  ;;  %6178 = vmatpush2.bf16.msra.mxu0 %v8759_v8  ;;  %v8825_v3 = vld [vmem:[%s8986_s25 + $0x1568] ss:$16 sps:$4 sm:$0xff]  }
 0x2d7   : > { %6195 = vmatpush1.bf16.msra.mxu1 %v8762_v10  ;;  %6179 = vmatprep.subr.bf16.mxu0 %v8767_v36  ;;  %v8828_v5 = vld [vmem:[%s8986_s25 + $0x17e8] ss:$16 sps:$4 sm:$0xff]   ;;  %v8842_v36 = vld [vmem:[%s8986_s25 + $0x17ac] ss:$16 sps:$4 sm:$0xff]  }
 0x2d8   : > { %v5903_v18 = vpop.f32.mrf.mxu1  ;;  %6196 = vmatprep.subr.bf16.mxu1 %v8770_v49  ;;  %v8831_v8 = vld [vmem:[%s8986_s25 + $0x1548] ss:$16 sps:$4 sm:$0xff]   ;;  %v8845_v12 = vld [vmem:[%s8986_s25 + $0x150c] ss:$16 sps:$4 sm:$0xff]  }
 0x2d9   : > { %v8834_v10 = vld [vmem:[%s8986_s25 + $0x17c8] ss:$16 sps:$4 sm:$0xff]  }
 0x2da   : > { %6180 = vmatpush2.bf16.msra.mxu0 %v8765_v11  ;;  %v8837_v49 = vld [vmem:[%s8986_s25 + $0x1528] ss:$16 sps:$4 sm:$0xff]   ;;  %v8848_v11 = vld [vmem:[%s8986_s25 + $0x178c] ss:$16 sps:$4 sm:$0xff]  }
 0x2db   : > { %6197 = vmatpush1.bf16.msra.mxu1 %v8768_v24  ;;  %6181 = vmatprep.subr.bf16.mxu0 %v8773_v20  ;;  %v8843_v24 = vld [vmem:[%s8986_s25 + $0x1508] ss:$16 sps:$4 sm:$0xff]   ;;  %v8851_v20 = vld [vmem:[%s8986_s25 + $0x176c] ss:$16 sps:$4 sm:$0xff]  }
 0x2dc   : > { %6198 = vmatprep.subr.bf16.mxu1 %v8776_v38  ;;  %v8846_v18 = vld [vmem:[%s8986_s25 + $0x1788] ss:$16 sps:$4 sm:$0xff]   ;;  %v8854_v38 = vld [vmem:[%s8986_s25 + $0x186c] ss:$16 sps:$4 sm:$0xff]  }
 0x2de   : > { %6182 = vmatpush2.bf16.msra.mxu0 %v8771_v16  ;;  %v8849_v16 = vld [vmem:[%s8986_s25 + $0x1768] ss:$16 sps:$4 sm:$0xff]  }
 0x2df   : > { %6199 = vmatpush1.bf16.msra.mxu1 %v8774_v25  ;;  %6233 = vmatprep.subr.bf16.mxu0 %v8782_v21  ;;  %v8852_v25 = vld [vmem:[%s8986_s25 + $0x1868] ss:$16 sps:$4 sm:$0xff]   ;;  %v8860_v21 = vld [vmem:[%s8986_s25 + $0x184c] ss:$16 sps:$4 sm:$0xff]  }
 0x2e0   : > { %6200 = vmatprep.subr.bf16.mxu1 %v8779_v54  ;;  %v8857_v54 = vld [vmem:[%s8986_s25 + $0x174c] ss:$16 sps:$4 sm:$0xff]  }
 0x2e1   : > { %v5939_v7 = vpop.f32.mrf.mxu0  ;;  %6184 = vmatmul.mubr.bf16.vlgmr.msra.gmra.mxu0 %v9468_v4 }
 0x2e2   : > { %v9963_v29 = vadd.f32 %v5939_v7, %v5899_v43  ;;  %6234 = vmatpush1.bf16.msra.mxu0 %v8780_v40  ;;  %6265 = vmatprep.mubr.bf16.mxu0 %v9476_v33  ;;  %v8798_v33 = vld [vmem:[%s8986_s25 + $0x1688] ss:$16 sps:$4 sm:$0xff]   ;;  %v8836_v43 = vld [vmem:[%s8986_s25 + $0x17cc] ss:$16 sps:$4 sm:$0xff]  }
 0x2e3   : > { %6201 = vmatpush1.bf16.msra.mxu1 %v8777_v6  ;;  %v5941_v34 = vpop.f32.mrf.mxu0  ;;  %6235 = vmatprep.subr.bf16.mxu0 %v8788_v23  ;;  %v8858_v23 = vld [vmem:[%s8986_s25 + $0x1848] ss:$16 sps:$4 sm:$0xff]  }
 0x2e4   : > { %6202 = vmatprep.subr.bf16.mxu1 %v8785_v27  ;;  %v9969_v39 = vadd.f32 %v5941_v34, %v5901_v19  ;;  %v8840_v19 = vld [vmem:[%s8986_s25 + $0x17a8] ss:$16 sps:$4 sm:$0xff]  }
 0x2e5   : > { %v5943_v4 = vpop.f32.mrf.mxu0  ;;  %v8855_v27 = vld [vmem:[%s8986_s25 + $0x1748] ss:$16 sps:$4 sm:$0xff]  }
 0x2e6   : > { %6236 = vmatpush1.bf16.msra.mxu0 %v8786_v0  ;;  %v8866_v0 = vld [vmem:[%s8986_s25 + $0x182c] ss:$16 sps:$4 sm:$0xff]  }
 0x2e7   : > { %6203 = vmatpush1.bf16.msra.mxu1 %v8783_v31  ;;  %v5944_v55 = vpop.f32.mrf.mxu0  ;;  %6237 = vmatprep.subr.bf16.mxu0 %v8794_v37  ;;  %v8863_v31 = vld [vmem:[%s8986_s25 + $0x172c] ss:$16 sps:$4 sm:$0xff]  }
 0x2e8   : > { %6204 = vmatprep.subr.bf16.mxu1 %v8791_v46  ;;  %v8864_v46 = vld [vmem:[%s8986_s25 + $0x1828] ss:$16 sps:$4 sm:$0xff]   ;;  %v8869_v4 = vld [vmem:[%s8986_s25 + $0x170c] ss:$16 sps:$4 sm:$0xff]  }
 0x2e9   : > { %v8870_v55 = vld [vmem:[%s8986_s25 + $0x1808] ss:$16 sps:$4 sm:$0xff]  }
 0x2ea   : > { %6238 = vmatpush1.bf16.msra.mxu0 %v8792_v32  ;;  %v8867_v32 = vld [vmem:[%s8986_s25 + $0x1708] ss:$16 sps:$4 sm:$0xff]  }
 0x2eb   : > { %6205 = vmatpush1.bf16.msra.mxu1 %v8789_v44  ;;  %6239 = vmatprep.subr.bf16.mxu0 %v8800_v41  ;;  %v8872_v44 = vld [vmem:[%s8986_s25 + $0x180c] ss:$16 sps:$4 sm:$0xff]   ;;  %v8875_v41 = vld [vmem:[%s9885_s12 + $0x70] sm:$0xff]  }
 0x2ec   : > { %6206 = vmatprep.subr.bf16.mxu1 %v8797_v53  ;;  %v8874_v53 = vld [vmem:[%s9885_s12 + $0x38] sm:$0xff]  }
 0x2ee   : > { %6240 = vmatpush1.bf16.msra.mxu0 %v8798_v33 }
 0x2ef   : > { %6207 = vmatpush1.bf16.msra.mxu1 %v8795_v51  ;;  %6241 = vmatprep.subr.bf16.mxu0 %v8806_v52 }
 0x2f0   : > { %6208 = vmatprep.subr.bf16.mxu1 %v8803_v15 }
 0x2f2   : > { %6242 = vmatpush1.bf16.msra.mxu0 %v8804_v35 }
 0x2f3   : > { %6209 = vmatpush2.bf16.msra.mxu1 %v8801_v45  ;;  %6243 = vmatprep.subr.bf16.mxu0 %v8812_v13  ;;  %v8877_v45 = vld [vmem:[%s9885_s12 + $0x68] sm:$0xff]  }
 0x2f4   : > { %6210 = vmatprep.subr.bf16.mxu1 %v8809_v59 }
 0x2f6   : > { %6244 = vmatpush1.bf16.msra.mxu0 %v8810_v48  ;;  %v8890_v48 = vld [vmem:[%s9885_s12 + $0xb8] sm:$0xff]  }
 0x2f7   : > { %6211 = vmatpush2.bf16.msra.mxu1 %v8807_v22  ;;  %6245 = vmatprep.subr.bf16.mxu0 %v8818_v61  ;;  %v8889_v22 = vld [vmem:[%s9885_s12 + $0xf8] sm:$0xff]  }
 0x2f8   : > { %6212 = vmatprep.subr.bf16.mxu1 %v8815_v58  ;;  %v8880_v58 = vld [vmem:[%s9885_s12 + $0x20] sm:$0xff]   ;;  %v8881_v61 = vld [vmem:[%s9885_s12 + $0x58] sm:$0xff]  }
 0x2fa   : > { %6246 = vmatpush1.bf16.msra.mxu0 %v8816_v62  ;;  %v8883_v62 = vld [vmem:[%s9885_s12 + $0x50] sm:$0xff]  }
 0x2fb   : > { %6213 = vmatpush2.bf16.msra.mxu1 %v8813_v57  ;;  %6247 = vmatprep.subr.bf16.mxu0 %v8824_v63  ;;  %v8882_v57 = vld [vmem:[%s9885_s12 + $0x18] sm:$0xff]   ;;  %v8885_v63 = vld [vmem:[%s9885_s12 + $0x48] sm:$0xff]  }
 0x2fc   : > { %6214 = vmatprep.subr.bf16.mxu1 %v8821_v17  ;;  %v8884_v17 = vld [vmem:[%s9885_s12 + $0x10] sm:$0xff]  }
 0x2fe   : > { %6248 = vmatpush1.bf16.msra.mxu0 %v8822_v2  ;;  %v8887_v2 = vld [vmem:[%s9885_s12 + $0x40] sm:$0xff]  }
 0x2ff   : > { %6215 = vmatpush2.bf16.msra.mxu1 %v8819_v42  ;;  %6249 = vmatprep.subr.bf16.mxu0 %v8830_v60  ;;  %v8886_v42 = vld [vmem:[%s9885_s12 + $0x8] sm:$0xff]   ;;  %v6315_v60 = vmax.f32 %v9808_v26, 0.0 }
 0x300   : > { %6216 = vmatprep.subr.bf16.mxu1 %v8827_v30  ;;  %v8888_v30 = vld [vmem:[%s9885_s12] sm:$0xff]   ;;  %v8894_v26 = vld [vmem:[%s9885_s12 + $0xa8] sm:$0xff]  }
 0x302   : > { %6250 = vmatpush2.bf16.msra.mxu0 %v8828_v5  ;;  %v8891_v5 = vld [vmem:[%s9885_s12 + $0xf0] sm:$0xff]  }
 0x303   : > { %6217 = vmatpush2.bf16.msra.mxu1 %v8825_v3  ;;  %6251 = vmatprep.subr.bf16.mxu0 %v8836_v43  ;;  %v6319_v3 = vpack.c.bf16 %v6315_v60, %v6315_v60 }
 0x304   : > { %6218 = vmatprep.subr.bf16.mxu1 %v8833_v1  ;;  %v8892_v1 = vld [vmem:[%s9885_s12 + $0xb0] sm:$0xff]  }
 0x306   : > { %6252 = vmatpush2.bf16.msra.mxu0 %v8834_v10 }
 0x307   : > { %6219 = vmatpush2.bf16.msra.mxu1 %v8831_v8  ;;  %6253 = vmatprep.subr.bf16.mxu0 %v8842_v36 }
 0x308   : > { %6220 = vmatprep.subr.bf16.mxu1 %v8839_v50  ;;  %v8893_v50 = vld [vmem:[%s9885_s12 + $0xe8] sm:$0xff]  }
 0x30a   : > { %6254 = vmatpush2.bf16.msra.mxu0 %v8840_v19 }
 0x30b   : > { %6221 = vmatpush2.bf16.msra.mxu1 %v8837_v49  ;;  %6255 = vmatprep.subr.bf16.mxu0 %v8848_v11  ;;  %v8896_v11 = vld [vmem:[%s9885_s12 + $0xa0] sm:$0xff]  }
 0x30c   : > { %6222 = vmatprep.subr.bf16.mxu1 %v8845_v12  ;;  %v8895_v12 = vld [vmem:[%s9885_s12 + $0xe0] sm:$0xff]  }
 0x30e   : > { %6256 = vmatpush2.bf16.msra.mxu0 %v8846_v18  ;;  %v8898_v18 = vld [vmem:[%s9885_s12 + $0x98] sm:$0xff]  }
 0x30f   : > { %6223 = vmatpush2.bf16.msra.mxu1 %v8843_v24  ;;  %6257 = vmatprep.subr.bf16.mxu0 %v8851_v20  ;;  %v8897_v24 = vld [vmem:[%s9885_s12 + $0xd8] sm:$0xff]   ;;  %v8899_v20 = vld [vmem:[%s9885_s12 + $0xd0] sm:$0xff]  }
 0x310   : > { %6282 = vmatprep.subr.bf16.mxu1 %v8854_v38  ;;  %v8900_v38 = vld [vmem:[%s9885_s12 + $0x90] sm:$0xff]  }
 0x312   : > { %v5980_v6 = vpop.f32.mrf.mxu1  ;;  %6225 = vmatmul.mubr.bf16.vlgmr.msra.gmra.mxu1 %v9544_v14  ;;  %6258 = vmatpush2.bf16.msra.mxu0 %v8849_v16 }
 0x313   : > { %v5981_v40 = vadd.f32 %v5980_v6, %v9963_v29  ;;  %6283 = vmatpush1.bf16.msra.mxu1 %v8852_v25  ;;  %6259 = vmatprep.subr.bf16.mxu0 %v8857_v54  ;;  %v8861_v29 = vld [vmem:[%s8986_s25 + $0x1728] ss:$16 sps:$4 sm:$0xff]  }
 0x314   : > { %v5982_v7 = vpop.f32.mrf.mxu1  ;;  %6284 = vmatprep.subr.bf16.mxu1 %v8860_v21  ;;  %6306 = vmatprep.mubr.bf16.mxu1 %v8931_v56  ;;  %v8873_v56 = vld [vmem:[%s9885_s12 + $0x78] sm:$0xff]   ;;  %v8901_v21 = vld [vmem:[%s9885_s12 + $0xc8] sm:$0xff]  }
 0x315   : > { %v5983_v34 = vadd.f32 %v5982_v7, %v9969_v39  ;;  %v6316_v39 = vmax.f32 %v9814_v47, 0.0  ;;  %v8876_v47 = vld [vmem:[%s9885_s12 + $0x30] sm:$0xff]   ;;  %v8903_v7 = vld [vmem:[%s9885_s12 + $0xc0] sm:$0xff]  }
 0x316   : > { %v5984_v14 = vpop.f32.mrf.mxu1  ;;  %6260 = vmatpush2.bf16.msra.mxu0 %v8855_v27 }
 0x317   : > { %6285 = vmatpush1.bf16.msra.mxu1 %v8858_v23  ;;  %6261 = vmatprep.subr.bf16.mxu0 %v8863_v31  ;;  %v6320_v51 = vpack.c.bf16 %v6316_v39, %v6316_v39  ;;  %v8904_v31 = vld [vmem:[%s9885_s12 + $0x80] sm:$0xff]  }
 0x318   : > { %v5985_v37 = vpop.f32.mrf.mxu1  ;;  %6286 = vmatprep.subr.bf16.mxu1 %v8866_v0 }
 0x31a   : > { %6262 = vmatpush2.bf16.msra.mxu0 %v8861_v29 }
 0x31b   : > { %6287 = vmatpush1.bf16.msra.mxu1 %v8864_v46  ;;  %6263 = vmatprep.subr.bf16.mxu0 %v8869_v4 }
 0x31c   : > { %6288 = vmatprep.subr.bf16.mxu1 %v8872_v44 }
 0x31e   : > { %6264 = vmatpush2.bf16.msra.mxu0 %v8867_v32 }
 0x31f   : > { %6289 = vmatpush1.bf16.msra.mxu1 %v8870_v55  ;;  %7622 = vmatprep.subr.bf16.mxu0 %v8873_v56 }
 0x320   : > { %7644 = vmatprep.subr.bf16.mxu1 %v8889_v22 }
 0x321   : > { %v6021_v33 = vpop.f32.mrf.mxu0  ;;  %6266 = vmatmul.mubr.bf16.vlgmr.msra.gmra.mxu0 %v9554_v28  ;;  %v8878_v28 = vld [vmem:[%s9885_s12 + $0x28] sm:$0xff]  }
 0x322   : > { %7585 = vmatmul.mubr.msk.bf16.vlgmr.msra.gmra.mxu1 %vm5245_vm0, %v9584_v9  ;;  %v6022_v15 = vadd.f32 %v6021_v33, %v5981_v40  ;;  %7623 = vmatpush3.bf16.msra.mxu0 %v8874_v53  ;;  %v8879_v9 = vld [vmem:[%s9885_s12 + $0x60] sm:$0xff]   ;;  %v8902_v40 = vld [vmem:[%s9885_s12 + $0x88] sm:$0xff]  }
 0x323   : > { %6618 = vmatprep.mubr.bf16.mxu0 %v6320_v51  ;;  %v6023_v52 = vpop.f32.mrf.mxu0  ;;  %7624 = vmatprep.subr.bf16.mxu0 %v8875_v41 }
 0x324   : > { %v6024_v35 = vadd.f32 %v6023_v52, %v5983_v34  ;;  %7645 = vmatpush3.bf16.msra.mxu1 %v8890_v48 }
 0x325   : > { %v6025_v59 = vpop.f32.mrf.mxu0  ;;  %7646 = vmatprep.subr.bf16.mxu1 %v8891_v5 }
 0x326   : > { %7625 = vmatpush3.bf16.msra.mxu0 %v8876_v47 }
 0x327   : > { %v6026_v13 = vpop.f32.mrf.mxu0  ;;  %7626 = vmatprep.subr.bf16.mxu0 %v8877_v45 }
 0x328   : > { %7647 = vmatpush3.bf16.msra.mxu1 %v8892_v1  ;;  %v7586_v1 = vld [vmem:[%s317_s15] ss:$0 sm:$0xff] }
 0x329   : > { %7648 = vmatprep.subr.bf16.mxu1 %v8893_v50 }
 0x32a   : > { %7627 = vmatpush3.bf16.msra.mxu0 %v8878_v28 }
 0x32b   : > { %7628 = vmatprep.subr.bf16.mxu0 %v8879_v9 }
 0x32c   : > { %7649 = vmatpush3.bf16.msra.mxu1 %v8894_v26 }
 0x32d   : > { %7650 = vmatprep.subr.bf16.mxu1 %v8895_v12 }
 0x32e   : > { %7629 = vmatpush3.bf16.msra.mxu0 %v8880_v58 }
 0x32f   : > { %7630 = vmatprep.subr.bf16.mxu0 %v8881_v61 }
 0x330   : > { %7651 = vmatpush3.bf16.msra.mxu1 %v8896_v11 }
 0x331   : > { %7652 = vmatprep.subr.bf16.mxu1 %v8897_v24 }
 0x332   : > { %7631 = vmatpush3.bf16.msra.mxu0 %v8882_v57 }
 0x333   : > { %7632 = vmatprep.subr.bf16.mxu0 %v8883_v62 }
 0x334   : > { %7653 = vmatpush3.bf16.msra.mxu1 %v8898_v18 }
 0x335   : > { %7654 = vmatprep.subr.bf16.mxu1 %v8899_v20 }
 0x336   : > { %7633 = vmatpush3.bf16.msra.mxu0 %v8884_v17 }
 0x337   : > { %7634 = vmatprep.subr.bf16.mxu0 %v8885_v63 }
 0x338   : > { %7655 = vmatpush3.bf16.msra.mxu1 %v8900_v38 }
 0x339   : > { %7656 = vmatprep.subr.bf16.mxu1 %v8901_v21 }
 0x33a   : > { %7635 = vmatpush3.bf16.msra.mxu0 %v8886_v42 }
 0x33b   : > { %7636 = vmatprep.subr.bf16.mxu0 %v8887_v2 }
 0x33c   : > { %7657 = vmatpush3.bf16.msra.mxu1 %v8902_v40 }
 0x33d   : > { %7658 = vmatprep.subr.bf16.mxu1 %v8903_v7 }
 0x33e   : > { %7637 = vmatpush3.bf16.msra.mxu0 %v8888_v30 }
 0x340   : > { %7659 = vmatpush3.bf16.msra.mxu1 %v8904_v31 }
 0x341   : > { %6619 = vmatmul.mubr.bf16.vlgmr.msra.gmra.mxu0 %v6319_v3 }
 0x352   : > { %v6062_v43 = vpop.f32.mrf.mxu1 }
 0x353   : > { %v6063_v8 = vadd.f32 %v6062_v43, %v6022_v15 }
 0x354   : > { %v6064_v10 = vpop.f32.mrf.mxu1 }
 0x355   : > { %v6065_v36 = vadd.f32 %v6064_v10, %v6024_v35 }
 0x356   : > { %v6066_v49 = vpop.f32.mrf.mxu1 }
 0x358   : > { %v6067_v19 = vpop.f32.mrf.mxu1 }
 0x361   : > { %v6103_v16 = vpop.f32.mrf.mxu0 }
 0x362   : > { %v6104_v25 = vadd.f32 %v6103_v16, %v6063_v8 }
 0x363   : > { %v6105_v54 = vpop.f32.mrf.mxu0 }
 0x364   : > { %v6106_v6 = vadd.f32 %v6105_v54, %v6065_v36 }
 0x365   : > { %v6107_v27 = vpop.f32.mrf.mxu0 }
 0x367   : > { %v6108_v23 = vpop.f32.mrf.mxu0 }
 0x392   : > { %v6144_v0 = vpop.f32.mrf.mxu1 }
 0x393   : > { %v6145_v34 = vadd.f32 %v6144_v0, %v6104_v25 }
 0x394   : > { %v6146_v14 = vpop.f32.mrf.mxu1 }
 0x395   : > { %v6147_v29 = vadd.f32 %v6146_v14, %v6106_v6 }
 0x396   : > { %v6148_v46 = vpop.f32.mrf.mxu1 }
 0x398   : > { %v6149_v37 = vpop.f32.mrf.mxu1 }
 0x3a1   : > { %v6185_v4 = vpop.f32.mrf.mxu0 }
 0x3a2   : > { %v6186_v51 = vadd.f32 %v6185_v4, %v6145_v34 }
 0x3a3   : > { %v6187_v44 = vpop.f32.mrf.mxu0 }
 0x3a4   : > { %v6188_v33 = vadd.f32 %v6187_v44, %v6147_v29 }
 0x3a5   : > { %v6189_v32 = vpop.f32.mrf.mxu0 }
 0x3a7   : > { %v6190_v55 = vpop.f32.mrf.mxu0 }
 0x3d2   : > { %v6226_v56 = vpop.f32.mrf.mxu1 }
 0x3d3   : > { %v6227_v15 = vadd.f32 %v6226_v56, %v6186_v51 }
 0x3d4   : > { %v6228_v39 = vpop.f32.mrf.mxu1 }
 0x3d5   : > { %v6229_v45 = vadd.f32 %v6228_v39, %v6188_v33 }
 0x3d6   : > { %v6230_v53 = vpop.f32.mrf.mxu1 }
 0x3d8   : > { %v6231_v41 = vpop.f32.mrf.mxu1 }
 0x3e1   : > { %v6267_v47 = vpop.f32.mrf.mxu0 }
 0x3e2   : > { %v6308_v52 = vpop.f32.mrf.mxu1  ;;  %v6268_v35 = vadd.f32 %v6267_v47, %v6227_v15 }
 0x3e3   : > { %v6269_v59 = vpop.f32.mrf.mxu0 }
 0x3e4   : > { %v6310_v28 = vpop.f32.mrf.mxu1  ;;  %v6309_v13 = vadd.f32 %v6308_v52, %v6268_v35  ;;  %v6270_v9 = vadd.f32 %v6269_v59, %v6229_v45 }
 0x3e5   : > { %v6271_v22 = vpop.f32.mrf.mxu0 }
 0x3e6   : > { %v6312_v48 = vpop.f32.mrf.mxu1  ;;  %v6311_v58 = vadd.f32 %v6310_v28, %v6270_v9  ;;  %v6317_v61 = vmax.f32 %v6309_v13, 0.0 }
 0x3e7   : > { %v6272_v57 = vpop.f32.mrf.mxu0 }
 0x3e8   : > { %v6313_v62 = vpop.f32.mrf.mxu1  ;;  %v6318_v17 = vmax.f32 %v6311_v58, 0.0  ;;  %v6321_v42 = vpack.c.bf16 %v6317_v61, %v6317_v61 }
 0x3ea   : > { %v6322_v63 = vpack.c.bf16 %v6318_v17, %v6318_v17 }
 0x3ec   : > { %6658 = vmatprep.mubr.bf16.mxu1 %v6322_v63 }
 0x3ed   : > { %6659 = vmatmul.mubr.bf16.vlgmr.msra.gmra.mxu1 %v6321_v42 }
 0x401   : > { %v7638_v2 = vpop.f32.mrf.mxu0 }
 0x403   : > { %v7639_v30 = vpop.f32.mrf.mxu0 }
 0x404   : > { %v7640_v60 = vadd.f32 %v7639_v30, %v7638_v2 }
 0x405   : > { %v7641_v3 = vpop.f32.mrf.mxu0 }
 0x406   : > { %v6621_v10 = vadd.f32 %v7640_v60, %v7586_v1 }
 0x407   : > { %v7642_v5 = vpop.f32.mrf.mxu0 }
 0x4ad   : > { %v7660_v43 = vpop.f32.mrf.mxu1 }
 0x4af   : > { %v7661_v8 = vpop.f32.mrf.mxu1 }
 0x4b0   : > { %v7662_v50 = vadd.f32 %v7661_v8, %v7660_v43 }
 0x4b1   : > { %v7663_v36 = vpop.f32.mrf.mxu1 }
 0x4b2   : > { %v6661_v26 = vadd.f32 %v7662_v50, %v6621_v10 }
 0x4b3   : > { %v7664_v49 = vpop.f32.mrf.mxu1 }
 0x4b4   : > { %6666 = vst [vmem:[%s324_s23] sm:$0x3] %v6661_v26 }
 0x4b5 PF: > { %s15_s20 = sadd.s32 1, %s8928_s20   ;;  %s10090_s18 = smov %s8924_s19 }
 0x4b6   : > { %p12_p5 = scmp.ge.s32.totalorder %s15_s20, 4   ;;  %s10091_s19 = smov %s10093_s21 }
 0x4b8   :  { %14 = sbr.rel (!%p12_p5) target bundleno = 2 (0x2), region = 82 }

</bundles_post_ra>
